<compile_context>
chip_gen: v6e
topology: v6e:2x2x1
jax: 0.10.0
libtpu: 0.0.40
codegen_flags: <defaults>
</compile_context>

<pallas_src>
from functools import partial

import jax
import jax.numpy as jnp
from jax.experimental import pallas as pl
from jax.experimental.pallas import tpu as pltpu

BN_EPS = 1e-5
# Explicit scoped-VMEM limit: v5e's default is 16 MiB (v6e/v7x: 32 MiB); large
# L-tiles would trip the v5e default without this override.
_VMEM_LIMIT = 32 * 1024 * 1024
_VMEM_BUDGET = 24 * 1024 * 1024  # target for the double-buffered working set


def _stats_kernel(x_ref, w_ref, sx1_ref, s2_ref, x2_ref):
    """Phase 1: per (batch-block, L-split, L-tile) pass for rank-1 BN stats."""
    k = pl.program_id(2)

    @pl.when(k == 0)
    def _():
        sx1_ref[...] = jnp.zeros_like(sx1_ref)
        s2_ref[...] = jnp.zeros_like(s2_ref)

    x = x_ref[...].astype(jnp.float32)                       # (Bt, C, tL)
    w = w_ref[...]                                           # (C, 1) f32

    # sum over L for this tile -> contributes to x1 = mean_l(x)
    sx1_ref[...] += jnp.sum(x, axis=-1, keepdims=True)[:, None, :, :]   # (Bt,1,C,1)

    # Conv1d(128 -> 1, k=1, no bias): weighted channel sum (VPU mul + XLU reduce)
    x2 = jnp.sum(x * w[None, :, :], axis=1, keepdims=True)   # (Bt, 1, tL)
    x2_ref[...] = x2

    # S2[b] += sum_l x2^2 for this tile
    s2_ref[...] += jnp.sum(x2 * x2, axis=-1, keepdims=True)[:, None, :, :]  # (Bt,1,1,1)


def _apply_kernel(x_ref, x2_ref, x1s_ref, shift_ref, o_ref):
    """Phase 2: fused elementwise pass: scaled outer product + shift + sigmoid + residual."""
    x = x_ref[...].astype(jnp.float32)                       # (Bt, C, tL)
    # BN scale already folded into x1s; only a shift add remains per element.
    z = x1s_ref[...] * x2_ref[...] + shift_ref[...][None, :, :]
    s = jax.nn.sigmoid(z)
    # out = s*x + x + s, written FMA-friendly as s*(x+1) + x
    o_ref[...] = (s * (x + 1.0) + x).astype(o_ref.dtype)


def _pick_tiles(B, C, L, x_itemsize, out_itemsize, max_l_tile, max_b_tile):
    """Pick (batch_tile, l_tile) keeping the double-buffered working set small."""
    # Largest 128-multiple divisor of L, capped at max_l_tile (~1-2 MiB blocks).
    l_tile = 0
    cap = min(L, max_l_tile)
    for cand in range(128, cap + 1, 128):
        if L % cand == 0:
            l_tile = cand
    if l_tile == 0:
        # No 128-multiple divisor of L under the cap: use a single full-L tile.
        # TODO(synk): pad/mask ragged L instead of full-L blocks for very large L.
        l_tile = L

    def vmem_bytes(b_t, lt):
        # Per grid step: x block + out block + x2 block (f32), double buffered,
        # plus tiny per-channel side inputs.
        per_step = b_t * lt * (C * (x_itemsize + out_itemsize) + 4)
        return 2 * per_step + 4 * b_t * C * 8

    b_tile = 1
    for cand in range(1, min(B, max_b_tile) + 1):
        if B % cand == 0 and vmem_bytes(cand, l_tile) <= _VMEM_BUDGET:
            b_tile = cand
    return b_tile, l_tile


@partial(jax.jit, static_argnames=("max_l_tile", "max_b_tile"))
def ramod4(x, conv_w, bn_gamma, bn_beta, *, max_l_tile=2048, max_b_tile=4):
    """x: (B, 128, L). conv_w/bn_gamma/bn_beta: (128, 1) (channels on sublanes)."""
    B, C, L = x.shape
    x_itemsize = jnp.dtype(x.dtype).itemsize
    b_tile, l_tile = _pick_tiles(B, C, L, x_itemsize, x_itemsize, max_l_tile, max_b_tile)

    n_b = B // b_tile
    n_l = L // l_tile
    # v7x dual-TensorCore coverage for phase 1: if there is only one batch
    # block, split L into an outer "parallel" axis with separate accumulator
    # slots (summed in the tiny JAX glue below).
    n_s = 2 if (n_b == 1 and n_l >= 2 and n_l % 2 == 0) else 1
    n_inner = n_l // n_s

    conv_w = conv_w.astype(jnp.float32)
    bn_gamma = bn_gamma.astype(jnp.float32)
    bn_beta = bn_beta.astype(jnp.float32)

    # ---- Phase 1: statistics (one read of x) ------------------------------
    sx1_p, s2_p, x2 = pl.pallas_call(
        _stats_kernel,
        out_shape=(
            jax.ShapeDtypeStruct((B, n_s, C, 1), jnp.float32),   # partial sum_l x
            jax.ShapeDtypeStruct((B, n_s, 1, 1), jnp.float32),   # partial sum_l x2^2
            jax.ShapeDtypeStruct((B, 1, L), jnp.float32),        # x2 = conv(x)
        ),
        grid_spec=pltpu.PrefetchScalarGridSpec(
            num_scalar_prefetch=0,
            grid=(n_b, n_s, n_inner),
            in_specs=[
                pl.BlockSpec((b_tile, C, l_tile),
                             lambda b, s, k: (b, 0, s * n_inner + k)),
                pl.BlockSpec((C, 1), lambda b, s, k: (0, 0)),
            ],
            out_specs=[
                pl.BlockSpec((b_tile, 1, C, 1), lambda b, s, k: (b, s, 0, 0)),
                pl.BlockSpec((b_tile, 1, 1, 1), lambda b, s, k: (b, s, 0, 0)),
                pl.BlockSpec((b_tile, 1, l_tile),
                             lambda b, s, k: (b, 0, s * n_inner + k)),
            ],
        ),
        compiler_params=pltpu.CompilerParams(
            dimension_semantics=("parallel", "parallel", "arbitrary"),
            vmem_limit_bytes=_VMEM_LIMIT,
        ),
    )(x, conv_w)

    # ---- Tiny (C,)-sized BN scale/shift from the rank-1 factorization -----
    sx1 = jnp.sum(sx1_p, axis=1)                                       # (B, C, 1)
    s2 = jnp.sum(s2_p, axis=1)                                         # (B, 1, 1)
    inv_bl = 1.0 / (B * L)
    x1 = sx1 * (1.0 / L)                                               # (B, C, 1)
    s1 = jnp.sum(sx1 * conv_w[None, :, :], axis=1, keepdims=True)      # (B, 1, 1)
    mean = jnp.sum(x1 * s1, axis=0) * inv_bl                           # (C, 1)
    esq = jnp.sum(x1 * x1 * s2, axis=0) * inv_bl                       # (C, 1)
    var = jnp.maximum(esq - mean * mean, 0.0)                          # biased (train-mode BN)
    scale = bn_gamma * jax.lax.rsqrt(var + BN_EPS)                     # (C, 1)
    shift = bn_beta - mean * scale                                     # (C, 1)
    x1s = x1 * scale[None, :, :]                                       # fold BN scale into x1

    # ---- Phase 2: fused elementwise output pass (one read of x, one write) -
    out = pl.pallas_call(
        _apply_kernel,
        out_shape=jax.ShapeDtypeStruct((B, C, L), x.dtype),
        grid_spec=pltpu.PrefetchScalarGridSpec(
            num_scalar_prefetch=0,
            grid=(n_b, n_l),
            in_specs=[
                pl.BlockSpec((b_tile, C, l_tile), lambda b, k: (b, 0, k)),   # x
                pl.BlockSpec((b_tile, 1, l_tile), lambda b, k: (b, 0, k)),   # x2
                pl.BlockSpec((b_tile, C, 1), lambda b, k: (b, 0, 0)),        # x1*scale
                pl.BlockSpec((C, 1), lambda b, k: (0, 0)),                   # shift
            ],
            out_specs=pl.BlockSpec((b_tile, C, l_tile), lambda b, k: (b, 0, k)),
        ),
        compiler_params=pltpu.CompilerParams(
            dimension_semantics=("parallel", "parallel"),
            vmem_limit_bytes=_VMEM_LIMIT,
        ),
    )(x, x2, x1s, shift)
    return out


def ramod4_ref(x, conv_w, bn_gamma, bn_beta):
    """Pure-JAX reference (mirrors the PyTorch forward, train-mode BN)."""
    x = x.astype(jnp.float32)
    x1 = jnp.mean(x, axis=-1, keepdims=True)                           # (B,C,1)
    x2 = jnp.sum(x * conv_w[None, :, :], axis=1, keepdims=True)        # (B,1,L)
    x_all = jnp.matmul(x1, x2)                                         # (B,C,L)
    mean = jnp.mean(x_all, axis=(0, 2), keepdims=True)
    var = jnp.mean((x_all - mean) ** 2, axis=(0, 2), keepdims=True)
    x_bn = (x_all - mean) * jax.lax.rsqrt(var + BN_EPS)
    x_bn = x_bn * bn_gamma[None, :, :] + bn_beta[None, :, :]
    s = jax.nn.sigmoid(x_bn)
    return s * x + x + s


if __name__ == "__main__":
    C = 128   # fixed by the module definition (Conv1d in=128, BatchNorm1d(128))

    key = jax.random.PRNGKey(0)
    kx, kw, kg, kb, kx2 = jax.random.split(key, 5)

    # Conv1d weight (out=1, in=128, k=1), stored channels-on-sublanes as (C, 1)
    conv_w = jax.random.normal(kw, (C, 1), dtype=jnp.float32) / jnp.sqrt(float(C))
    # BatchNorm affine params, (C, 1)
    bn_gamma = 1.0 + 0.1 * jax.random.normal(kg, (C, 1), dtype=jnp.float32)
    bn_beta = 0.1 * jax.random.normal(kb, (C, 1), dtype=jnp.float32)

    # Case 1: small multi-batch input (batch blocking path, single L tile).
    x_a = jax.random.normal(kx, (2, C, 512), dtype=jnp.float32)
    out_a = jax.block_until_ready(ramod4(x_a, conv_w, bn_gamma, bn_beta))
    ref_a = jax.block_until_ready(ramod4_ref(x_a, conv_w, bn_gamma, bn_beta))
    assert out_a.shape == x_a.shape
    err_a = jnp.max(jnp.abs(out_a - ref_a))
    assert jnp.allclose(out_a, ref_a, rtol=5e-5, atol=5e-5), f"case A max abs err = {err_a}"

    # Case 2: single batch, multiple L tiles (exercises the phase-1 L-split
    # parallel axis used for v7x dual-TensorCore coverage).
    x_b = jax.random.normal(kx2, (1, C, 4096), dtype=jnp.float32)
    out_b = jax.block_until_ready(ramod4(x_b, conv_w, bn_gamma, bn_beta))
    ref_b = jax.block_until_ready(ramod4_ref(x_b, conv_w, bn_gamma, bn_beta))
    assert out_b.shape == x_b.shape
    err_b = jnp.max(jnp.abs(out_b - ref_b))
    assert jnp.allclose(out_b, ref_b, rtol=5e-5, atol=5e-5), f"case B max abs err = {err_b}"

    print("KERNEL_OK")
</pallas_src>

<mosaic_0001>
module attributes {stable_mosaic.version = 11 : i64} {
  func.func @_stats_kernel(%arg0: i32, %arg1: i32, %arg2: i32, %arg3: memref<2x128x512xf32, #tpu.memory_space<vmem>>, %arg4: memref<128x1xf32, #tpu.memory_space<vmem>>, %arg5: memref<2x1x128x1xf32, #tpu.memory_space<vmem>>, %arg6: memref<2x1x1x1xf32, #tpu.memory_space<vmem>>, %arg7: memref<2x1x512xf32, #tpu.memory_space<vmem>>) attributes {dimension_semantics = [#tpu.dimension_semantics<parallel>, #tpu.dimension_semantics<parallel>, #tpu.dimension_semantics<arbitrary>], iteration_bounds = array<i64: 1, 1, 1>, scalar_prefetch = 0 : i64, scratch_operands = 0 : i64, tpu.core_type = #tpu.core_type<tc>, window_params = [{transform_indices = @transform_0, window_bounds = array<i64: 2, 128, 512>}, {pipeline_mode = #tpu.pipeline_mode<synchronous>, transform_indices = @transform_1, window_bounds = array<i64: 128, 1>}, {transform_indices = @transform_2, window_bounds = array<i64: 2, 1, 128, 1>}, {transform_indices = @transform_3, window_bounds = array<i64: 2, 1, 1, 1>}, {transform_indices = @transform_4, window_bounds = array<i64: 2, 1, 512>}]} {
    %c0_i32 = arith.constant 0 : i32
    %0 = arith.cmpi eq, %arg2, %c0_i32 : i32
    %1 = arith.extui %0 : i1 to i32
    %c0_i32_0 = arith.constant 0 : i32
    %2 = arith.cmpi ne, %1, %c0_i32_0 : i32
    scf.if %2 {
      %cst_26 = arith.constant 0.000000e+00 : f32
      %24 = vector.broadcast %cst_26 : f32 to vector<2x1x128x1xf32>
      %c0_27 = arith.constant 0 : index
      %c0_28 = arith.constant 0 : index
      %c0_29 = arith.constant 0 : index
      %c0_30 = arith.constant 0 : index
      %25 = vector.load %arg5[%c0_27, %c0_28, %c0_29, %c0_30] : memref<2x1x128x1xf32, #tpu.memory_space<vmem>>, vector<2x1x128x1xf32>
      tpu.vector_store %arg5[%c0_27, %c0_28, %c0_29, %c0_30], %24 {strides = array<i32>} : memref<2x1x128x1xf32, #tpu.memory_space<vmem>>, vector<2x1x128x1xf32>,
      %cst_31 = arith.constant 0.000000e+00 : f32
      %26 = vector.broadcast %cst_31 : f32 to vector<2x1x1x1xf32>
      %c0_32 = arith.constant 0 : index
      %c0_33 = arith.constant 0 : index
      %c0_34 = arith.constant 0 : index
      %c0_35 = arith.constant 0 : index
      %27 = vector.load %arg6[%c0_32, %c0_33, %c0_34, %c0_35] : memref<2x1x1x1xf32, #tpu.memory_space<vmem>>, vector<2x1x1x1xf32>
      tpu.vector_store %arg6[%c0_32, %c0_33, %c0_34, %c0_35], %26 {strides = array<i32>} : memref<2x1x1x1xf32, #tpu.memory_space<vmem>>, vector<2x1x1x1xf32>,
    } else {
    }
    %c0 = arith.constant 0 : index
    %c0_1 = arith.constant 0 : index
    %c0_2 = arith.constant 0 : index
    %3 = vector.load %arg3[%c0, %c0_1, %c0_2] : memref<2x128x512xf32, #tpu.memory_space<vmem>>, vector<2x128x512xf32>
    %c0_3 = arith.constant 0 : index
    %c0_4 = arith.constant 0 : index
    %4 = vector.load %arg4[%c0_3, %c0_4] : memref<128x1xf32, #tpu.memory_space<vmem>>, vector<128x1xf32>
    %c0_5 = arith.constant 0 : index
    %c0_6 = arith.constant 0 : index
    %c0_7 = arith.constant 0 : index
    %c0_8 = arith.constant 0 : index
    %5 = vector.load %arg5[%c0_5, %c0_6, %c0_7, %c0_8] : memref<2x1x128x1xf32, #tpu.memory_space<vmem>>, vector<2x1x128x1xf32>
    %cst = arith.constant dense<0.000000e+00> : vector<2x128xf32>
    %6 = vector.multi_reduction <add>, %3, %cst [2] : vector<2x128x512xf32> to vector<2x128xf32>
    %7 = vector.shape_cast %6 : vector<2x128xf32> to vector<2x128x1xf32>
    %8 = vector.shape_cast %7 : vector<2x128x1xf32> to vector<2x1x128x1xf32>
    %9 = arith.addf %5, %8 : vector<2x1x128x1xf32>
    %c0_9 = arith.constant 0 : index
    %c0_10 = arith.constant 0 : index
    %c0_11 = arith.constant 0 : index
    %c0_12 = arith.constant 0 : index
    %10 = vector.load %arg5[%c0_9, %c0_10, %c0_11, %c0_12] : memref<2x1x128x1xf32, #tpu.memory_space<vmem>>, vector<2x1x128x1xf32>
    tpu.vector_store %arg5[%c0_9, %c0_10, %c0_11, %c0_12], %9 {strides = array<i32>} : memref<2x1x128x1xf32, #tpu.memory_space<vmem>>, vector<2x1x128x1xf32>,
    %11 = vector.shape_cast %4 : vector<128x1xf32> to vector<1x128x1xf32>
    %12 = vector.broadcast %11 : vector<1x128x1xf32> to vector<2x128x512xf32>
    %13 = arith.mulf %3, %12 : vector<2x128x512xf32>
    %cst_13 = arith.constant dense<0.000000e+00> : vector<2x512xf32>
    %14 = vector.multi_reduction <add>, %13, %cst_13 [1] : vector<2x128x512xf32> to vector<2x512xf32>
    %15 = vector.shape_cast %14 : vector<2x512xf32> to vector<2x1x512xf32>
    %c0_14 = arith.constant 0 : index
    %c0_15 = arith.constant 0 : index
    %c0_16 = arith.constant 0 : index
    %16 = vector.load %arg7[%c0_14, %c0_15, %c0_16] : memref<2x1x512xf32, #tpu.memory_space<vmem>>, vector<2x1x512xf32>
    tpu.vector_store %arg7[%c0_14, %c0_15, %c0_16], %15 {strides = array<i32>} : memref<2x1x512xf32, #tpu.memory_space<vmem>>, vector<2x1x512xf32>,
    %c0_17 = arith.constant 0 : index
    %c0_18 = arith.constant 0 : index
    %c0_19 = arith.constant 0 : index
    %c0_20 = arith.constant 0 : index
    %17 = vector.load %arg6[%c0_17, %c0_18, %c0_19, %c0_20] : memref<2x1x1x1xf32, #tpu.memory_space<vmem>>, vector<2x1x1x1xf32>
    %18 = arith.mulf %15, %15 : vector<2x1x512xf32>
    %cst_21 = arith.constant dense<0.000000e+00> : vector<2x1xf32>
    %19 = vector.multi_reduction <add>, %18, %cst_21 [2] : vector<2x1x512xf32> to vector<2x1xf32>
    %20 = vector.shape_cast %19 : vector<2x1xf32> to vector<2x1x1xf32>
    %21 = vector.shape_cast %20 : vector<2x1x1xf32> to vector<2x1x1x1xf32>
    %22 = arith.addf %17, %21 : vector<2x1x1x1xf32>
    %c0_22 = arith.constant 0 : index
    %c0_23 = arith.constant 0 : index
    %c0_24 = arith.constant 0 : index
    %c0_25 = arith.constant 0 : index
    %23 = vector.load %arg6[%c0_22, %c0_23, %c0_24, %c0_25] : memref<2x1x1x1xf32, #tpu.memory_space<vmem>>, vector<2x1x1x1xf32>
    tpu.vector_store %arg6[%c0_22, %c0_23, %c0_24, %c0_25], %22 {strides = array<i32>} : memref<2x1x1x1xf32, #tpu.memory_space<vmem>>, vector<2x1x1x1xf32>,
    return
  }
  func.func @transform_0(%arg0: i32, %arg1: i32, %arg2: i32) -> (i32, i32, i32) {
    %c1_i32 = arith.constant 1 : i32
    %0 = arith.muli %arg1, %c1_i32 : i32
    %1 = arith.addi %0, %arg2 : i32
    %c0_i32 = arith.constant 0 : i32
    %c0_i32_0 = arith.constant 0 : i32
    return %arg0, %c0_i32, %1 : i32, i32, i32
  }
  func.func @transform_1(%arg0: i32, %arg1: i32, %arg2: i32) -> (i32, i32) {
    %c0_i32 = arith.constant 0 : i32
    %c0_i32_0 = arith.constant 0 : i32
    %c0_i32_1 = arith.constant 0 : i32
    return %c0_i32, %c0_i32_0 : i32, i32
  }
  func.func @transform_2(%arg0: i32, %arg1: i32, %arg2: i32) -> (i32, i32, i32, i32) {
    %c0_i32 = arith.constant 0 : i32
    %c0_i32_0 = arith.constant 0 : i32
    %c0_i32_1 = arith.constant 0 : i32
    return %arg0, %arg1, %c0_i32, %c0_i32_0 : i32, i32, i32, i32
  }
  func.func @transform_3(%arg0: i32, %arg1: i32, %arg2: i32) -> (i32, i32, i32, i32) {
    %c0_i32 = arith.constant 0 : i32
    %c0_i32_0 = arith.constant 0 : i32
    %c0_i32_1 = arith.constant 0 : i32
    return %arg0, %arg1, %c0_i32, %c0_i32_0 : i32, i32, i32, i32
  }
  func.func @transform_4(%arg0: i32, %arg1: i32, %arg2: i32) -> (i32, i32, i32) {
    %c1_i32 = arith.constant 1 : i32
    %0 = arith.muli %arg1, %c1_i32 : i32
    %1 = arith.addi %0, %arg2 : i32
    %c0_i32 = arith.constant 0 : i32
    %c0_i32_0 = arith.constant 0 : i32
    return %arg0, %c0_i32, %1 : i32, i32, i32
  }
}

module attributes {stable_mosaic.version = 11 : i64} {
  func.func @_apply_kernel(%arg0: i32, %arg1: i32, %arg2: memref<2x128x512xf32, #tpu.memory_space<vmem>>, %arg3: memref<2x1x512xf32, #tpu.memory_space<vmem>>, %arg4: memref<2x128x1xf32, #tpu.memory_space<vmem>>, %arg5: memref<128x1xf32, #tpu.memory_space<vmem>>, %arg6: memref<2x128x512xf32, #tpu.memory_space<vmem>>) attributes {dimension_semantics = [#tpu.dimension_semantics<parallel>, #tpu.dimension_semantics<parallel>], iteration_bounds = array<i64: 1, 1>, scalar_prefetch = 0 : i64, scratch_operands = 0 : i64, tpu.core_type = #tpu.core_type<tc>, window_params = [{transform_indices = @transform_0, window_bounds = array<i64: 2, 128, 512>}, {transform_indices = @transform_1, window_bounds = array<i64: 2, 1, 512>}, {transform_indices = @transform_2, window_bounds = array<i64: 2, 128, 1>}, {pipeline_mode = #tpu.pipeline_mode<synchronous>, transform_indices = @transform_3, window_bounds = array<i64: 128, 1>}, {transform_indices = @transform_4, window_bounds = array<i64: 2, 128, 512>}]} {
    %c0 = arith.constant 0 : index
    %c0_0 = arith.constant 0 : index
    %c0_1 = arith.constant 0 : index
    %0 = vector.load %arg2[%c0, %c0_0, %c0_1] : memref<2x128x512xf32, #tpu.memory_space<vmem>>, vector<2x128x512xf32>
    %c0_2 = arith.constant 0 : index
    %c0_3 = arith.constant 0 : index
    %c0_4 = arith.constant 0 : index
    %1 = vector.load %arg4[%c0_2, %c0_3, %c0_4] : memref<2x128x1xf32, #tpu.memory_space<vmem>>, vector<2x128x1xf32>
    %c0_5 = arith.constant 0 : index
    %c0_6 = arith.constant 0 : index
    %c0_7 = arith.constant 0 : index
    %2 = vector.load %arg3[%c0_5, %c0_6, %c0_7] : memref<2x1x512xf32, #tpu.memory_space<vmem>>, vector<2x1x512xf32>
    %3 = vector.broadcast %1 : vector<2x128x1xf32> to vector<2x128x512xf32>
    %4 = vector.broadcast %2 : vector<2x1x512xf32> to vector<2x128x512xf32>
    %5 = arith.mulf %3, %4 : vector<2x128x512xf32>
    %c0_8 = arith.constant 0 : index
    %c0_9 = arith.constant 0 : index
    %6 = vector.load %arg5[%c0_8, %c0_9] : memref<128x1xf32, #tpu.memory_space<vmem>>, vector<128x1xf32>
    %7 = vector.shape_cast %6 : vector<128x1xf32> to vector<1x128x1xf32>
    %8 = vector.broadcast %7 : vector<1x128x1xf32> to vector<2x128x512xf32>
    %9 = arith.addf %5, %8 : vector<2x128x512xf32>
    %10 = arith.negf %9 : vector<2x128x512xf32>
    %11 = math.exp %10 : vector<2x128x512xf32>
    %cst = arith.constant 1.000000e+00 : f32
    %12 = vector.broadcast %cst : f32 to vector<2x128x512xf32>
    %13 = arith.addf %12, %11 : vector<2x128x512xf32>
    %14 = arith.divf %12, %13 : vector<2x128x512xf32>
    %cst_10 = arith.constant 1.000000e+00 : f32
    %15 = vector.broadcast %cst_10 : f32 to vector<2x128x512xf32>
    %16 = arith.addf %0, %15 : vector<2x128x512xf32>
    %17 = arith.mulf %14, %16 : vector<2x128x512xf32>
    %18 = arith.addf %17, %0 : vector<2x128x512xf32>
    %c0_11 = arith.constant 0 : index
    %c0_12 = arith.constant 0 : index
    %c0_13 = arith.constant 0 : index
    %19 = vector.load %arg6[%c0_11, %c0_12, %c0_13] : memref<2x128x512xf32, #tpu.memory_space<vmem>>, vector<2x128x512xf32>
    tpu.vector_store %arg6[%c0_11, %c0_12, %c0_13], %18 {strides = array<i32>} : memref<2x128x512xf32, #tpu.memory_space<vmem>>, vector<2x128x512xf32>,
    return
  }
  func.func @transform_0(%arg0: i32, %arg1: i32) -> (i32, i32, i32) {
    %c0_i32 = arith.constant 0 : i32
    %c0_i32_0 = arith.constant 0 : i32
    return %arg0, %c0_i32, %arg1 : i32, i32, i32
  }
  func.func @transform_1(%arg0: i32, %arg1: i32) -> (i32, i32, i32) {
    %c0_i32 = arith.constant 0 : i32
    %c0_i32_0 = arith.constant 0 : i32
    return %arg0, %c0_i32, %arg1 : i32, i32, i32
  }
  func.func @transform_2(%arg0: i32, %arg1: i32) -> (i32, i32, i32) {
    %c0_i32 = arith.constant 0 : i32
    %c0_i32_0 = arith.constant 0 : i32
    %c0_i32_1 = arith.constant 0 : i32
    return %arg0, %c0_i32, %c0_i32_0 : i32, i32, i32
  }
  func.func @transform_3(%arg0: i32, %arg1: i32) -> (i32, i32) {
    %c0_i32 = arith.constant 0 : i32
    %c0_i32_0 = arith.constant 0 : i32
    %c0_i32_1 = arith.constant 0 : i32
    return %c0_i32, %c0_i32_0 : i32, i32
  }
  func.func @transform_4(%arg0: i32, %arg1: i32) -> (i32, i32, i32) {
    %c0_i32 = arith.constant 0 : i32
    %c0_i32_0 = arith.constant 0 : i32
    return %arg0, %c0_i32, %arg1 : i32, i32, i32
  }
}

</mosaic_0001>

<bundles_post_ra>
// kernel: ramod4.2
= control target key start
LH: loop header
LB: loop body
LE: loop exit
PB: predicated region body
PF: predicated region fallthrough
CT: control target
= control target key end

     0   :  { %10 = vsyncpa [#allocation3], 0  ;;  %s1011_s15 = smov [#allocation2]   ;;  %s2238_s0 = inlined_call_operand.hbm [shape: f32[2,128,512], index: 0, kind: input, shape index: {}]   ;;  %s2239_s1 = inlined_call_operand.vmem [shape: f32[128,1], index: 1, kind: input, shape index: {}]   ;;  %s2240_s2 = inlined_call_operand.vmem [shape: f32[2,1,128,1], index: 2, kind: output, shape index: {0}]   ;;  %s2241_s3 = inlined_call_operand.vmem [shape: f32[2,1,1,1], index: 3, kind: output, shape index: {1}]   ;;  %s2242_s4 = inlined_call_operand.vmem [shape: f32[2,1,512], index: 4, kind: output, shape index: {2}]  }
   0x1   :  { %s20_s16 = sshll.u32 %s1011_s15, 4  ;;  %s21_s16 = int_to_ptr.vmem [resolvable:$true] %s20_s16 }
   0x2   :  { %s997_s17 = scalar_lea.vmem %s21_s16, 16384  ;;  %p1002_p1 = scmp.lt.s32.totalorder %s21_s16, %s21_s16 }
   0x3   :  { %p998_p0 = scmp.ne.s32.totalorder %s21_s16, %s997_s17  ;;  %p1003_p2 = scmp.lt.s32.totalorder %s997_s17, %s997_s17 }
   0x5   :  { %p1004_p3 = por %p1003_p2, %p1002_p1 }
   0x7   :  { %p1005_p4 = pnand %p1004_p3, %p998_p0 }
   0x9   :  { %1008 = shalt.err (!%p1005_p4)
}
   0xa   :  { %s1012_s18 = smov 512   ;;  %s1013_s19 = smov 32  }
   0xb   :  { %26 = dma.hbm_to_vmem [thread:$0]  %s2238_s0, 16384, %s21_s16, [#allocation3], %s1012_s18, %s1012_s18, %s1013_s19  }
   0xc   :  { %1009 = dma.done.wait [#allocation3], 16384  }
   0xd   :  { %1010 = vsyncadd [#allocation3], 4294950912  ;;  %v1014_v0 = vmov 0   ;;  %v216_v1 = vld [vmem:[%s2239_s1 + $0x10] sm:$0xff]  ;;  %v214_v2 = vld [vmem:[%s2239_s1] sm:$0xff]  ;;  %vm50_vm0 = vcmask 7168  }
   0xe   :  { %988 = vset.pattern.permute.xlu1 %v1014_v0  ;;  %987 = vset.pattern.permute.xlu0 %v1014_v0  ;;  %v217_v3 = vld [vmem:[%s2239_s1 + $0x18] sm:$0xff]  ;;  %v215_v4 = vld [vmem:[%s2239_s1 + $0x8] sm:$0xff]  ;;  %v218_v6 = vld [vmem:[%s2239_s1 + $0x20] sm:$0xff]  ;;  %vm83_vm2 = vcmask 0  }
   0xf   :  { %499 = vperm.xlu1 %988, %v216_v1   ;;  %489 = vperm.xlu0 %987, %v214_v2   ;;  %v219_v5 = vld [vmem:[%s2239_s1 + $0x28] sm:$0xff]  ;;  %v221_v7 = vld [vmem:[%s2239_s1 + $0x38] sm:$0xff]  ;;  %v220_v8 = vld [vmem:[%s2239_s1 + $0x30] sm:$0xff] }
  0x10   :  { %v223_v9 = vld [vmem:[%s2239_s1 + $0x48] sm:$0xff]  ;;  %v222_v10 = vld [vmem:[%s2239_s1 + $0x40] sm:$0xff]  ;;  %v225_v11 = vld [vmem:[%s2239_s1 + $0x58] sm:$0xff] }
  0x11   :  { %v224_v12 = vld [vmem:[%s2239_s1 + $0x50] sm:$0xff]  ;;  %v227_v13 = vld [vmem:[%s2239_s1 + $0x68] sm:$0xff]  ;;  %v226_v14 = vld [vmem:[%s2239_s1 + $0x60] sm:$0xff] }
  0x12   :  { %v229_v15 = vld [vmem:[%s2239_s1 + $0x78] sm:$0xff]  ;;  %v228_v16 = vld [vmem:[%s2239_s1 + $0x70] sm:$0xff]  ;;  %v1093_v17 = vld [vmem:[#allocation2] sm:$0xff] }
  0x13   :  { %504 = vperm.xlu1 %988, %v217_v3   ;;  %494 = vperm.xlu0 %987, %v215_v4   ;;  %v1095_v18 = vld [vmem:[#allocation2 + $0x8] sm:$0xff]  ;;  %v1099_v20 = vld [vmem:[#allocation2 + $0x10] sm:$0xff]  ;;  %v1101_v21 = vld [vmem:[#allocation2 + $0x40] sm:$0xff] }
  0x14   :  { %v262_v19 = vadd.f32 %v1095_v18, %v1093_v17  ;;  %v1103_v22 = vld [vmem:[#allocation2 + $0x48] sm:$0xff]  ;;  %v1105_v23 = vld [vmem:[#allocation2 + $0x20] sm:$0xff]  ;;  %v1109_v25 = vld [vmem:[#allocation2 + $0x18] sm:$0xff] }
  0x15   :  { %v1107_v24 = vld [vmem:[#allocation2 + $0x28] sm:$0xff]  ;;  %v272_v27 = vadd.f32 %v1103_v22, %v1101_v21  ;;  %v1114_v28 = vld [vmem:[#allocation2 + $0x50] sm:$0xff]  ;;  %v1118_v30 = vld [vmem:[#allocation2 + $0x60] sm:$0xff] }
  0x16   :  { %v263_v26 = vadd.f32 %v262_v19, %v1099_v20  ;;  %v267_v29 = vadd.f32 %v1107_v24, %v1105_v23  ;;  %v1120_v31 = vld [vmem:[#allocation2 + $0x68] sm:$0xff]  ;;  %v1122_v32 = vld [vmem:[#allocation2 + $0x30] sm:$0xff]  ;;  %v1124_v33 = vld [vmem:[#allocation2 + $0x80] sm:$0xff] }
  0x17   :  { %514 = vperm.xlu1 %988, %v219_v5   ;;  %509 = vperm.xlu0 %987, %v218_v6   ;;  %v1126_v34 = vld [vmem:[#allocation2 + $0x88] sm:$0xff]  ;;  %v1129_v36 = vld [vmem:[#allocation2 + $0x58] sm:$0xff]  ;;  %v273_v37 = vadd.f32 %v272_v27, %v1114_v28  ;;  %v277_v39 = vadd.f32 %v1120_v31, %v1118_v30  ;;  %v1137_v41 = vld [vmem:[#allocation2 + $0x70] sm:$0xff] }
  0x18   :  { %v264_v35 = vadd.f32 %v263_v26, %v1109_v25  ;;  %v1132_v38 = vld [vmem:[#allocation2 + $0x38] sm:$0xff]  ;;  %v268_v40 = vadd.f32 %v267_v29, %v1122_v32  ;;  %v282_v42 = vadd.f32 %v1126_v34, %v1124_v33  ;;  %v1141_v43 = vld [vmem:[#allocation2 + $0xa0] sm:$0xff]  ;;  %v1143_v44 = vld [vmem:[#allocation2 + $0xa8] sm:$0xff] }
  0x19   :  { %v1145_v45 = vld [vmem:[#allocation2 + $0x90] sm:$0xff]  ;;  %v1147_v46 = vld [vmem:[#allocation2 + $0xc0] sm:$0xff]  ;;  %v1149_v47 = vld [vmem:[#allocation2 + $0xc8] sm:$0xff]  ;;  %v274_v48 = vadd.f32 %v273_v37, %v1129_v36  ;;  %v278_v50 = vadd.f32 %v277_v39, %v1137_v41  ;;  %v287_v52 = vadd.f32 %v1143_v44, %v1141_v43 }
  0x1a   :  { %v1152_v49 = vld [vmem:[#allocation2 + $0x78] sm:$0xff]  ;;  %v269_v53 = vadd.f32 %v268_v40, %v1132_v38  ;;  %v283_v54 = vadd.f32 %v282_v42, %v1145_v45  ;;  %v1161_v55 = vld [vmem:[#allocation2 + $0xb0] sm:$0xff]  ;;  %v292_v56 = vadd.f32 %v1149_v47, %v1147_v46  ;;  %v1165_v57 = vld [vmem:[#allocation2 + $0xe0] sm:$0xff] }
  0x1b   :  { %524 = vperm.xlu1 %988, %v221_v7   ;;  %519 = vperm.xlu0 %987, %v220_v8   ;;  %v1155_v51 = vld [vmem:[#allocation2 + $0x98] sm:$0xff]  ;;  %v1167_v58 = vld [vmem:[#allocation2 + $0xe8] sm:$0xff]  ;;  %v1169_v59 = vld [vmem:[#allocation2 + $0xd0] sm:$0xff]  ;;  %v279_v62 = vadd.f32 %v278_v50, %v1152_v49  ;;  %v288_v0 = vadd.f32 %v287_v52, %v1161_v55 }
  0x1c   :  { %v1171_v60 = vld [vmem:[#allocation2 + $0x100] sm:$0xff]  ;;  %v1173_v61 = vld [vmem:[#allocation2 + $0x108] sm:$0xff]  ;;  %v1176_v63 = vld [vmem:[#allocation2 + $0xb8] sm:$0xff]  ;;  %v297_v2 = vadd.f32 %v1167_v58, %v1165_v57  ;;  %v284_v3 = vadd.f32 %v283_v54, %v1155_v51  ;;  %v293_v4 = vadd.f32 %v292_v56, %v1169_v59 }
  0x1d   :  { %2324 = vst [vmem:[#allocation5_spill] sm:$0xff] %v1171_v60  ;;  %2325 = vst [vmem:[#allocation6_spill] sm:$0xff] %v1173_v61  ;;  %v1179_v1 = vld [vmem:[#allocation2 + $0xd8] sm:$0xff]  ;;  %v1185_v5 = vld [vmem:[#allocation2 + $0xf0] sm:$0xff]  ;;  %v302_v6 = vadd.f32 %v1173_v61, %v1171_v60  ;;  %v2277_v61 = vmov 0.0  }
  0x1e   :  { %v1189_v7 = vld [vmem:[#allocation2 + $0x120] sm:$0xff]  ;;  %v1191_v8 = vld [vmem:[#allocation2 + $0x128] sm:$0xff]  ;;  %v294_v19 = vadd.f32 %v293_v4, %v1179_v1  ;;  %v1209_v27 = vld [vmem:[#allocation2 + $0x130] sm:$0xff]  ;;  %51 = vst.msk [vmem:[%s2240_s2] sm:$0xff] %vm50_vm0, %v2277_v61 }
  0x1f   :  { %534 = vperm.xlu1 %988, %v223_v9   ;;  %529 = vperm.xlu0 %987, %v222_v10   ;;  %2326 = vst [vmem:[#allocation7_spill] sm:$0xff] %v1191_v8  ;;  %v1193_v9 = vld [vmem:[#allocation2 + $0x110] sm:$0xff]  ;;  %v1195_v10 = vld [vmem:[#allocation2 + $0x140] sm:$0xff]  ;;  %2331 = vst [vmem:[#allocation12_spill] sm:$0xff] %v1209_v27 }
  0x20   :  { %2327 = vst [vmem:[#allocation8_spill] sm:$0xff] %v1193_v9  ;;  %2328 = vst [vmem:[#allocation9_spill] sm:$0xff] %v1195_v10  ;;  %v303_v26 = vadd.f32 %v302_v6, %v1193_v9  ;;  %v1215_v37 = vld [vmem:[#allocation2 + $0x168] sm:$0xff]  ;;  %v1217_v39 = vld [vmem:[#allocation2 + $0x150] sm:$0xff] }
  0x21   :  { %2333 = vst [vmem:[#allocation14_spill] sm:$0xff] %v1215_v37  ;;  %2334 = vst [vmem:[#allocation15_spill] sm:$0xff] %v1217_v39  ;;  %v1219_v40 = vld [vmem:[#allocation2 + $0x180] sm:$0xff]  ;;  %v1221_v42 = vld [vmem:[#allocation2 + $0x188] sm:$0xff] }
  0x22   :  { %2335 = vst [vmem:[#allocation16_spill] sm:$0xff] %v1219_v40  ;;  %2336 = vst [vmem:[#allocation17_spill] sm:$0xff] %v1221_v42  ;;  %v1224_v50 = vld [vmem:[#allocation2 + $0x138] sm:$0xff]  ;;  %v1239_v4 = vld [vmem:[#allocation2 + $0x1a8] sm:$0xff] }
  0x23   :  { %544 = vperm.xlu1 %988, %v225_v11   ;;  %539 = vperm.xlu0 %987, %v224_v12   ;;  %v1197_v11 = vld [vmem:[#allocation2 + $0x148] sm:$0xff]  ;;  %v289_v12 = vadd.f32 %v288_v0, %v1176_v63  ;;  %2337 = vst [vmem:[#allocation18_spill] sm:$0xff] %v1224_v50  ;;  %v1233_v0 = vld [vmem:[#allocation2 + $0x170] sm:$0xff]  ;;  %2341 = vst [vmem:[#allocation22_spill] sm:$0xff] %v1239_v4 }
  0x24   :  { %2329 = vst [vmem:[#allocation10_spill] sm:$0xff] %v1197_v11  ;;  %v312_v29 = vadd.f32 %v1197_v11, %v1195_v10  ;;  %2339 = vst [vmem:[#allocation20_spill] sm:$0xff] %v1233_v0  ;;  %v1241_v6 = vld [vmem:[#allocation2 + $0x190] sm:$0xff]  ;;  %v1263_v10 = vld [vmem:[#allocation2 + $0x198] sm:$0xff] }
  0x25   :  { %2342 = vst [vmem:[#allocation23_spill] sm:$0xff] %v1241_v6  ;;  %2349 = vst [vmem:[#allocation30_spill] sm:$0xff] %v1263_v10  ;;  %v1505_v60 = vld [vmem:[#allocation2 + $0x2c8] sm:$0xff] }
  0x26   :  { %52 = vst.msk [vmem:[%s2240_s2 + $0x8] sm:$0xff] %vm50_vm0, %v2277_v61  ;;  %53 = vst.msk [vmem:[%s2240_s2 + $0x10] sm:$0xff] %vm50_vm0, %v2277_v61 }
  0x27   :  { %554 = vperm.xlu1 %988, %v227_v13   ;;  %549 = vperm.xlu0 %987, %v226_v14   ;;  %v1200_v13 = vld [vmem:[#allocation2 + $0xf8] sm:$0xff]  ;;  %v298_v14 = vadd.f32 %v297_v2, %v1185_v5  ;;  %v322_v2 = vadd.f32 %v1221_v42, %v1219_v40  ;;  %54 = vst.msk [vmem:[%s2240_s2 + $0x18] sm:$0xff] %vm50_vm0, %v2277_v61  ;;  %55 = vst.msk [vmem:[%s2240_s2 + $0x20] sm:$0xff] %vm50_vm0, %v2277_v61 }
  0x28   :  { %56 = vst.msk [vmem:[%s2240_s2 + $0x28] sm:$0xff] %vm50_vm0, %v2277_v61  ;;  %57 = vst.msk [vmem:[%s2240_s2 + $0x30] sm:$0xff] %vm50_vm0, %v2277_v61 }
  0x29   :  { %v323_v40 = vadd.f32 %v322_v2, %v1241_v6  ;;  %v1271_v6 = vld [vmem:[#allocation2 + $0x200] sm:$0xff]  ;;  %58 = vst.msk [vmem:[%s2240_s2 + $0x38] sm:$0xff] %vm50_vm0, %v2277_v61  ;;  %59 = vst.msk [vmem:[%s2240_s2 + $0x40] sm:$0xff] %vm50_vm0, %v2277_v61 }
  0x2a   :  { %60 = vst.msk [vmem:[%s2240_s2 + $0x48] sm:$0xff] %vm50_vm0, %v2277_v61  ;;  %61 = vst.msk [vmem:[%s2240_s2 + $0x50] sm:$0xff] %vm50_vm0, %v2277_v61 }
  0x2b   :  { %564 = vperm.xlu1 %988, %v229_v15   ;;  %559 = vperm.xlu0 %987, %v228_v16   ;;  %v1203_v15 = vld [vmem:[#allocation2 + $0x118] sm:$0xff]  ;;  %v307_v16 = vadd.f32 %v1191_v8, %v1189_v7  ;;  %62 = vst.msk [vmem:[%s2240_s2 + $0x58] sm:$0xff] %vm50_vm0, %v2277_v61  ;;  %63 = vst.msk [vmem:[%s2240_s2 + $0x60] sm:$0xff] %vm50_vm0, %v2277_v61 }
  0x2c   :  { %2330 = vst [vmem:[#allocation11_spill] sm:$0xff] %v1203_v15  ;;  %v304_v56 = vadd.f32 %v303_v26, %v1203_v15  ;;  %64 = vst.msk [vmem:[%s2240_s2 + $0x68] sm:$0xff] %vm50_vm0, %v2277_v61 }
  0x2d   :  { %v308_v52 = vadd.f32 %v307_v16, %v1209_v27  ;;  %65 = vst.msk [vmem:[%s2240_s2 + $0x70] sm:$0xff] %vm50_vm0, %v2277_v61  ;;  %66 = vst.msk [vmem:[%s2240_s2 + $0x78] sm:$0xff] %vm50_vm0, %v2277_v61 }
  0x2e   :  { %67 = vst.msk [vmem:[%s2240_s2 + $0x80] sm:$0xff] %vm50_vm0, %v2277_v61  ;;  %68 = vst.msk [vmem:[%s2240_s2 + $0x88] sm:$0xff] %vm50_vm0, %v2277_v61 }
  0x2f   :  { %v309_v16 = vadd.f32 %v308_v52, %v1224_v50  ;;  %v1261_v52 = vld [vmem:[#allocation2 + $0x1e8] sm:$0xff]  ;;  %69 = vst.msk [vmem:[%s2240_s2 + $0x90] sm:$0xff] %vm50_vm0, %v2277_v61  ;;  %70 = vst.msk [vmem:[%s2240_s2 + $0x98] sm:$0xff] %vm50_vm0, %v2277_v61 }
  0x30   :  { %2348 = vst [vmem:[#allocation29_spill] sm:$0xff] %v1261_v52  ;;  %71 = vst.msk [vmem:[%s2240_s2 + $0xa0] sm:$0xff] %vm50_vm0, %v2277_v61 }
  0x31   :  { %72 = vst.msk [vmem:[%s2240_s2 + $0xa8] sm:$0xff] %vm50_vm0, %v2277_v61  ;;  %73 = vst.msk [vmem:[%s2240_s2 + $0xb0] sm:$0xff] %vm50_vm0, %v2277_v61 }
  0x32   :  { %74 = vst.msk [vmem:[%s2240_s2 + $0xb8] sm:$0xff] %vm50_vm0, %v2277_v61  ;;  %75 = vst.msk [vmem:[%s2240_s2 + $0xc0] sm:$0xff] %vm50_vm0, %v2277_v61 }
  0x33   :  { %76 = vst.msk [vmem:[%s2240_s2 + $0xc8] sm:$0xff] %vm50_vm0, %v2277_v61  ;;  %77 = vst.msk [vmem:[%s2240_s2 + $0xd0] sm:$0xff] %vm50_vm0, %v2277_v61 }
  0x34   :  { %78 = vst.msk [vmem:[%s2240_s2 + $0xd8] sm:$0xff] %vm50_vm0, %v2277_v61  ;;  %79 = vst.msk [vmem:[%s2240_s2 + $0xe0] sm:$0xff] %vm50_vm0, %v2277_v61 }
  0x35   :  { %80 = vst.msk [vmem:[%s2240_s2 + $0xe8] sm:$0xff] %vm50_vm0, %v2277_v61  ;;  %81 = vst.msk [vmem:[%s2240_s2 + $0xf0] sm:$0xff] %vm50_vm0, %v2277_v61 }
  0x36   :  { %82 = vst.msk [vmem:[%s2240_s2 + $0xf8] sm:$0xff] %vm50_vm0, %v2277_v61  ;;  %2364 = vst [vmem:[#allocation45_spill] sm:$0xff] %v1505_v60  ;;  %v1515_v61 = vld [vmem:[#allocation2 + $0x2b0] sm:$0xff] }
  0x37   :  { %2367 = vst [vmem:[#allocation48_spill] sm:$0xff] %v1515_v61 }
  0x4a   :  { %265 = vadd.xlane.f32.xlu0 %v264_v35  ;;  %v1213_v35 = vld [vmem:[#allocation2 + $0x160] sm:$0xff] }
  0x4b   :  { %2332 = vst [vmem:[#allocation13_spill] sm:$0xff] %v1213_v35  ;;  %v317_v54 = vadd.f32 %v1215_v37, %v1213_v35  ;;  %v1319_v37 = vld [vmem:[#allocation2 + $0x280] sm:$0xff]  ;;  %v1321_v35 = vld [vmem:[#allocation2 + $0x288] sm:$0xff] }
  0x4c   :  { %2357 = vst [vmem:[#allocation38_spill] sm:$0xff] %v1319_v37  ;;  %2358 = vst [vmem:[#allocation39_spill] sm:$0xff] %v1321_v35 }
  0x4d   :  { %v318_v26 = vadd.f32 %v317_v54, %v1233_v0  ;;  %v1265_v54 = vld [vmem:[#allocation2 + $0x1d0] sm:$0xff]  ;;  %v1311_v0 = vld [vmem:[#allocation2 + $0x268] sm:$0xff] }
  0x4e   :  { %275 = vadd.xlane.f32.xlu0 %v274_v48  ;;  %v299_v48 = vadd.f32 %v298_v14, %v1200_v13  ;;  %v1245_v14 = vld [vmem:[#allocation2 + $0x1c8] sm:$0xff]  ;;  %2350 = vst [vmem:[#allocation31_spill] sm:$0xff] %v1265_v54  ;;  %2356 = vst [vmem:[#allocation37_spill] sm:$0xff] %v1311_v0 }
  0x4f   :  { %270 = vadd.xlane.f32.xlu1 %v269_v53  ;;  %v1227_v53 = vld [vmem:[#allocation2 + $0x158] sm:$0xff]  ;;  %2344 = vst [vmem:[#allocation25_spill] sm:$0xff] %v1245_v14 }
  0x50   :  { %2338 = vst [vmem:[#allocation19_spill] sm:$0xff] %v1227_v53 }
  0x52   :  { %280 = vadd.xlane.f32.xlu0 %v279_v62  ;;  %v313_v62 = vadd.f32 %v312_v29, %v1217_v39  ;;  %v1255_v39 = vld [vmem:[#allocation2 + $0x1b0] sm:$0xff] }
  0x53   :  { %285 = vadd.xlane.f32.xlu1 %v284_v3  ;;  %v1237_v3 = vld [vmem:[#allocation2 + $0x1a0] sm:$0xff]  ;;  %2346 = vst [vmem:[#allocation27_spill] sm:$0xff] %v1255_v39 }
  0x54   :  { %2340 = vst [vmem:[#allocation21_spill] sm:$0xff] %v1237_v3  ;;  %v327_v29 = vadd.f32 %v1239_v4, %v1237_v3  ;;  %v314_v42 = vadd.f32 %v313_v62, %v1227_v53  ;;  %v1273_v4 = vld [vmem:[#allocation2 + $0x208] sm:$0xff]  ;;  %v1279_v53 = vld [vmem:[#allocation2 + $0x1f0] sm:$0xff] }
  0x55   :  { %2352 = vst [vmem:[#allocation33_spill] sm:$0xff] %v1279_v53 }
  0x56   :  { %290 = vadd.xlane.f32.xlu0 %v289_v12  ;;  %v1243_v12 = vld [vmem:[#allocation2 + $0x1c0] sm:$0xff]  ;;  %v328_v62 = vadd.f32 %v327_v29, %v1255_v39  ;;  %v1297_v39 = vld [vmem:[#allocation2 + $0x248] sm:$0xff] }
  0x57   :  { %295 = vadd.xlane.f32.xlu1 %v294_v19  ;;  %2343 = vst [vmem:[#allocation24_spill] sm:$0xff] %v1243_v12  ;;  %v1248_v19 = vld [vmem:[#allocation2 + $0x178] sm:$0xff]  ;;  %v332_v11 = vadd.f32 %v1245_v14, %v1243_v12  ;;  %v324_v14 = vadd.f32 %v323_v40, %v1263_v10  ;;  %v1285_v29 = vld [vmem:[#allocation2 + $0x220] sm:$0xff] }
  0x58   :  { %2345 = vst [vmem:[#allocation26_spill] sm:$0xff] %v1248_v19  ;;  %v1276_v12 = vld [vmem:[#allocation2 + $0x1b8] sm:$0xff] }
  0x59   :  { %2351 = vst [vmem:[#allocation32_spill] sm:$0xff] %v1276_v12  ;;  %v333_v3 = vadd.f32 %v332_v11, %v1265_v54  ;;  %v1295_v54 = vld [vmem:[#allocation2 + $0x240] sm:$0xff] }
  0x5a   :  { %300 = vadd.xlane.f32.xlu0 %v299_v48  ;;  %v1259_v48 = vld [vmem:[#allocation2 + $0x1e0] sm:$0xff] }
  0x5b   :  { %305 = vadd.xlane.f32.xlu1 %v304_v56  ;;  %2347 = vst [vmem:[#allocation28_spill] sm:$0xff] %v1259_v48  ;;  %v319_v56 = vadd.f32 %v318_v26, %v1248_v19  ;;  %v337_v2 = vadd.f32 %v1261_v52, %v1259_v48  ;;  %v1283_v26 = vld [vmem:[#allocation2 + $0x1d8] sm:$0xff]  ;;  %v1287_v52 = vld [vmem:[#allocation2 + $0x228] sm:$0xff]  ;;  %v1291_v48 = vld [vmem:[#allocation2 + $0x210] sm:$0xff] }
  0x5c   :  { %2353 = vst [vmem:[#allocation34_spill] sm:$0xff] %v1283_v26  ;;  %v347_v11 = vadd.f32 %v1287_v52, %v1285_v29  ;;  %v334_v10 = vadd.f32 %v333_v3, %v1283_v26  ;;  %v1300_v19 = vld [vmem:[#allocation2 + $0x1f8] sm:$0xff]  ;;  %v1315_v26 = vld [vmem:[#allocation2 + $0x250] sm:$0xff] }
  0x5d   :  { %v338_v40 = vadd.f32 %v337_v2, %v1279_v53  ;;  %2354 = vst [vmem:[#allocation35_spill] sm:$0xff] %v1300_v19  ;;  %v1305_v2 = vld [vmem:[#allocation2 + $0x218] sm:$0xff]  ;;  %v1307_v53 = vld [vmem:[#allocation2 + $0x230] sm:$0xff] }
  0x5e   :  { %310 = vadd.xlane.f32.xlu0 %v309_v16  ;;  %v342_v16 = vadd.f32 %v1273_v4, %v1271_v6  ;;  %v348_v3 = vadd.f32 %v347_v11, %v1307_v53  ;;  %v1329_v11 = vld [vmem:[#allocation2 + $0x258] sm:$0xff] }
  0x5f   :  { %315 = vadd.xlane.f32.xlu1 %v314_v42  ;;  %v329_v42 = vadd.f32 %v328_v62, %v1276_v12  ;;  %v352_v62 = vadd.f32 %v1297_v39, %v1295_v54  ;;  %v1309_v12 = vld [vmem:[#allocation2 + $0x260] sm:$0xff] }
  0x60   :  { %2355 = vst [vmem:[#allocation36_spill] sm:$0xff] %v1309_v12 }
  0x61   :  { %v353_v9 = vadd.f32 %v352_v62, %v1315_v26  ;;  %v1499_v62 = vld [vmem:[#allocation2 + $0x290] sm:$0xff] }
  0x62   :  { %320 = vadd.xlane.f32.xlu0 %v319_v56  ;;  %v343_v56 = vadd.f32 %v342_v16, %v1291_v48  ;;  %v357_v16 = vadd.f32 %v1311_v0, %v1309_v12  ;;  %v1333_v0 = vld [vmem:[#allocation2 + $0x2a0] sm:$0xff]  ;;  %v1335_v12 = vld [vmem:[#allocation2 + $0x2a8] sm:$0xff]  ;;  %2362 = vst [vmem:[#allocation43_spill] sm:$0xff] %v1499_v62 }
  0x63   :  { %325 = vadd.xlane.f32.xlu1 %v324_v14  ;;  %v339_v14 = vadd.f32 %v338_v40, %v1300_v19  ;;  %v1327_v40 = vld [vmem:[#allocation2 + $0x238] sm:$0xff]  ;;  %v1331_v19 = vld [vmem:[#allocation2 + $0x270] sm:$0xff]  ;;  %2360 = vst [vmem:[#allocation41_spill] sm:$0xff] %v1333_v0  ;;  %2361 = vst [vmem:[#allocation42_spill] sm:$0xff] %v1335_v12  ;;  %v354_v50 = vadd.f32 %v353_v9, %v1329_v11 }
  0x64   :  { %v344_v15 = vadd.f32 %v343_v56, %v1305_v2  ;;  %2359 = vst [vmem:[#allocation40_spill] sm:$0xff] %v1331_v19  ;;  %v358_v56 = vadd.f32 %v357_v16, %v1331_v19  ;;  %v1513_v16 = vld [vmem:[#allocation2 + $0x298] sm:$0xff]  ;;  %v1517_v19 = vld [vmem:[#allocation2 + $0x2e0] sm:$0xff] }
  0x65   :  { %2366 = vst [vmem:[#allocation47_spill] sm:$0xff] %v1513_v16  ;;  %2368 = vst [vmem:[#allocation49_spill] sm:$0xff] %v1517_v19 }
  0x66   :  { %330 = vadd.xlane.f32.xlu0 %v329_v42  ;;  %v362_v42 = vadd.f32 %v1321_v35, %v1319_v37  ;;  %v367_v35 = vadd.f32 %v1335_v12, %v1333_v0  ;;  %v1503_v37 = vld [vmem:[#allocation2 + $0x2c0] sm:$0xff]  ;;  %v1519_v12 = vld [vmem:[#allocation2 + $0x2e8] sm:$0xff]  ;;  %v1523_v0 = vld [vmem:[#allocation2 + $0x2d0] sm:$0xff] }
  0x67   :  { %335 = vadd.xlane.f32.xlu1 %v334_v10  ;;  %v349_v10 = vadd.f32 %v348_v3, %v1327_v40  ;;  %2363 = vst [vmem:[#allocation44_spill] sm:$0xff] %v1503_v37  ;;  %v1511_v3 = vld [vmem:[#allocation2 + $0x278] sm:$0xff]  ;;  %2369 = vst [vmem:[#allocation50_spill] sm:$0xff] %v1519_v12 }
  0x68   :  { %v363_v27 = vadd.f32 %v362_v42, %v1499_v62  ;;  %2365 = vst [vmem:[#allocation46_spill] sm:$0xff] %v1511_v3  ;;  %v368_v9 = vadd.f32 %v367_v35, %v1515_v61  ;;  %2370 = vst [vmem:[#allocation51_spill] sm:$0xff] %v1523_v0  ;;  %v377_v42 = vadd.f32 %v1519_v12, %v1517_v19  ;;  %v1537_v35 = vld [vmem:[#allocation2 + $0x2d8] sm:$0xff]  ;;  %v1539_v61 = vld [vmem:[#allocation2 + $0x2f0] sm:$0xff] }
  0x69   :  { %2374 = vst [vmem:[#allocation55_spill] sm:$0xff] %v1537_v35  ;;  %2375 = vst [vmem:[#allocation56_spill] sm:$0xff] %v1539_v61  ;;  %v1543_v12 = vld [vmem:[#allocation2 + $0x328] sm:$0xff]  ;;  %v1547_v19 = vld [vmem:[#allocation2 + $0x310] sm:$0xff] }
  0x6a   :  { %340 = vadd.xlane.f32.xlu0 %v339_v14  ;;  %v372_v14 = vadd.f32 %v1505_v60, %v1503_v37  ;;  %v1527_v60 = vld [vmem:[#allocation2 + $0x300] sm:$0xff]  ;;  %v1529_v37 = vld [vmem:[#allocation2 + $0x308] sm:$0xff]  ;;  %v364_v62 = vadd.f32 %v363_v27, %v1513_v16  ;;  %2377 = vst [vmem:[#allocation58_spill] sm:$0xff] %v1543_v12  ;;  %v378_v27 = vadd.f32 %v377_v42, %v1539_v61  ;;  %2378 = vst [vmem:[#allocation59_spill] sm:$0xff] %v1547_v19 }
  0x6b   :  { %345 = vadd.xlane.f32.xlu1 %v344_v15  ;;  %v359_v15 = vadd.f32 %v358_v56, %v1511_v3  ;;  %2371 = vst [vmem:[#allocation52_spill] sm:$0xff] %v1527_v60  ;;  %2372 = vst [vmem:[#allocation53_spill] sm:$0xff] %v1529_v37  ;;  %v1535_v56 = vld [vmem:[#allocation2 + $0x2b8] sm:$0xff]  ;;  %v1541_v3 = vld [vmem:[#allocation2 + $0x320] sm:$0xff] }
  0x6c   :  { %v373_v8 = vadd.f32 %v372_v14, %v1523_v0  ;;  %2373 = vst [vmem:[#allocation54_spill] sm:$0xff] %v1535_v56  ;;  %2376 = vst [vmem:[#allocation57_spill] sm:$0xff] %v1541_v3  ;;  %v387_v14 = vadd.f32 %v1543_v12, %v1541_v3  ;;  %v1561_v42 = vld [vmem:[#allocation2 + $0x318] sm:$0xff]  ;;  %v1563_v61 = vld [vmem:[#allocation2 + $0x330] sm:$0xff] }
  0x6d   :  { %2382 = vst [vmem:[#allocation63_spill] sm:$0xff] %v1561_v42  ;;  %2383 = vst [vmem:[#allocation64_spill] sm:$0xff] %v1563_v61  ;;  %v1567_v12 = vld [vmem:[#allocation2 + $0x368] sm:$0xff]  ;;  %v1571_v3 = vld [vmem:[#allocation2 + $0x350] sm:$0xff] }
  0x6e   :  { %350 = vadd.xlane.f32.xlu0 %v349_v10  ;;  %v382_v10 = vadd.f32 %v1529_v37, %v1527_v60  ;;  %v1551_v37 = vld [vmem:[#allocation2 + $0x340] sm:$0xff]  ;;  %v1553_v60 = vld [vmem:[#allocation2 + $0x348] sm:$0xff]  ;;  %v374_v0 = vadd.f32 %v373_v8, %v1537_v35  ;;  %2385 = vst [vmem:[#allocation66_spill] sm:$0xff] %v1567_v12  ;;  %v388_v8 = vadd.f32 %v387_v14, %v1563_v61  ;;  %2386 = vst [vmem:[#allocation67_spill] sm:$0xff] %v1571_v3 }
  0x6f   :  { %355 = vadd.xlane.f32.xlu1 %v354_v50  ;;  %v369_v50 = vadd.f32 %v368_v9, %v1535_v56  ;;  %2379 = vst [vmem:[#allocation60_spill] sm:$0xff] %v1551_v37  ;;  %2380 = vst [vmem:[#allocation61_spill] sm:$0xff] %v1553_v60  ;;  %v1559_v9 = vld [vmem:[#allocation2 + $0x2f8] sm:$0xff]  ;;  %v1565_v56 = vld [vmem:[#allocation2 + $0x360] sm:$0xff] }
  0x70   :  { %v383_v16 = vadd.f32 %v382_v10, %v1547_v19  ;;  %2381 = vst [vmem:[#allocation62_spill] sm:$0xff] %v1559_v9  ;;  %2384 = vst [vmem:[#allocation65_spill] sm:$0xff] %v1565_v56  ;;  %v397_v10 = vadd.f32 %v1567_v12, %v1565_v56  ;;  %v1585_v14 = vld [vmem:[#allocation2 + $0x358] sm:$0xff]  ;;  %v1587_v61 = vld [vmem:[#allocation2 + $0x370] sm:$0xff] }
  0x71   :  { %2390 = vst [vmem:[#allocation71_spill] sm:$0xff] %v1585_v14  ;;  %2391 = vst [vmem:[#allocation72_spill] sm:$0xff] %v1587_v61  ;;  %v1591_v12 = vld [vmem:[#allocation2 + $0x3a8] sm:$0xff]  ;;  %v1595_v56 = vld [vmem:[#allocation2 + $0x390] sm:$0xff] }
  0x72   :  { %360 = vadd.xlane.f32.xlu0 %v359_v15  ;;  %v392_v15 = vadd.f32 %v1553_v60, %v1551_v37  ;;  %v1575_v60 = vld [vmem:[#allocation2 + $0x380] sm:$0xff]  ;;  %v1577_v37 = vld [vmem:[#allocation2 + $0x388] sm:$0xff]  ;;  %v384_v19 = vadd.f32 %v383_v16, %v1561_v42  ;;  %2393 = vst [vmem:[#allocation74_spill] sm:$0xff] %v1591_v12  ;;  %v398_v16 = vadd.f32 %v397_v10, %v1587_v61  ;;  %2394 = vst [vmem:[#allocation75_spill] sm:$0xff] %v1595_v56 }
  0x73   :  { %365 = vadd.xlane.f32.xlu1 %v364_v62  ;;  %v379_v62 = vadd.f32 %v378_v27, %v1559_v9  ;;  %2387 = vst [vmem:[#allocation68_spill] sm:$0xff] %v1575_v60  ;;  %2388 = vst [vmem:[#allocation69_spill] sm:$0xff] %v1577_v37  ;;  %v1583_v27 = vld [vmem:[#allocation2 + $0x338] sm:$0xff]  ;;  %v1589_v9 = vld [vmem:[#allocation2 + $0x3a0] sm:$0xff] }
  0x74   :  { %v393_v35 = vadd.f32 %v392_v15, %v1571_v3  ;;  %2389 = vst [vmem:[#allocation70_spill] sm:$0xff] %v1583_v27  ;;  %2392 = vst [vmem:[#allocation73_spill] sm:$0xff] %v1589_v9  ;;  %v407_v15 = vadd.f32 %v1591_v12, %v1589_v9  ;;  %v1609_v10 = vld [vmem:[#allocation2 + $0x3b0] sm:$0xff]  ;;  %v1611_v61 = vld [vmem:[#allocation2 + $0x3e0] sm:$0xff] }
  0x75   :  { %2397 = vst [vmem:[#allocation78_spill] sm:$0xff] %v1609_v10  ;;  %2398 = vst [vmem:[#allocation79_spill] sm:$0xff] %v1611_v61  ;;  %v1616_v9 = vld [vmem:[#allocation2 + $0x398] sm:$0xff] }
  0x76   :  { %370 = vadd.xlane.f32.xlu0 %v369_v50  ;;  %v402_v50 = vadd.f32 %v1577_v37, %v1575_v60  ;;  %v1599_v37 = vld [vmem:[#allocation2 + $0x3c0] sm:$0xff]  ;;  %v1601_v60 = vld [vmem:[#allocation2 + $0x3c8] sm:$0xff]  ;;  %v394_v3 = vadd.f32 %v393_v35, %v1585_v14  ;;  %v1619_v35 = vld [vmem:[#allocation2 + $0x3d0] sm:$0xff] }
  0x77   :  { %375 = vadd.xlane.f32.xlu1 %v374_v0  ;;  %v389_v0 = vadd.f32 %v388_v8, %v1583_v27  ;;  %2395 = vst [vmem:[#allocation76_spill] sm:$0xff] %v1599_v37  ;;  %2396 = vst [vmem:[#allocation77_spill] sm:$0xff] %v1601_v60  ;;  %v1607_v8 = vld [vmem:[#allocation2 + $0x378] sm:$0xff]  ;;  %v1613_v27 = vld [vmem:[#allocation2 + $0x3e8] sm:$0xff] }
  0x78   :  { %v403_v42 = vadd.f32 %v402_v50, %v1595_v56  ;;  %2399 = vst [vmem:[#allocation80_spill] sm:$0xff] %v1613_v27  ;;  %v399_v12 = vadd.f32 %v398_v16, %v1607_v8  ;;  %2400 = vst [vmem:[#allocation81_spill] sm:$0xff] %v1619_v35  ;;  %v417_v50 = vadd.f32 %v1613_v27, %v1611_v61  ;;  %v1625_v56 = vld [vmem:[#allocation2 + $0x3b8] sm:$0xff]  ;;  %v1627_v14 = vld [vmem:[#allocation2 + $0x3f0] sm:$0xff]  ;;  %v1016_v27 = vmov 1966171168  }
  0x79   :  { %2401 = vst [vmem:[#allocation82_spill] sm:$0xff] %v1625_v56  ;;  %2402 = vst [vmem:[#allocation83_spill] sm:$0xff] %v1627_v14  ;;  %v1630_v16 = vld [vmem:[#allocation2 + $0x3d8] sm:$0xff]  ;;  %v876_v61 = vlaneseq }
  0x7a   :  { %380 = vadd.xlane.f32.xlu0 %v379_v62  ;;  %v412_v62 = vadd.f32 %v1601_v60, %v1599_v37  ;;  %v404_v60 = vadd.f32 %v403_v42, %v1616_v9  ;;  %v1634_v42 = vld [vmem:[#allocation2 + $0x3f8] sm:$0xff] }
  0x7b   :  { %385 = vadd.xlane.f32.xlu1 %v384_v19  ;;  %v408_v19 = vadd.f32 %v407_v15, %v1609_v10  ;;  %v418_v15 = vadd.f32 %v417_v50, %v1627_v14  ;;  %vm1968_vm1 = vcmp.lt.s32.totalorder %v876_v61, 512 }
  0x7c   :  { %v413_v37 = vadd.f32 %v412_v62, %v1619_v35 }
  0x7d   :  { %v419_v62 = vadd.f32 %v418_v15, %v1634_v42 }
  0x7e   :  { %390 = vadd.xlane.f32.xlu0 %v389_v0  ;;  %v409_v0 = vadd.f32 %v408_v19, %v1625_v56  ;;  %v414_v10 = vadd.f32 %v413_v37, %v1630_v16 }
  0x7f   :  { %395 = vadd.xlane.f32.xlu1 %v394_v3  ;;  %v874_v3 = vunpack.c.l.s4 %v1016_v27 }
  0x81   :  { %v875_v35 = vunpack.c.0.s8 %v874_v3 }
  0x82   :  { %400 = vadd.xlane.f32.xlu0 %v399_v12  ;;  %v877_v12 = vshrl.u32 %v876_v61, 7 }
  0x83   :  { %405 = vadd.xlane.f32.xlu1 %v404_v60 }
  0x84   :  { %v1641_v27 = vsub.s32 %v875_v35, %v877_v12 }
  0x86   :  { %410 = vadd.xlane.f32.xlu0 %v409_v0 }
  0x87   :  { %415 = vadd.xlane.f32.xlu1 %v414_v10 }
  0x8a   :  { %v500_v19 = vpop.permute.xlu1 %499  ;;  %v490_v56 = vpop.permute.xlu0 %489  ;;  %420 = vadd.xlane.f32.xlu0 %v419_v62 }
  0x8b   :  { %v575_v50 = vmul.f32 %v500_v19, %v1101_v21  ;;  %v576_v60 = vmul.f32 %v500_v19, %v1103_v22  ;;  %v577_v37 = vmul.f32 %v500_v19, %v1114_v28  ;;  %v578_v14 = vmul.f32 %v500_v19, %v1129_v36 }
  0x8c   :  { %v567_v0 = vmul.f32 %v490_v56, %v1093_v17  ;;  %v568_v10 = vmul.f32 %v490_v56, %v1095_v18  ;;  %v569_v15 = vmul.f32 %v490_v56, %v1099_v20  ;;  %v570_v3 = vmul.f32 %v490_v56, %v1109_v25 }
  0x8d   :  { %v1649_v62 = vmul.f32 %v490_v56, %v1271_v6  ;;  %v1652_v21 = vmul.f32 %v490_v56, %v1273_v4  ;;  %v1655_v22 = vmul.f32 %v490_v56, %v1291_v48  ;;  %v1660_v17 = vmul.f32 %v490_v56, %v1305_v2 }
  0x8e   :  { %v1657_v28 = vpop.permute.xlu1 %504  ;;  %v495_v36 = vpop.permute.xlu0 %494  ;;  %v1663_v18 = vmul.f32 %v500_v19, %v1295_v54  ;;  %v1666_v20 = vmul.f32 %v500_v19, %v1297_v39  ;;  %v1669_v25 = vmul.f32 %v500_v19, %v1315_v26  ;;  %v1678_v2 = vmul.f32 %v500_v19, %v1329_v11 }
  0x8f   :  { %v579_v4 = vmul.f32 %v1657_v28, %v1118_v30  ;;  %v580_v6 = vmul.f32 %v1657_v28, %v1120_v31  ;;  %v581_v48 = vmul.f32 %v1657_v28, %v1137_v41  ;;  %v571_v54 = vmul.f32 %v495_v36, %v1105_v23 }
  0x90   :  { %v572_v39 = vmul.f32 %v495_v36, %v1107_v24  ;;  %v573_v56 = vmul.f32 %v495_v36, %v1122_v32  ;;  %v574_v26 = vmul.f32 %v495_v36, %v1132_v38  ;;  %v582_v30 = vmul.f32 %v1657_v28, %v1152_v49 }
  0x91   :  { %v1687_v35 = vmul.f32 %v495_v36, %v1285_v29  ;;  %v1690_v31 = vmul.f32 %v495_v36, %v1287_v52  ;;  %v1693_v41 = vmul.f32 %v495_v36, %v1307_v53  ;;  %v695_v11 = vadd.f32 %v571_v54, %v567_v0 }
  0x92   :  { %v716_v23 = vadd.f32 %v572_v39, %v568_v10  ;;  %v737_v12 = vadd.f32 %v573_v56, %v569_v15  ;;  %v758_v24 = vadd.f32 %v574_v26, %v570_v3  ;;  %v1695_v19 = vpop.permute.xlu1 %514  ;;  %v1697_v32 = vpop.permute.xlu0 %509  ;;  %v1706_v53 = vmul.f32 %v495_v36, %v1327_v40 }
  0x93   :  { %v587_v38 = vmul.f32 %v1695_v19, %v1141_v43  ;;  %v588_v49 = vmul.f32 %v1695_v19, %v1143_v44  ;;  %v589_v52 = vmul.f32 %v1695_v19, %v1161_v55  ;;  %v696_v29 = vadd.f32 %v695_v11, %v575_v50 }
  0x94   :  { %v717_v0 = vadd.f32 %v716_v23, %v576_v60  ;;  %v738_v10 = vadd.f32 %v737_v12, %v577_v37  ;;  %v759_v15 = vadd.f32 %v758_v24, %v578_v14  ;;  %v583_v3 = vmul.f32 %v1697_v32, %v1124_v33  ;;  %v2403_v12 = vld [vmem:[#allocation7_spill] sm:$0xff]  ;;  %v2404_v24 = vld [vmem:[#allocation12_spill] sm:$0xff] }
  0x95   :  { %v584_v54 = vmul.f32 %v1697_v32, %v1126_v34  ;;  %v585_v43 = vmul.f32 %v1697_v32, %v1145_v45  ;;  %v586_v44 = vmul.f32 %v1697_v32, %v1155_v51  ;;  %v697_v55 = vadd.f32 %v696_v29, %v579_v4 }
  0x96   :  { %v718_v39 = vadd.f32 %v717_v0, %v580_v6  ;;  %v739_v40 = vadd.f32 %v738_v10, %v581_v48  ;;  %v760_v36 = vadd.f32 %v759_v15, %v582_v30  ;;  %v1716_v50 = vpop.permute.xlu1 %524  ;;  %v1718_v60 = vpop.permute.xlu0 %519  ;;  %v590_v33 = vmul.f32 %v1695_v19, %v1176_v63  ;;  %v2405_v0 = vld [vmem:[#allocation18_spill] sm:$0xff]  ;;  %v2406_v15 = vld [vmem:[#allocation5_spill] sm:$0xff] }
  0x97   :  { %v595_v34 = vmul.f32 %v1716_v50, %v1165_v57  ;;  %v596_v45 = vmul.f32 %v1716_v50, %v1167_v58  ;;  %v597_v51 = vmul.f32 %v1716_v50, %v1185_v5  ;;  %v698_v14 = vadd.f32 %v697_v55, %v583_v3  ;;  %v2407_v3 = vld [vmem:[#allocation6_spill] sm:$0xff] }
  0x98   :  { %v719_v37 = vadd.f32 %v718_v39, %v584_v54  ;;  %v740_v4 = vadd.f32 %v739_v40, %v585_v43  ;;  %v761_v6 = vadd.f32 %v760_v36, %v586_v44  ;;  %v591_v48 = vmul.f32 %v1718_v60, %v1147_v46  ;;  %v2408_v54 = vld [vmem:[#allocation8_spill] sm:$0xff] }
  0x99   :  { %v592_v56 = vmul.f32 %v1718_v60, %v1149_v47  ;;  %v593_v63 = vmul.f32 %v1718_v60, %v1169_v59  ;;  %v594_v57 = vmul.f32 %v1718_v60, %v1179_v1  ;;  %v699_v58 = vadd.f32 %v698_v14, %v587_v38  ;;  %v2409_v14 = vld [vmem:[#allocation11_spill] sm:$0xff] }
  0x9a   :  { %v720_v26 = vadd.f32 %v719_v37, %v588_v49  ;;  %v741_v30 = vadd.f32 %v740_v4, %v589_v52  ;;  %v762_v5 = vadd.f32 %v761_v6, %v590_v33  ;;  %v1736_v11 = vpop.permute.xlu1 %534  ;;  %v1738_v23 = vpop.permute.xlu0 %529  ;;  %v598_v46 = vmul.f32 %v1716_v50, %v1200_v13  ;;  %v2410_v4 = vld [vmem:[#allocation13_spill] sm:$0xff] }
  0x9b   :  { %v603_v47 = vmul.f32 %v1736_v11, %v1189_v7  ;;  %v604_v59 = vmul.f32 %v1736_v11, %v2403_v12  ;;  %v605_v1 = vmul.f32 %v1736_v11, %v2404_v24  ;;  %v700_v38 = vadd.f32 %v699_v58, %v591_v48  ;;  %v2411_v48 = vld [vmem:[#allocation14_spill] sm:$0xff] }
  0x9c   :  { %v721_v49 = vadd.f32 %v720_v26, %v592_v56  ;;  %v742_v52 = vadd.f32 %v741_v30, %v593_v63  ;;  %v763_v29 = vadd.f32 %v762_v5, %v594_v57  ;;  %v1750_v10 = vmul.f32 %v1736_v11, %v2405_v0  ;;  %v2412_v63 = vld [vmem:[#allocation20_spill] sm:$0xff]  ;;  %v2413_v58 = vld [vmem:[#allocation26_spill] sm:$0xff]  ;;  %v2414_v5 = vld [vmem:[#allocation9_spill] sm:$0xff] }
  0x9d   :  { %v599_v13 = vmul.f32 %v1738_v23, %v2406_v15  ;;  %v600_v7 = vmul.f32 %v1738_v23, %v2407_v3  ;;  %v601_v43 = vmul.f32 %v1738_v23, %v2408_v54  ;;  %v701_v44 = vadd.f32 %v700_v38, %v595_v34  ;;  %v2415_v12 = vld [vmem:[#allocation10_spill] sm:$0xff]  ;;  %v2416_v38 = vld [vmem:[#allocation15_spill] sm:$0xff] }
  0x9e   :  { %v722_v55 = vadd.f32 %v721_v49, %v596_v45  ;;  %v743_v39 = vadd.f32 %v742_v52, %v597_v51  ;;  %v764_v40 = vadd.f32 %v763_v29, %v598_v46  ;;  %v1758_v36 = vpop.permute.xlu1 %544  ;;  %v1760_v33 = vpop.permute.xlu0 %539  ;;  %v602_v37 = vmul.f32 %v1738_v23, %v2409_v14 }
  0x9f   :  { %v1766_v6 = vmul.f32 %v1758_v36, %v2410_v4  ;;  %v1770_v56 = vmul.f32 %v1758_v36, %v2411_v48  ;;  %v1774_v34 = vmul.f32 %v1758_v36, %v2412_v63  ;;  %v702_v45 = vadd.f32 %v701_v44, %v599_v13 }
  0xa0   :  { %v723_v51 = vadd.f32 %v722_v55, %v600_v7  ;;  %v744_v57 = vadd.f32 %v743_v39, %v601_v43  ;;  %v1778_v26 = vmul.f32 %v1758_v36, %v2413_v58  ;;  %v1780_v30 = vadd.f32 %v764_v40, %v602_v37  ;;  %v2417_v7 = vld [vmem:[#allocation19_spill] sm:$0xff]  ;;  %v2418_v43 = vld [vmem:[#allocation21_spill] sm:$0xff]  ;;  %v2419_v55 = vld [vmem:[#allocation22_spill] sm:$0xff] }
  0xa1   :  { %v607_v46 = vmul.f32 %v1760_v33, %v2414_v5  ;;  %v608_v24 = vmul.f32 %v1760_v33, %v2415_v12  ;;  %v609_v49 = vmul.f32 %v1760_v33, %v2416_v38  ;;  %v703_v52 = vadd.f32 %v702_v45, %v603_v47  ;;  %v2422_v45 = vld [vmem:[#allocation23_spill] sm:$0xff]  ;;  %v2424_v5 = vld [vmem:[#allocation37_spill] sm:$0xff]  ;;  %v2425_v12 = vld [vmem:[#allocation40_spill] sm:$0xff] }
  0xa2   :  { %v724_v29 = vadd.f32 %v723_v51, %v604_v59  ;;  %v745_v0 = vadd.f32 %v744_v57, %v605_v1  ;;  %v1788_v15 = vpop.permute.xlu1 %554  ;;  %v1790_v13 = vpop.permute.xlu0 %549  ;;  %v779_v3 = vadd.f32 %v1687_v35, %v1649_v62  ;;  %v1796_v54 = vmul.f32 %v1760_v33, %v2417_v7  ;;  %v2420_v59 = vld [vmem:[#allocation16_spill] sm:$0xff]  ;;  %v2421_v35 = vld [vmem:[#allocation17_spill] sm:$0xff] }
  0xa3   :  { %v1800_v44 = vmul.f32 %v1788_v15, %v2418_v43  ;;  %v1804_v47 = vmul.f32 %v1788_v15, %v2419_v55  ;;  %v1808_v1 = vmul.f32 %v1790_v13, %v2420_v59  ;;  %v1810_v39 = vadd.f32 %v703_v52, %v607_v46  ;;  %v2423_v57 = vld [vmem:[#allocation36_spill] sm:$0xff]  ;;  %v2430_v43 = vld [vmem:[#allocation47_spill] sm:$0xff]  ;;  %v2431_v55 = vld [vmem:[#allocation41_spill] sm:$0xff] }
  0xa4   :  { %v1812_v40 = vadd.f32 %v724_v29, %v608_v24  ;;  %v1814_v62 = vadd.f32 %v745_v0, %v609_v49  ;;  %v1818_v14 = vmul.f32 %v1790_v13, %v2421_v35  ;;  %v800_v37 = vadd.f32 %v1690_v31, %v1652_v21  ;;  %v2427_v24 = vld [vmem:[#allocation38_spill] sm:$0xff]  ;;  %v2428_v49 = vld [vmem:[#allocation39_spill] sm:$0xff] }
  0xa5   :  { %v821_v4 = vadd.f32 %v1693_v41, %v1655_v22  ;;  %v842_v48 = vadd.f32 %v1706_v53, %v1660_v17  ;;  %v780_v63 = vadd.f32 %v779_v3, %v1663_v18  ;;  %v1829_v51 = vmul.f32 %v1790_v13, %v2422_v45  ;;  %v2426_v18 = vld [vmem:[#allocation46_spill] sm:$0xff]  ;;  %v2429_v29 = vld [vmem:[#allocation43_spill] sm:$0xff] }
  0xa6   :  { %v643_v58 = vmul.f32 %v1657_v28, %v2423_v57  ;;  %v644_v46 = vmul.f32 %v1657_v28, %v2424_v5  ;;  %v645_v21 = vmul.f32 %v1657_v28, %v2425_v12  ;;  %v801_v22 = vadd.f32 %v800_v37, %v1666_v20  ;;  %v2432_v59 = vld [vmem:[#allocation42_spill] sm:$0xff]  ;;  %v2433_v37 = vld [vmem:[#allocation48_spill] sm:$0xff]  ;;  %v2436_v12 = vld [vmem:[#allocation45_spill] sm:$0xff] }
  0xa7   :  { %v822_v31 = vadd.f32 %v821_v4, %v1669_v25  ;;  %v843_v17 = vadd.f32 %v842_v48, %v1678_v2  ;;  %v646_v41 = vmul.f32 %v1657_v28, %v2426_v18  ;;  %v647_v38 = vmul.f32 %v1697_v32, %v2427_v24  ;;  %v2434_v57 = vld [vmem:[#allocation54_spill] sm:$0xff] }
  0xa8   :  { %v781_v53 = vadd.f32 %v780_v63, %v643_v58  ;;  %v648_v52 = vmul.f32 %v1697_v32, %v2428_v49  ;;  %v649_v0 = vmul.f32 %v1697_v32, %v2429_v29  ;;  %v802_v3 = vadd.f32 %v801_v22, %v644_v46  ;;  %v2435_v46 = vld [vmem:[#allocation44_spill] sm:$0xff]  ;;  %v2437_v22 = vld [vmem:[#allocation51_spill] sm:$0xff]  ;;  %v2439_v49 = vld [vmem:[#allocation49_spill] sm:$0xff] }
  0xa9   :  { %v823_v7 = vadd.f32 %v822_v31, %v645_v21  ;;  %v844_v20 = vadd.f32 %v843_v17, %v646_v41  ;;  %v650_v25 = vmul.f32 %v1697_v32, %v2430_v43  ;;  %v651_v28 = vmul.f32 %v1695_v19, %v2431_v55 }
  0xaa   :  { %v782_v2 = vadd.f32 %v781_v53, %v647_v38  ;;  %v652_v35 = vmul.f32 %v1695_v19, %v2432_v59  ;;  %v653_v4 = vmul.f32 %v1695_v19, %v2433_v37  ;;  %v803_v48 = vadd.f32 %v802_v3, %v648_v52  ;;  %v2438_v53 = vld [vmem:[#allocation55_spill] sm:$0xff]  ;;  %v2440_v52 = vld [vmem:[#allocation50_spill] sm:$0xff]  ;;  %v2444_v59 = vld [vmem:[#allocation53_spill] sm:$0xff] }
  0xab   :  { %v824_v63 = vadd.f32 %v823_v7, %v649_v0  ;;  %v845_v45 = vadd.f32 %v844_v20, %v650_v25  ;;  %v654_v58 = vmul.f32 %v1695_v19, %v2434_v57  ;;  %v655_v32 = vmul.f32 %v1718_v60, %v2435_v46  ;;  %v2441_v0 = vld [vmem:[#allocation56_spill] sm:$0xff]  ;;  %v2442_v25 = vld [vmem:[#allocation62_spill] sm:$0xff]  ;;  %v2445_v37 = vld [vmem:[#allocation59_spill] sm:$0xff] }
  0xac   :  { %v783_v5 = vadd.f32 %v782_v2, %v651_v28  ;;  %v656_v21 = vmul.f32 %v1718_v60, %v2436_v12  ;;  %v657_v31 = vmul.f32 %v1718_v60, %v2437_v22  ;;  %v804_v17 = vadd.f32 %v803_v48, %v652_v35  ;;  %v2443_v28 = vld [vmem:[#allocation52_spill] sm:$0xff]  ;;  %v2446_v57 = vld [vmem:[#allocation63_spill] sm:$0xff]  ;;  %v2447_v46 = vld [vmem:[#allocation57_spill] sm:$0xff] }
  0xad   :  { %v825_v18 = vadd.f32 %v824_v63, %v653_v4  ;;  %v846_v41 = vadd.f32 %v845_v45, %v654_v58  ;;  %v658_v24 = vmul.f32 %v1718_v60, %v2438_v53  ;;  %v659_v19 = vmul.f32 %v1716_v50, %v2439_v49  ;;  %v2452_v49 = vld [vmem:[#allocation61_spill] sm:$0xff] }
  0xae   :  { %v784_v38 = vadd.f32 %v783_v5, %v655_v32  ;;  %v660_v29 = vmul.f32 %v1716_v50, %v2440_v52  ;;  %v661_v3 = vmul.f32 %v1716_v50, %v2441_v0  ;;  %v805_v7 = vadd.f32 %v804_v17, %v656_v21  ;;  %v2448_v32 = vld [vmem:[#allocation58_spill] sm:$0xff]  ;;  %v2449_v21 = vld [vmem:[#allocation64_spill] sm:$0xff]  ;;  %v2453_v52 = vld [vmem:[#allocation67_spill] sm:$0xff] }
  0xaf   :  { %v826_v20 = vadd.f32 %v825_v18, %v657_v31  ;;  %v847_v43 = vadd.f32 %v846_v41, %v658_v24  ;;  %v662_v2 = vmul.f32 %v1716_v50, %v2442_v25  ;;  %v663_v60 = vmul.f32 %v1738_v23, %v2443_v28  ;;  %v2450_v41 = vld [vmem:[#allocation70_spill] sm:$0xff] }
  0xb0   :  { %v785_v55 = vadd.f32 %v784_v38, %v659_v19  ;;  %v664_v35 = vmul.f32 %v1738_v23, %v2444_v59  ;;  %v665_v4 = vmul.f32 %v1738_v23, %v2445_v37  ;;  %v806_v48 = vadd.f32 %v805_v7, %v660_v29  ;;  %v2451_v38 = vld [vmem:[#allocation60_spill] sm:$0xff] }
  0xb1   :  { %v827_v63 = vadd.f32 %v826_v20, %v661_v3  ;;  %v848_v45 = vadd.f32 %v847_v43, %v662_v2  ;;  %v666_v58 = vmul.f32 %v1738_v23, %v2446_v57  ;;  %v667_v50 = vmul.f32 %v1736_v11, %v2447_v46  ;;  %v2454_v20 = vld [vmem:[#allocation71_spill] sm:$0xff]  ;;  %v2455_v2 = vld [vmem:[#allocation65_spill] sm:$0xff] }
  0xb2   :  { %v786_v5 = vadd.f32 %v785_v55, %v663_v60  ;;  %v668_v12 = vmul.f32 %v1736_v11, %v2448_v32  ;;  %v669_v22 = vmul.f32 %v1736_v11, %v2449_v21  ;;  %v807_v31 = vadd.f32 %v806_v48, %v664_v35  ;;  %v2456_v55 = vld [vmem:[#allocation66_spill] sm:$0xff]  ;;  %v2457_v60 = vld [vmem:[#allocation72_spill] sm:$0xff]  ;;  %v2459_v57 = vld [vmem:[#allocation69_spill] sm:$0xff] }
  0xb3   :  { %v828_v17 = vadd.f32 %v827_v63, %v665_v4  ;;  %v849_v18 = vadd.f32 %v848_v45, %v666_v58  ;;  %v670_v53 = vmul.f32 %v1736_v11, %v2450_v41  ;;  %v671_v23 = vmul.f32 %v1760_v33, %v2451_v38  ;;  %v2458_v45 = vld [vmem:[#allocation68_spill] sm:$0xff]  ;;  %v2463_v41 = vld [vmem:[#allocation78_spill] sm:$0xff] }
  0xb4   :  { %v787_v24 = vadd.f32 %v786_v5, %v667_v50  ;;  %v672_v19 = vmul.f32 %v1760_v33, %v2452_v49  ;;  %v673_v29 = vmul.f32 %v1760_v33, %v2453_v52  ;;  %v808_v0 = vadd.f32 %v807_v31, %v668_v12  ;;  %v2460_v5 = vld [vmem:[#allocation75_spill] sm:$0xff]  ;;  %v560_v50 = vpop.permute.xlu0 %559 }
  0xb5   :  { %v829_v3 = vadd.f32 %v828_v17, %v669_v22  ;;  %v850_v7 = vadd.f32 %v849_v18, %v670_v53  ;;  %v674_v43 = vmul.f32 %v1760_v33, %v2454_v20  ;;  %v675_v11 = vmul.f32 %v1758_v36, %v2455_v2  ;;  %v2461_v17 = vld [vmem:[#allocation73_spill] sm:$0xff] }
  0xb6   :  { %v788_v25 = vadd.f32 %v787_v24, %v671_v23  ;;  %v676_v28 = vmul.f32 %v1758_v36, %v2456_v55  ;;  %v677_v59 = vmul.f32 %v1758_v36, %v2457_v60  ;;  %v809_v35 = vadd.f32 %v808_v0, %v672_v19  ;;  %v1920_v24 = vpop.permute.xlu1 %564  ;;  %v2464_v19 = vld [vmem:[#allocation82_spill] sm:$0xff]  ;;  %v2467_v20 = vld [vmem:[#allocation81_spill] sm:$0xff]  ;;  %v2468_v60 = vld [vmem:[#allocation79_spill] sm:$0xff] }
  0xb7   :  { %v830_v37 = vadd.f32 %v829_v3, %v673_v29  ;;  %v851_v4 = vadd.f32 %v850_v7, %v674_v43  ;;  %v678_v48 = vmul.f32 %v1758_v36, %v1607_v8  ;;  %v679_v33 = vmul.f32 %v1790_v13, %v2458_v45  ;;  %v2462_v36 = vld [vmem:[#allocation74_spill] sm:$0xff]  ;;  %v2466_v3 = vld [vmem:[#allocation77_spill] sm:$0xff] }
  0xb8   :  { %v789_v63 = vadd.f32 %v788_v25, %v675_v11  ;;  %v680_v58 = vmul.f32 %v1790_v13, %v2459_v57  ;;  %v681_v46 = vmul.f32 %v1790_v13, %v2460_v5  ;;  %v810_v32 = vadd.f32 %v809_v35, %v676_v28  ;;  %v2469_v35 = vld [vmem:[#allocation80_spill] sm:$0xff]  ;;  %v2471_v5 = vld [vmem:[#allocation30_spill] sm:$0xff] }
  0xb9   :  { %v831_v12 = vadd.f32 %v830_v37, %v677_v59  ;;  %v852_v21 = vadd.f32 %v851_v4, %v678_v48  ;;  %v682_v22 = vmul.f32 %v1790_v13, %v1616_v9  ;;  %v683_v8 = vmul.f32 %v1788_v15, %v2461_v17  ;;  %v2465_v9 = vld [vmem:[#allocation76_spill] sm:$0xff]  ;;  %v2470_v4 = vld [vmem:[#allocation83_spill] sm:$0xff] }
  0xba   :  { %v790_v31 = vadd.f32 %v789_v63, %v679_v33  ;;  %v684_v18 = vmul.f32 %v1788_v15, %v2462_v36  ;;  %v685_v53 = vmul.f32 %v1788_v15, %v2463_v41  ;;  %v811_v38 = vadd.f32 %v810_v32, %v680_v58  ;;  %v2475_v41 = vld [vmem:[#allocation25_spill] sm:$0xff] }
  0xbb   :  { %v832_v23 = vadd.f32 %v831_v12, %v681_v46  ;;  %v853_v49 = vadd.f32 %v852_v21, %v682_v22  ;;  %v686_v52 = vmul.f32 %v1788_v15, %v2464_v19  ;;  %v687_v0 = vmul.f32 %v560_v50, %v2465_v9  ;;  %v2472_v46 = vld [vmem:[#allocation27_spill] sm:$0xff]  ;;  %v2473_v12 = vld [vmem:[#allocation32_spill] sm:$0xff] }
  0xbc   :  { %v791_v29 = vadd.f32 %v790_v31, %v683_v8  ;;  %v688_v7 = vmul.f32 %v560_v50, %v2466_v3  ;;  %v689_v43 = vmul.f32 %v560_v50, %v2467_v20  ;;  %v812_v25 = vadd.f32 %v811_v38, %v684_v18  ;;  %v2474_v8 = vld [vmem:[#allocation24_spill] sm:$0xff]  ;;  %v2476_v38 = vld [vmem:[#allocation31_spill] sm:$0xff] }
  0xbd   :  { %v833_v2 = vadd.f32 %v832_v23, %v685_v53  ;;  %v854_v11 = vadd.f32 %v853_v49, %v686_v52  ;;  %v690_v55 = vmul.f32 %v560_v50, %v1630_v16  ;;  %v691_v59 = vmul.f32 %v1920_v24, %v2468_v60  ;;  %v2477_v23 = vld [vmem:[#allocation34_spill] sm:$0xff] }
  0xbe   :  { %v792_v28 = vadd.f32 %v791_v29, %v687_v0  ;;  %v692_v37 = vmul.f32 %v1920_v24, %v2469_v35  ;;  %v693_v48 = vmul.f32 %v1920_v24, %v2470_v4  ;;  %v813_v63 = vadd.f32 %v812_v25, %v688_v7  ;;  %v2478_v29 = vld [vmem:[#allocation28_spill] sm:$0xff]  ;;  %v2480_v7 = vld [vmem:[#allocation33_spill] sm:$0xff] }
  0xbf   :  { %v834_v45 = vadd.f32 %v833_v2, %v689_v43  ;;  %v855_v33 = vadd.f32 %v854_v11, %v690_v55  ;;  %v694_v57 = vmul.f32 %v1920_v24, %v1634_v42  ;;  %v618_v16 = vmul.f32 %v1790_v13, %v2471_v5 }
  0xc0   :  { %v793_v58 = vadd.f32 %v792_v28, %v691_v59  ;;  %v621_v32 = vmul.f32 %v1788_v15, %v2472_v46  ;;  %v622_v21 = vmul.f32 %v1788_v15, %v2473_v12  ;;  %v814_v22 = vadd.f32 %v813_v63, %v692_v37  ;;  %v2479_v15 = vld [vmem:[#allocation29_spill] sm:$0xff] }
  0xc1   :  { %v835_v31 = vadd.f32 %v834_v45, %v693_v48  ;;  %v856_v17 = vadd.f32 %v855_v33, %v694_v57  ;;  %v623_v36 = vmul.f32 %v560_v50, %v2474_v8  ;;  %v624_v53 = vmul.f32 %v560_v50, %v2475_v41 }
  0xc2   :  { %v794_v18 = vrot.slane %v793_v58, 4  ;;  %v625_v42 = vmul.f32 %v560_v50, %v2476_v38  ;;  %v626_v49 = vmul.f32 %v560_v50, %v2477_v23  ;;  %v815_v19 = vrot.slane %v814_v22, 4 }
  0xc3   :  { %v836_v13 = vrot.slane %v835_v31, 4  ;;  %v857_v52 = vrot.slane %v856_v17, 4  ;;  %v627_v9 = vmul.f32 %v1920_v24, %v2478_v29  ;;  %v628_v3 = vmul.f32 %v1920_v24, %v2479_v15 }
  0xc4   :  { %v795_v0 = vadd.f32 %v794_v18, %v793_v58  ;;  %v629_v20 = vmul.f32 %v1920_v24, %v2480_v7  ;;  %v705_v43 = vadd.f32 %v1810_v39, %v1766_v6  ;;  %v816_v25 = vadd.f32 %v815_v19, %v814_v22  ;;  %v230_v7 = vld [vmem:[%s2240_s2] sm:$0xff] }
  0xc5   :  { %v837_v2 = vadd.f32 %v836_v13, %v835_v31  ;;  %v858_v11 = vadd.f32 %v857_v52, %v856_v17  ;;  %v726_v50 = vadd.f32 %v1812_v40, %v1770_v56  ;;  %v747_v28 = vadd.f32 %v1814_v62, %v1774_v34 }
  0xc6   :  { %v706_v55 = vadd.f32 %v705_v43, %v1808_v1  ;;  %v766_v60 = vadd.f32 %v1780_v30, %v1750_v10  ;;  %v796_v59 = vrot.slane %v795_v0, 2  ;;  %v817_v37 = vrot.slane %v816_v25, 2 }
  0xc7   :  { %v727_v35 = vadd.f32 %v726_v50, %v1818_v14  ;;  %v838_v4 = vrot.slane %v837_v2, 2  ;;  %v859_v6 = vrot.slane %v858_v11, 2  ;;  %v748_v48 = vadd.f32 %v747_v28, %v1829_v51 }
  0xc8   :  { %v707_v39 = vadd.f32 %v706_v55, %v1800_v44  ;;  %v767_v56 = vadd.f32 %v766_v60, %v1796_v54  ;;  %v797_v40 = vadd.f32 %v796_v59, %v795_v0  ;;  %v818_v63 = vadd.f32 %v817_v37, %v816_v25  ;;  %v242_v54 = vld [vmem:[%s2240_s2 + $0x60] sm:$0xff] }
  0xc9   :  { %v728_v1 = vadd.f32 %v727_v35, %v1804_v47  ;;  %v839_v34 = vadd.f32 %v838_v4, %v837_v2  ;;  %v860_v62 = vadd.f32 %v859_v6, %v858_v11  ;;  %v749_v10 = vadd.f32 %v748_v48, %v621_v32  ;;  %v232_v35 = vld [vmem:[%s2240_s2 + $0x10] sm:$0xff]  ;;  %v231_v48 = vld [vmem:[%s2240_s2 + $0x8] sm:$0xff] }
  0xca   :  { %v708_v45 = vadd.f32 %v707_v39, %v623_v36  ;;  %v768_v30 = vadd.f32 %v767_v56, %v1778_v26  ;;  %v798_v14 = vrot.slane %v797_v40, 1  ;;  %v819_v57 = vrot.slane %v818_v63, 1 }
  0xcb   :  { %v729_v33 = vadd.f32 %v728_v1, %v624_v53  ;;  %v840_v58 = vrot.slane %v839_v34, 1  ;;  %v861_v5 = vrot.slane %v860_v62, 1  ;;  %v750_v46 = vadd.f32 %v749_v10, %v625_v42  ;;  %v2483_v42 = vld [vmem:[#allocation35_spill] sm:$0xff] }
  0xcc   :  { %v709_v44 = vadd.f32 %v708_v45, %v627_v9  ;;  %v769_v51 = vadd.f32 %v768_v30, %v618_v16  ;;  %v799_v47 = vadd.f32 %v798_v14, %v797_v40  ;;  %v820_v22 = vadd.f32 %v819_v57, %v818_v63  ;;  %v233_v14 = vld [vmem:[%s2240_s2 + $0x18] sm:$0xff] }
  0xcd   :  { %v730_v12 = vadd.f32 %v729_v33, %v628_v3  ;;  %v841_v31 = vadd.f32 %v840_v58, %v839_v34  ;;  %v862_v32 = vadd.f32 %v861_v5, %v860_v62  ;;  %v751_v26 = vadd.f32 %v750_v46, %v629_v20  ;;  %v234_v5 = vld [vmem:[%s2240_s2 + $0x20] sm:$0xff] }
  0xce   :  { %v710_v17 = vrot.slane %v709_v44, 4  ;;  %v770_v8 = vadd.f32 %v769_v51, %v622_v21  ;;  %v933_v36 = vmul.f32 %v799_v47, %v799_v47  ;;  %v895_v41 = vcombine.low %v799_v47, %v820_v22 }
  0xcf   :  { %v731_v18 = vrot.slane %v730_v12, 4  ;;  %v896_v53 = vcombine.low %v841_v31, %v862_v32  ;;  %v934_v38 = vmul.f32 %v820_v22, %v820_v22  ;;  %v630_v16 = vmul.f32 %v1920_v24, %v2483_v42 }
  0xd0   :  { %v711_v61 = vadd.f32 %v710_v17, %v709_v44  ;;  %v752_v23 = vrot.slane %v751_v26, 4  ;;  %v771_v19 = vadd.f32 %v770_v8, %v626_v49  ;;  %v903_v52 = vrot.slane %v895_v41, %v1641_v27 }
  0xd1   :  { %v732_v13 = vadd.f32 %v731_v18, %v730_v12  ;;  %v910_v29 = vrot.slane %v896_v53, %v1641_v27  ;;  %v935_v9 = vmul.f32 %v841_v31, %v841_v31  ;;  %v942_v3 = vadd.f32 %v934_v38, %v933_v36  ;;  %v236_v36 = vld [vmem:[%s2240_s2 + $0x30] sm:$0xff] }
  0xd2   :  { %v712_v0 = vrot.slane %v711_v61, 2  ;;  %v753_v15 = vadd.f32 %v752_v23, %v751_v26  ;;  %v772_v21 = vadd.f32 %v771_v19, %v630_v16  ;;  %v936_v24 = vmul.f32 %v862_v32, %v862_v32  ;;  %v235_v26 = vld [vmem:[%s2240_s2 + $0x28] sm:$0xff]  ;;  %v237_v19 = vld [vmem:[%s2240_s2 + $0x38] sm:$0xff] }
  0xd3   :  { %v733_v20 = vrot.slane %v732_v13, 2  ;;  %v911_v43 = vcombine.low %v903_v52, %v910_v29  ;;  %v266_v25 = vpop.xlane.xlu0 %265  ;;  %v943_v50 = vadd.f32 %v942_v3, %v935_v9  ;;  %v2484_v55 = vmov 0.0   ;;  %v238_v29 = vld [vmem:[%s2240_s2 + $0x40] sm:$0xff] }
  0xd4   :  { %v713_v49 = vadd.f32 %v712_v0, %v711_v61  ;;  %v754_v2 = vrot.slane %v753_v15, 2  ;;  %v773_v11 = vrot.slane %v772_v21, 4  ;;  %84 = vst.msk [vmem:[%s2241_s3] sm:$0x1] %vm83_vm2, %v2484_v55  ;;  %85 = vst.msk [vmem:[%s2241_s3 + $0x1] sm:$0x1] %vm83_vm2, %v2484_v55  ;;  %v422_v59 = vadd.f32 %v266_v25, %v230_v7 }
  0xd5   :  { %v734_v28 = vadd.f32 %v733_v20, %v732_v13  ;;  %v918_v60 = vrot.slane %v911_v43, %v1641_v27  ;;  %v944_v39 = vadd.f32 %v943_v50, %v936_v24  ;;  %v239_v7 = vld [vmem:[%s2240_s2 + $0x48] sm:$0xff]  ;;  %v240_v43 = vld [vmem:[%s2240_s2 + $0x50] sm:$0xff] }
  0xd6   :  { %v714_v37 = vrot.slane %v713_v49, 1  ;;  %v755_v4 = vadd.f32 %v754_v2, %v753_v15  ;;  %v774_v6 = vadd.f32 %v773_v11, %v772_v21  ;;  %455 = vst.msk [vmem:[%s2240_s2] sm:$0xff] %vm50_vm0, %v422_v59  ;;  %v241_v2 = vld [vmem:[%s2240_s2 + $0x58] sm:$0xff]  ;;  %v244_v59 = vld [vmem:[%s2240_s2 + $0x70] sm:$0xff] }
  0xd7   :  { %v735_v56 = vrot.slane %v734_v28, 1  ;;  %926 = vst.msk [vmem:[%s2242_s4 + $0x4] sm:$0xf] %vm1968_vm1, %v918_v60  ;;  %v276_v40 = vpop.xlane.xlu0 %275  ;;  %945 = vadd.xlane.f32.xlu0 %v944_v39  ;;  %v243_v60 = vld [vmem:[%s2240_s2 + $0x68] sm:$0xff]  ;;  %v245_v39 = vld [vmem:[%s2240_s2 + $0x78] sm:$0xff] }
  0xd8   :  { %v715_v1 = vadd.f32 %v714_v37, %v713_v49  ;;  %v756_v63 = vrot.slane %v755_v4, 1  ;;  %v775_v34 = vrot.slane %v774_v6, 2  ;;  %v424_v62 = vadd.f32 %v276_v40, %v232_v35  ;;  %v271_v45 = vpop.xlane.xlu1 %270 }
  0xd9   :  { %v736_v10 = vadd.f32 %v735_v56, %v734_v28  ;;  %v423_v30 = vadd.f32 %v271_v45, %v231_v48  ;;  %v246_v48 = vld [vmem:[%s2240_s2 + $0x80] sm:$0xff] }
  0xda   :  { %v757_v33 = vadd.f32 %v756_v63, %v755_v4  ;;  %v776_v57 = vadd.f32 %v775_v34, %v774_v6  ;;  %v929_v58 = vmul.f32 %v715_v1, %v715_v1  ;;  %457 = vst.msk [vmem:[%s2240_s2 + $0x10] sm:$0xff] %vm50_vm0, %v424_v62  ;;  %v247_v34 = vld [vmem:[%s2240_s2 + $0x88] sm:$0xff]  ;;  %v248_v62 = vld [vmem:[%s2240_s2 + $0x90] sm:$0xff] }
  0xdb   :  { %v930_v44 = vmul.f32 %v736_v10, %v736_v10  ;;  %456 = vst.msk [vmem:[%s2240_s2 + $0x8] sm:$0xff] %vm50_vm0, %v423_v30  ;;  %v281_v46 = vpop.xlane.xlu0 %280  ;;  %v871_v47 = vcombine.low %v715_v1, %v736_v10 }
  0xdc   :  { %v777_v51 = vrot.slane %v776_v57, 1  ;;  %v425_v12 = vadd.f32 %v281_v46, %v233_v14  ;;  %v286_v22 = vpop.xlane.xlu1 %285  ;;  %v931_v31 = vmul.f32 %v757_v33, %v757_v33 }
  0xdd   :  { %v937_v32 = vadd.f32 %v930_v44, %v929_v58  ;;  %v426_v17 = vadd.f32 %v286_v22, %v234_v5  ;;  %v879_v42 = vrot.slane %v871_v47, %v1641_v27  ;;  %v252_v47 = vld [vmem:[%s2240_s2 + $0xb0] sm:$0xff] }
  0xde   :  { %v778_v8 = vadd.f32 %v777_v51, %v776_v57  ;;  %458 = vst.msk [vmem:[%s2240_s2 + $0x18] sm:$0xff] %vm50_vm0, %v425_v12  ;;  %v250_v57 = vld [vmem:[%s2240_s2 + $0xa0] sm:$0xff]  ;;  %v251_v51 = vld [vmem:[%s2240_s2 + $0xa8] sm:$0xff] }
  0xdf   :  { %v938_v18 = vadd.f32 %v937_v32, %v931_v31  ;;  %459 = vst.msk [vmem:[%s2240_s2 + $0x20] sm:$0xff] %vm50_vm0, %v426_v17  ;;  %v291_v41 = vpop.xlane.xlu0 %290  ;;  %v253_v17 = vld [vmem:[%s2240_s2 + $0xb8] sm:$0xff] }
  0xe0   :  { %v872_v53 = vcombine.low %v757_v33, %v778_v8  ;;  %v932_v38 = vmul.f32 %v778_v8, %v778_v8  ;;  %v427_v16 = vadd.f32 %v291_v41, %v235_v26  ;;  %v296_v61 = vpop.xlane.xlu1 %295  ;;  %v249_v33 = vld [vmem:[%s2240_s2 + $0x98] sm:$0xff]  ;;  %v254_v26 = vld [vmem:[%s2240_s2 + $0xc0] sm:$0xff] }
  0xe1   :  { %v428_v23 = vadd.f32 %v296_v61, %v236_v36 }
  0xe2   :  { %v886_v13 = vrot.slane %v872_v53, %v1641_v27  ;;  %v939_v52 = vadd.f32 %v938_v18, %v932_v38  ;;  %460 = vst.msk [vmem:[%s2240_s2 + $0x28] sm:$0xff] %vm50_vm0, %v427_v16  ;;  %v255_v53 = vld [vmem:[%s2240_s2 + $0xc8] sm:$0xff]  ;;  %v256_v38 = vld [vmem:[%s2240_s2 + $0xd0] sm:$0xff] }
  0xe3   :  { %461 = vst.msk [vmem:[%s2240_s2 + $0x30] sm:$0xff] %vm50_vm0, %v428_v23  ;;  %v301_v9 = vpop.xlane.xlu0 %300 }
  0xe4   :  { %940 = vadd.xlane.f32.xlu1 %v939_v52  ;;  %v887_v0 = vcombine.low %v879_v42, %v886_v13  ;;  %v429_v15 = vadd.f32 %v301_v9, %v237_v19  ;;  %v306_v21 = vpop.xlane.xlu1 %305  ;;  %v257_v19 = vld [vmem:[%s2240_s2 + $0xd8] sm:$0xff]  ;;  %v258_v13 = vld [vmem:[%s2240_s2 + $0xe0] sm:$0xff] }
  0xe5   :  { %v430_v3 = vadd.f32 %v306_v21, %v238_v29  ;;  %v260_v21 = vld [vmem:[%s2240_s2 + $0xf0] sm:$0xff] }
  0xe6   :  { %v894_v20 = vrot.slane %v887_v0, %v1641_v27  ;;  %462 = vst.msk [vmem:[%s2240_s2 + $0x38] sm:$0xff] %vm50_vm0, %v429_v15  ;;  %v259_v15 = vld [vmem:[%s2240_s2 + $0xe8] sm:$0xff] }
  0xe7   :  { %463 = vst.msk [vmem:[%s2240_s2 + $0x40] sm:$0xff] %vm50_vm0, %v430_v3  ;;  %v311_v24 = vpop.xlane.xlu0 %310 }
  0xe8   :  { %925 = vst.msk [vmem:[%s2242_s4] sm:$0xf] %vm1968_vm1, %v894_v20  ;;  %v431_v27 = vadd.f32 %v311_v24, %v239_v7  ;;  %v316_v25 = vpop.xlane.xlu1 %315  ;;  %v261_v24 = vld [vmem:[%s2240_s2 + $0xf8] sm:$0xff] }
  0xe9   :  { %v432_v49 = vadd.f32 %v316_v25, %v240_v43 }
  0xea   :  { %464 = vst.msk [vmem:[%s2240_s2 + $0x48] sm:$0xff] %vm50_vm0, %v431_v27 }
  0xeb   :  { %465 = vst.msk [vmem:[%s2240_s2 + $0x50] sm:$0xff] %vm50_vm0, %v432_v49  ;;  %v321_v11 = vpop.xlane.xlu0 %320  ;;  %v928_v49 = vld [vmem:[%s2241_s3 + $0x1] sm:$0x1] }
  0xec   :  { %v433_v50 = vadd.f32 %v321_v11, %v241_v2  ;;  %v326_v55 = vpop.xlane.xlu1 %325  ;;  %v927_v11 = vld [vmem:[%s2241_s3] sm:$0x1] }
  0xed   :  { %v434_v28 = vadd.f32 %v326_v55, %v242_v54 }
  0xee   :  { %466 = vst.msk [vmem:[%s2240_s2 + $0x58] sm:$0xff] %vm50_vm0, %v433_v50 }
  0xef   :  { %467 = vst.msk [vmem:[%s2240_s2 + $0x60] sm:$0xff] %vm50_vm0, %v434_v28  ;;  %v331_v35 = vpop.xlane.xlu0 %330 }
  0xf0   :  { %v435_v37 = vadd.f32 %v331_v35, %v243_v60  ;;  %v336_v4 = vpop.xlane.xlu1 %335 }
  0xf1   :  { %v436_v6 = vadd.f32 %v336_v4, %v244_v59 }
  0xf2   :  { %468 = vst.msk [vmem:[%s2240_s2 + $0x68] sm:$0xff] %vm50_vm0, %v435_v37 }
  0xf3   :  { %469 = vst.msk [vmem:[%s2240_s2 + $0x70] sm:$0xff] %vm50_vm0, %v436_v6  ;;  %v341_v56 = vpop.xlane.xlu0 %340 }
  0xf4   :  { %v437_v40 = vadd.f32 %v341_v56, %v245_v39  ;;  %v346_v1 = vpop.xlane.xlu1 %345 }
  0xf5   :  { %v438_v63 = vadd.f32 %v346_v1, %v246_v48 }
  0xf6   :  { %470 = vst.msk [vmem:[%s2240_s2 + $0x78] sm:$0xff] %vm50_vm0, %v437_v40 }
  0xf7   :  { %471 = vst.msk [vmem:[%s2240_s2 + $0x80] sm:$0xff] %vm50_vm0, %v438_v63  ;;  %v351_v45 = vpop.xlane.xlu0 %350 }
  0xf8   :  { %v439_v10 = vadd.f32 %v351_v45, %v247_v34  ;;  %v356_v30 = vpop.xlane.xlu1 %355 }
  0xf9   :  { %v440_v14 = vadd.f32 %v356_v30, %v248_v62 }
  0xfa   :  { %472 = vst.msk [vmem:[%s2240_s2 + $0x88] sm:$0xff] %vm50_vm0, %v439_v10 }
  0xfb   :  { %473 = vst.msk [vmem:[%s2240_s2 + $0x90] sm:$0xff] %vm50_vm0, %v440_v14  ;;  %v361_v58 = vpop.xlane.xlu0 %360 }
  0xfc   :  { %v441_v5 = vadd.f32 %v361_v58, %v249_v33  ;;  %v366_v44 = vpop.xlane.xlu1 %365 }
  0xfd   :  { %v442_v46 = vadd.f32 %v366_v44, %v250_v57 }
  0xfe   :  { %474 = vst.msk [vmem:[%s2240_s2 + $0x98] sm:$0xff] %vm50_vm0, %v441_v5 }
  0xff   :  { %475 = vst.msk [vmem:[%s2240_s2 + $0xa0] sm:$0xff] %vm50_vm0, %v442_v46  ;;  %v371_v12 = vpop.xlane.xlu0 %370 }
 0x100   :  { %v443_v22 = vadd.f32 %v371_v12, %v251_v51  ;;  %v376_v31 = vpop.xlane.xlu1 %375 }
 0x101   :  { %v444_v32 = vadd.f32 %v376_v31, %v252_v47 }
 0x102   :  { %476 = vst.msk [vmem:[%s2240_s2 + $0xa8] sm:$0xff] %vm50_vm0, %v443_v22 }
 0x103   :  { %477 = vst.msk [vmem:[%s2240_s2 + $0xb0] sm:$0xff] %vm50_vm0, %v444_v32  ;;  %v381_v8 = vpop.xlane.xlu0 %380 }
 0x104   :  { %v445_v36 = vadd.f32 %v381_v8, %v253_v17  ;;  %v386_v18 = vpop.xlane.xlu1 %385 }
 0x105   :  { %v446_v41 = vadd.f32 %v386_v18, %v254_v26 }
 0x106   :  { %478 = vst.msk [vmem:[%s2240_s2 + $0xb8] sm:$0xff] %vm50_vm0, %v445_v36 }
 0x107   :  { %479 = vst.msk [vmem:[%s2240_s2 + $0xc0] sm:$0xff] %vm50_vm0, %v446_v41  ;;  %v391_v42 = vpop.xlane.xlu0 %390 }
 0x108   :  { %v447_v16 = vadd.f32 %v391_v42, %v255_v53  ;;  %v396_v61 = vpop.xlane.xlu1 %395 }
 0x109   :  { %v448_v23 = vadd.f32 %v396_v61, %v256_v38 }
 0x10a   :  { %480 = vst.msk [vmem:[%s2240_s2 + $0xc8] sm:$0xff] %vm50_vm0, %v447_v16 }
 0x10b   :  { %481 = vst.msk [vmem:[%s2240_s2 + $0xd0] sm:$0xff] %vm50_vm0, %v448_v23  ;;  %v401_v52 = vpop.xlane.xlu0 %400 }
 0x10c   :  { %v449_v29 = vadd.f32 %v401_v52, %v257_v19  ;;  %v406_v9 = vpop.xlane.xlu1 %405 }
 0x10d   :  { %v450_v0 = vadd.f32 %v406_v9, %v258_v13 }
 0x10e   :  { %482 = vst.msk [vmem:[%s2240_s2 + $0xd8] sm:$0xff] %vm50_vm0, %v449_v29 }
 0x10f   :  { %483 = vst.msk [vmem:[%s2240_s2 + $0xe0] sm:$0xff] %vm50_vm0, %v450_v0  ;;  %v411_v3 = vpop.xlane.xlu0 %410 }
 0x110   :  { %v451_v7 = vadd.f32 %v411_v3, %v259_v15  ;;  %v416_v20 = vpop.xlane.xlu1 %415 }
 0x111   :  { %v452_v43 = vadd.f32 %v416_v20, %v260_v21 }
 0x112   :  { %484 = vst.msk [vmem:[%s2240_s2 + $0xe8] sm:$0xff] %vm50_vm0, %v451_v7 }
 0x113   :  { %485 = vst.msk [vmem:[%s2240_s2 + $0xf0] sm:$0xff] %vm50_vm0, %v452_v43  ;;  %v421_v27 = vpop.xlane.xlu0 %420 }
 0x114   :  { %v453_v25 = vadd.f32 %v421_v27, %v261_v24 }
 0x116   :  { %486 = vst.msk [vmem:[%s2240_s2 + $0xf8] sm:$0xff] %vm50_vm0, %v453_v25 }
 0x160   :  { %v946_v2 = vpop.xlane.xlu0 %945 }
 0x161   :  { %v948_v54 = vadd.f32 %v946_v2, %v928_v49 }
 0x163   :  { %951 = vst.msk [vmem:[%s2241_s3 + $0x1] sm:$0x1] %vm83_vm2, %v948_v54 }
 0x16d   :  { %v941_v50 = vpop.xlane.xlu1 %940 }
 0x16e   :  { %v947_v55 = vadd.f32 %v941_v50, %v927_v11 }
 0x170   :  { %950 = vst.msk [vmem:[%s2241_s3] sm:$0x1] %vm83_vm2, %v947_v55 }
 0x171   :  { %976 = vsyncpa [#allocation3], 1 }

// kernel: ramod4.3
= control target key start
LH: loop header
LB: loop body
LE: loop exit
PB: predicated region body
PF: predicated region fallthrough
CT: control target
= control target key end

     0   :  { %v2698_v2 = vmov 0   ;;  %s4574_s0 = inlined_call_operand.vmem [shape: f32[2,128,512], index: 0, kind: input, shape index: {}]   ;;  %s4575_s1 = inlined_call_operand.vmem [shape: f32[2,1,512], index: 1, kind: input, shape index: {}]   ;;  %s4576_s2 = inlined_call_operand.vmem [shape: f32[2,128,1], index: 2, kind: input, shape index: {}]   ;;  %s4577_s3 = inlined_call_operand.vmem [shape: f32[128,1], index: 3, kind: input, shape index: {}]   ;;  %s4578_s4 = inlined_call_operand.hbm [shape: f32[2,128,512], index: 4, kind: output, shape index: {}]  }
   0x1   :  { %v148_v0 = vld [vmem:[%s4576_s2 + $0x10] sm:$0xff]  ;;  %v146_v1 = vld [vmem:[%s4576_s2] sm:$0xff]  ;;  %2163 = vset.pattern.permute.xlu1 %v2698_v2  ;;  %2162 = vset.pattern.permute.xlu0 %v2698_v2  ;;  %v149_v3 = vld [vmem:[%s4576_s2 + $0x18] sm:$0xff] }
   0x2   :  { %192 = vperm.xlu1 %2163, %v148_v0   ;;  %182 = vperm.xlu0 %2162, %v146_v1   ;;  %v147_v4 = vld [vmem:[%s4576_s2 + $0x8] sm:$0xff]  ;;  %v150_v6 = vld [vmem:[%s4576_s2 + $0x20] sm:$0xff]  ;;  %v153_v7 = vld [vmem:[%s4576_s2 + $0x38] sm:$0xff] }
   0x3   :  { %v151_v5 = vld [vmem:[%s4576_s2 + $0x28] sm:$0xff]  ;;  %v152_v8 = vld [vmem:[%s4576_s2 + $0x30] sm:$0xff]  ;;  %v154_v10 = vld [vmem:[%s4576_s2 + $0x40] sm:$0xff] }
   0x4   :  { %v155_v9 = vld [vmem:[%s4576_s2 + $0x48] sm:$0xff] }
   0x6   :  { %197 = vperm.xlu1 %2163, %v149_v3   ;;  %187 = vperm.xlu0 %2162, %v147_v4  }
   0xa   :  { %207 = vperm.xlu1 %2163, %v151_v5   ;;  %202 = vperm.xlu0 %2162, %v150_v6  }
   0xe   :  { %217 = vperm.xlu1 %2163, %v153_v7   ;;  %212 = vperm.xlu0 %2162, %v152_v8  }
   0xf   :  { %9 = vsyncpa [#allocation3], 0  ;;  %v157_v11 = vld [vmem:[%s4576_s2 + $0x58] sm:$0xff]  ;;  %v156_v12 = vld [vmem:[%s4576_s2 + $0x50] sm:$0xff]  ;;  %v342_v49 = vlaneseq }
  0x10   :  { %v159_v13 = vld [vmem:[%s4576_s2 + $0x68] sm:$0xff]  ;;  %v158_v14 = vld [vmem:[%s4576_s2 + $0x60] sm:$0xff]  ;;  %v161_v15 = vld [vmem:[%s4576_s2 + $0x78] sm:$0xff] }
  0x11   :  { %v160_v16 = vld [vmem:[%s4576_s2 + $0x70] sm:$0xff]  ;;  %v163_v17 = vld [vmem:[%s4576_s2 + $0x88] sm:$0xff]  ;;  %v162_v18 = vld [vmem:[%s4576_s2 + $0x80] sm:$0xff]  ;;  %v2871_v50 = vshrl.u32 %v342_v49, 7 }
  0x12   :  { %227 = vperm.xlu1 %2163, %v155_v9   ;;  %222 = vperm.xlu0 %2162, %v154_v10   ;;  %v165_v19 = vld [vmem:[%s4576_s2 + $0x98] sm:$0xff]  ;;  %v164_v20 = vld [vmem:[%s4576_s2 + $0x90] sm:$0xff]  ;;  %v167_v21 = vld [vmem:[%s4576_s2 + $0xa8] sm:$0xff] }
  0x13   :  { %v166_v22 = vld [vmem:[%s4576_s2 + $0xa0] sm:$0xff]  ;;  %v169_v23 = vld [vmem:[%s4576_s2 + $0xb8] sm:$0xff]  ;;  %v168_v24 = vld [vmem:[%s4576_s2 + $0xb0] sm:$0xff]  ;;  %v344_v53 = vsub.s32 0, %v2871_v50  ;;  %v4581_v54 = vsub.s32 1, %v2871_v50  ;;  %v4580_v55 = vsub.s32 2, %v2871_v50 }
  0x14   :  { %v171_v25 = vld [vmem:[%s4576_s2 + $0xc8] sm:$0xff]  ;;  %v170_v26 = vld [vmem:[%s4576_s2 + $0xc0] sm:$0xff]  ;;  %v173_v27 = vld [vmem:[%s4576_s2 + $0xd8] sm:$0xff]  ;;  %v4579_v56 = vsub.s32 3, %v2871_v50 }
  0x15   :  { %v172_v28 = vld [vmem:[%s4576_s2 + $0xd0] sm:$0xff]  ;;  %v175_v29 = vld [vmem:[%s4576_s2 + $0xe8] sm:$0xff]  ;;  %v174_v30 = vld [vmem:[%s4576_s2 + $0xe0] sm:$0xff] }
  0x16   :  { %237 = vperm.xlu1 %2163, %v157_v11   ;;  %232 = vperm.xlu0 %2162, %v156_v12   ;;  %v177_v31 = vld [vmem:[%s4576_s2 + $0xf8] sm:$0xff]  ;;  %v176_v32 = vld [vmem:[%s4576_s2 + $0xf0] sm:$0xff]  ;;  %v511_v33 = vld [vmem:[%s4577_s3 + $0x8] sm:$0xff] }
  0x17   :  { %v510_v34 = vld [vmem:[%s4577_s3] sm:$0xff]  ;;  %v513_v35 = vld [vmem:[%s4577_s3 + $0x18] sm:$0xff]  ;;  %v512_v36 = vld [vmem:[%s4577_s3 + $0x10] sm:$0xff] }
  0x18   :  { %v515_v37 = vld [vmem:[%s4577_s3 + $0x28] sm:$0xff]  ;;  %v514_v38 = vld [vmem:[%s4577_s3 + $0x20] sm:$0xff]  ;;  %v517_v39 = vld [vmem:[%s4577_s3 + $0x38] sm:$0xff] }
  0x19   :  { %v516_v40 = vld [vmem:[%s4577_s3 + $0x30] sm:$0xff]  ;;  %v519_v41 = vld [vmem:[%s4577_s3 + $0x48] sm:$0xff]  ;;  %v518_v42 = vld [vmem:[%s4577_s3 + $0x40] sm:$0xff] }
  0x1a   :  { %247 = vperm.xlu1 %2163, %v159_v13   ;;  %242 = vperm.xlu0 %2162, %v158_v14   ;;  %v521_v43 = vld [vmem:[%s4577_s3 + $0x58] sm:$0xff]  ;;  %v520_v44 = vld [vmem:[%s4577_s3 + $0x50] sm:$0xff]  ;;  %v523_v45 = vld [vmem:[%s4577_s3 + $0x68] sm:$0xff] }
  0x1b   :  { %v522_v46 = vld [vmem:[%s4577_s3 + $0x60] sm:$0xff]  ;;  %v525_v47 = vld [vmem:[%s4577_s3 + $0x78] sm:$0xff]  ;;  %v524_v48 = vld [vmem:[%s4577_s3 + $0x70] sm:$0xff] }
  0x1c   :  { %v178_v57 = vld [vmem:[%s4575_s1] sm:$0xf] }
  0x1d   :  { %v2890_v60 = vrot.slane %v178_v57, %v344_v53  ;;  %v2894_v61 = vrot.slane %v178_v57, %v4581_v54  ;;  %v2898_v62 = vrot.slane %v178_v57, %v4580_v55  ;;  %v2902_v63 = vrot.slane %v178_v57, %v4579_v56 }
  0x1e   :  { %257 = vperm.xlu1 %2163, %v161_v15   ;;  %252 = vperm.xlu0 %2162, %v160_v16  }
  0x22   :  { %267 = vperm.xlu1 %2163, %v163_v17   ;;  %262 = vperm.xlu0 %2162, %v162_v18  }
  0x26   :  { %277 = vperm.xlu1 %2163, %v165_v19   ;;  %272 = vperm.xlu0 %2162, %v164_v20  }
  0x2a   :  { %287 = vperm.xlu1 %2163, %v167_v21   ;;  %282 = vperm.xlu0 %2162, %v166_v22  }
  0x2e   :  { %297 = vperm.xlu1 %2163, %v169_v23   ;;  %292 = vperm.xlu0 %2162, %v168_v24  }
  0x32   :  { %307 = vperm.xlu1 %2163, %v171_v25   ;;  %302 = vperm.xlu0 %2162, %v170_v26  }
  0x36   :  { %317 = vperm.xlu1 %2163, %v173_v27   ;;  %312 = vperm.xlu0 %2162, %v172_v28  }
  0x3a   :  { %327 = vperm.xlu1 %2163, %v175_v29   ;;  %322 = vperm.xlu0 %2162, %v174_v30  }
  0x3e   :  { %337 = vperm.xlu1 %2163, %v177_v31   ;;  %332 = vperm.xlu0 %2162, %v176_v32  }
  0x42   :  { %533 = vperm.xlu1 %2163, %v511_v33   ;;  %528 = vperm.xlu0 %2162, %v510_v34  }
  0x46   :  { %543 = vperm.xlu1 %2163, %v513_v35   ;;  %538 = vperm.xlu0 %2162, %v512_v36  }
  0x4a   :  { %553 = vperm.xlu1 %2163, %v515_v37   ;;  %548 = vperm.xlu0 %2162, %v514_v38  }
  0x4e   :  { %563 = vperm.xlu1 %2163, %v517_v39   ;;  %558 = vperm.xlu0 %2162, %v516_v40  }
  0x52   :  { %573 = vperm.xlu1 %2163, %v519_v41   ;;  %568 = vperm.xlu0 %2162, %v518_v42  }
  0x56   :  { %583 = vperm.xlu1 %2163, %v521_v43   ;;  %578 = vperm.xlu0 %2162, %v520_v44  }
  0x5a   :  { %593 = vperm.xlu1 %2163, %v523_v45   ;;  %588 = vperm.xlu0 %2162, %v522_v46  }
  0x5e   :  { %603 = vperm.xlu1 %2163, %v525_v47   ;;  %598 = vperm.xlu0 %2162, %v524_v48  }
  0x7d   :  { %v2873_v51 = vpop.permute.xlu1 %192  ;;  %v2875_v52 = vpop.permute.xlu0 %182 }
  0x81   :  { %v2884_v58 = vpop.permute.xlu1 %197  ;;  %v2886_v59 = vpop.permute.xlu0 %187 }
  0x85   :  { %v208_v0 = vpop.permute.xlu1 %207  ;;  %v203_v1 = vpop.permute.xlu0 %202 }
  0x86   :  { %v2905_v2 = vmul.f32 %v2890_v60, %v208_v0  ;;  %v2908_v3 = vmul.f32 %v2894_v61, %v208_v0  ;;  %v2911_v4 = vmul.f32 %v2898_v62, %v208_v0  ;;  %v2914_v5 = vmul.f32 %v2902_v63, %v208_v0 }
  0x87   :  { %v2917_v6 = vmul.f32 %v2890_v60, %v203_v1  ;;  %v2920_v7 = vmul.f32 %v2894_v61, %v203_v1  ;;  %v2923_v8 = vmul.f32 %v2898_v62, %v203_v1  ;;  %v2926_v9 = vmul.f32 %v2902_v63, %v203_v1 }
  0x88   :  { %4586 = vst [vmem:[#allocation5_spill] sm:$0xff] %v2905_v2  ;;  %4587 = vst [vmem:[#allocation6_spill] sm:$0xff] %v2908_v3 }
  0x89   :  { %4588 = vst [vmem:[#allocation7_spill] sm:$0xff] %v2911_v4  ;;  %4589 = vst [vmem:[#allocation8_spill] sm:$0xff] %v2914_v5  ;;  %v218_v10 = vpop.permute.xlu1 %217  ;;  %v213_v11 = vpop.permute.xlu0 %212 }
  0x8a   :  { %4590 = vst [vmem:[#allocation9_spill] sm:$0xff] %v2917_v6  ;;  %4591 = vst [vmem:[#allocation10_spill] sm:$0xff] %v2920_v7  ;;  %v2929_v12 = vmul.f32 %v2890_v60, %v218_v10  ;;  %v2932_v13 = vmul.f32 %v2894_v61, %v218_v10  ;;  %v2935_v14 = vmul.f32 %v2898_v62, %v218_v10 }
  0x8b   :  { %4592 = vst [vmem:[#allocation11_spill] sm:$0xff] %v2923_v8  ;;  %4593 = vst [vmem:[#allocation12_spill] sm:$0xff] %v2926_v9  ;;  %v2938_v15 = vmul.f32 %v2902_v63, %v218_v10  ;;  %v2941_v16 = vmul.f32 %v2890_v60, %v213_v11  ;;  %v2944_v17 = vmul.f32 %v2894_v61, %v213_v11 }
  0x8c   :  { %4594 = vst [vmem:[#allocation13_spill] sm:$0xff] %v2929_v12  ;;  %4595 = vst [vmem:[#allocation14_spill] sm:$0xff] %v2932_v13  ;;  %v2947_v18 = vmul.f32 %v2898_v62, %v213_v11  ;;  %v2950_v19 = vmul.f32 %v2902_v63, %v213_v11  ;;  %v3389_v9 = vmul.f32 %v2898_v62, %v2873_v51 }
  0x8d   :  { %4596 = vst [vmem:[#allocation15_spill] sm:$0xff] %v2935_v14  ;;  %4597 = vst [vmem:[#allocation16_spill] sm:$0xff] %v2938_v15  ;;  %v228_v20 = vpop.permute.xlu1 %227  ;;  %v223_v21 = vpop.permute.xlu0 %222  ;;  %v3393_v8 = vmul.f32 %v2902_v63, %v2873_v51 }
  0x8e   :  { %4598 = vst [vmem:[#allocation17_spill] sm:$0xff] %v2941_v16  ;;  %4599 = vst [vmem:[#allocation18_spill] sm:$0xff] %v2944_v17  ;;  %v2953_v22 = vmul.f32 %v2890_v60, %v228_v20  ;;  %v2956_v23 = vmul.f32 %v2894_v61, %v228_v20  ;;  %v2959_v24 = vmul.f32 %v2898_v62, %v228_v20 }
  0x8f   :  { %4600 = vst [vmem:[#allocation19_spill] sm:$0xff] %v2947_v18  ;;  %4601 = vst [vmem:[#allocation20_spill] sm:$0xff] %v2950_v19  ;;  %v2962_v25 = vmul.f32 %v2902_v63, %v228_v20  ;;  %v2965_v26 = vmul.f32 %v2890_v60, %v223_v21  ;;  %v2968_v27 = vmul.f32 %v2894_v61, %v223_v21 }
  0x90   :  { %4602 = vst [vmem:[#allocation21_spill] sm:$0xff] %v2953_v22  ;;  %4603 = vst [vmem:[#allocation22_spill] sm:$0xff] %v2956_v23  ;;  %v2971_v28 = vmul.f32 %v2898_v62, %v223_v21  ;;  %v2974_v29 = vmul.f32 %v2902_v63, %v223_v21  ;;  %v382_v23 = vmul.f32 %v2890_v60, %v2875_v52 }
  0x91   :  { %4604 = vst [vmem:[#allocation23_spill] sm:$0xff] %v2959_v24  ;;  %4605 = vst [vmem:[#allocation24_spill] sm:$0xff] %v2962_v25  ;;  %v238_v30 = vpop.permute.xlu1 %237  ;;  %v233_v31 = vpop.permute.xlu0 %232  ;;  %v383_v16 = vmul.f32 %v2894_v61, %v2875_v52 }
  0x92   :  { %4606 = vst [vmem:[#allocation25_spill] sm:$0xff] %v2965_v26  ;;  %4607 = vst [vmem:[#allocation26_spill] sm:$0xff] %v2968_v27  ;;  %v2977_v32 = vmul.f32 %v2890_v60, %v238_v30  ;;  %v2980_v33 = vmul.f32 %v2894_v61, %v238_v30  ;;  %v2983_v34 = vmul.f32 %v2898_v62, %v238_v30 }
  0x93   :  { %4608 = vst [vmem:[#allocation27_spill] sm:$0xff] %v2971_v28  ;;  %4609 = vst [vmem:[#allocation28_spill] sm:$0xff] %v2974_v29  ;;  %v2986_v35 = vmul.f32 %v2902_v63, %v238_v30  ;;  %v2989_v36 = vmul.f32 %v2890_v60, %v233_v31  ;;  %v2992_v37 = vmul.f32 %v2894_v61, %v233_v31 }
  0x94   :  { %4610 = vst [vmem:[#allocation29_spill] sm:$0xff] %v2977_v32  ;;  %4611 = vst [vmem:[#allocation30_spill] sm:$0xff] %v2980_v33  ;;  %v2995_v38 = vmul.f32 %v2898_v62, %v233_v31  ;;  %v2998_v39 = vmul.f32 %v2902_v63, %v233_v31 }
  0x95   :  { %4612 = vst [vmem:[#allocation31_spill] sm:$0xff] %v2983_v34  ;;  %4613 = vst [vmem:[#allocation32_spill] sm:$0xff] %v2986_v35  ;;  %v248_v40 = vpop.permute.xlu1 %247  ;;  %v243_v41 = vpop.permute.xlu0 %242 }
  0x96   :  { %4614 = vst [vmem:[#allocation33_spill] sm:$0xff] %v2989_v36  ;;  %4615 = vst [vmem:[#allocation34_spill] sm:$0xff] %v2992_v37  ;;  %v3001_v42 = vmul.f32 %v2890_v60, %v248_v40  ;;  %v3004_v43 = vmul.f32 %v2894_v61, %v248_v40  ;;  %v3007_v44 = vmul.f32 %v2898_v62, %v248_v40 }
  0x97   :  { %4616 = vst [vmem:[#allocation35_spill] sm:$0xff] %v2995_v38  ;;  %4617 = vst [vmem:[#allocation36_spill] sm:$0xff] %v2998_v39  ;;  %v3010_v45 = vmul.f32 %v2902_v63, %v248_v40  ;;  %v3013_v46 = vmul.f32 %v2890_v60, %v243_v41  ;;  %v3016_v47 = vmul.f32 %v2894_v61, %v243_v41 }
  0x98   :  { %4618 = vst [vmem:[#allocation37_spill] sm:$0xff] %v3001_v42  ;;  %4619 = vst [vmem:[#allocation38_spill] sm:$0xff] %v3004_v43  ;;  %v3019_v48 = vmul.f32 %v2898_v62, %v243_v41  ;;  %v3022_v49 = vmul.f32 %v2902_v63, %v243_v41 }
  0x99   :  { %4620 = vst [vmem:[#allocation39_spill] sm:$0xff] %v3007_v44  ;;  %4621 = vst [vmem:[#allocation40_spill] sm:$0xff] %v3010_v45  ;;  %v258_v57 = vpop.permute.xlu1 %257  ;;  %v253_v0 = vpop.permute.xlu0 %252 }
  0x9a   :  { %4622 = vst [vmem:[#allocation41_spill] sm:$0xff] %v3013_v46  ;;  %4623 = vst [vmem:[#allocation42_spill] sm:$0xff] %v3016_v47  ;;  %v3025_v1 = vmul.f32 %v2890_v60, %v258_v57  ;;  %v3028_v10 = vmul.f32 %v2894_v61, %v258_v57  ;;  %v3031_v11 = vmul.f32 %v2898_v62, %v258_v57 }
  0x9b   :  { %4624 = vst [vmem:[#allocation43_spill] sm:$0xff] %v3019_v48  ;;  %4625 = vst [vmem:[#allocation44_spill] sm:$0xff] %v3022_v49  ;;  %v3034_v20 = vmul.f32 %v2902_v63, %v258_v57  ;;  %v3037_v21 = vmul.f32 %v2890_v60, %v253_v0  ;;  %v3040_v30 = vmul.f32 %v2894_v61, %v253_v0  ;;  %v179_v57 = vld [vmem:[%s4575_s1 + $0x4] sm:$0xf] }
  0x9c   :  { %4626 = vst [vmem:[#allocation45_spill] sm:$0xff] %v3025_v1  ;;  %4627 = vst [vmem:[#allocation46_spill] sm:$0xff] %v3028_v10  ;;  %v3043_v31 = vmul.f32 %v2898_v62, %v253_v0  ;;  %v3046_v40 = vmul.f32 %v2902_v63, %v253_v0 }
  0x9d   :  { %4628 = vst [vmem:[#allocation47_spill] sm:$0xff] %v3031_v11  ;;  %4629 = vst [vmem:[#allocation48_spill] sm:$0xff] %v3034_v20  ;;  %v3048_v41 = vpop.permute.xlu1 %267  ;;  %v3050_v56 = vpop.permute.xlu0 %262  ;;  %v4636_v20 = vsub.s32 3, %v2871_v50 }
  0x9e   :  { %4630 = vst [vmem:[#allocation49_spill] sm:$0xff] %v3037_v21  ;;  %4631 = vst [vmem:[#allocation50_spill] sm:$0xff] %v3040_v30  ;;  %v3061_v30 = vrot.slane %v179_v57, %v344_v53 }
  0x9f   :  { %4632 = vst [vmem:[#allocation51_spill] sm:$0xff] %v3043_v31  ;;  %4633 = vst [vmem:[#allocation52_spill] sm:$0xff] %v3046_v40  ;;  %v4634_v31 = vsub.s32 1, %v2871_v50  ;;  %v4635_v40 = vsub.s32 2, %v2871_v50  ;;  %v3073_v11 = vrot.slane %v179_v57, %v4636_v20 }
  0xa1   :  { %v3055_v55 = vpop.permute.xlu1 %277  ;;  %v3057_v54 = vpop.permute.xlu0 %272  ;;  %v3065_v0 = vrot.slane %v179_v57, %v4634_v31  ;;  %v3069_v21 = vrot.slane %v179_v57, %v4635_v40  ;;  %v453_v22 = vmul.f32 %v3073_v11, %v3048_v41 }
  0xa3   :  { %v3421_v4 = vmul.f32 %v3069_v21, %v3057_v54 }
  0xa5   :  { %v288_v10 = vpop.permute.xlu1 %287  ;;  %v283_v1 = vpop.permute.xlu0 %282 }
  0xa6   :  { %v3076_v49 = vmul.f32 %v3061_v30, %v288_v10  ;;  %v3079_v53 = vmul.f32 %v3065_v0, %v288_v10  ;;  %v3082_v48 = vmul.f32 %v3069_v21, %v288_v10  ;;  %v3085_v31 = vmul.f32 %v3073_v11, %v288_v10 }
  0xa7   :  { %v3088_v40 = vmul.f32 %v3061_v30, %v283_v1  ;;  %v3091_v50 = vmul.f32 %v3065_v0, %v283_v1  ;;  %v3094_v20 = vmul.f32 %v3069_v21, %v283_v1  ;;  %v3097_v57 = vmul.f32 %v3073_v11, %v283_v1 }
  0xa8   :  { %4637 = vst [vmem:[#allocation53_spill] sm:$0xff] %v3076_v49  ;;  %4638 = vst [vmem:[#allocation54_spill] sm:$0xff] %v3079_v53  ;;  %v396_v53 = vmul.f32 %v2898_v62, %v2884_v58  ;;  %v397_v49 = vmul.f32 %v2902_v63, %v2884_v58 }
  0xa9   :  { %4639 = vst [vmem:[#allocation55_spill] sm:$0xff] %v3082_v48  ;;  %4640 = vst [vmem:[#allocation56_spill] sm:$0xff] %v3085_v31  ;;  %v298_v47 = vpop.permute.xlu1 %297  ;;  %v293_v46 = vpop.permute.xlu0 %292  ;;  %v394_v31 = vmul.f32 %v2890_v60, %v2884_v58  ;;  %v395_v48 = vmul.f32 %v2894_v61, %v2884_v58 }
  0xaa   :  { %4641 = vst [vmem:[#allocation57_spill] sm:$0xff] %v3088_v40  ;;  %4642 = vst [vmem:[#allocation58_spill] sm:$0xff] %v3091_v50  ;;  %v3100_v45 = vmul.f32 %v3061_v30, %v298_v47  ;;  %v3103_v10 = vmul.f32 %v3065_v0, %v298_v47  ;;  %v3106_v44 = vmul.f32 %v3069_v21, %v298_v47 }
  0xab   :  { %4643 = vst [vmem:[#allocation59_spill] sm:$0xff] %v3094_v20  ;;  %4644 = vst [vmem:[#allocation60_spill] sm:$0xff] %v3097_v57  ;;  %v3109_v43 = vmul.f32 %v3073_v11, %v298_v47  ;;  %v3112_v42 = vmul.f32 %v3061_v30, %v293_v46  ;;  %v3115_v1 = vmul.f32 %v3065_v0, %v293_v46 }
  0xac   :  { %4645 = vst [vmem:[#allocation61_spill] sm:$0xff] %v3100_v45  ;;  %4646 = vst [vmem:[#allocation62_spill] sm:$0xff] %v3103_v10  ;;  %v3118_v39 = vmul.f32 %v3069_v21, %v293_v46  ;;  %v3121_v38 = vmul.f32 %v3073_v11, %v293_v46  ;;  %v3348_v10 = vld [vmem:[%s4574_s0 + $0x210] sm:$0xff]  ;;  %v3353_v45 = vld [vmem:[%s4574_s0 + $0x218] sm:$0xff]  ;;  %v3381_v20 = vmul.f32 %v2890_v60, %v2873_v51 }
  0xad   :  { %4647 = vst [vmem:[#allocation63_spill] sm:$0xff] %v3106_v44  ;;  %4648 = vst [vmem:[#allocation64_spill] sm:$0xff] %v3109_v43  ;;  %v308_v37 = vpop.permute.xlu1 %307  ;;  %v303_v36 = vpop.permute.xlu0 %302  ;;  %v3335_v43 = vld [vmem:[%s4574_s0 + $0x200] sm:$0xff]  ;;  %v3343_v44 = vld [vmem:[%s4574_s0 + $0x208] sm:$0xff]  ;;  %v3385_v50 = vmul.f32 %v2894_v61, %v2873_v51 }
  0xae   :  { %4649 = vst [vmem:[#allocation65_spill] sm:$0xff] %v3112_v42  ;;  %4650 = vst [vmem:[#allocation66_spill] sm:$0xff] %v3115_v1  ;;  %v3124_v35 = vmul.f32 %v3061_v30, %v308_v37  ;;  %v3127_v47 = vmul.f32 %v3065_v0, %v308_v37  ;;  %v3130_v34 = vmul.f32 %v3069_v21, %v308_v37  ;;  %v3368_v57 = vadd.f32 1.0, %v3335_v43 }
  0xaf   :  { %4651 = vst [vmem:[#allocation67_spill] sm:$0xff] %v3118_v39  ;;  %4652 = vst [vmem:[#allocation68_spill] sm:$0xff] %v3121_v38  ;;  %v3133_v33 = vmul.f32 %v3073_v11, %v308_v37  ;;  %v3136_v32 = vmul.f32 %v3061_v30, %v303_v36  ;;  %v3139_v46 = vmul.f32 %v3065_v0, %v303_v36 }
  0xb0   :  { %4653 = vst [vmem:[#allocation69_spill] sm:$0xff] %v3124_v35  ;;  %4654 = vst [vmem:[#allocation70_spill] sm:$0xff] %v3127_v47  ;;  %v3142_v29 = vmul.f32 %v3069_v21, %v303_v36  ;;  %v3145_v28 = vmul.f32 %v3073_v11, %v303_v36 }
  0xb1   :  { %4655 = vst [vmem:[#allocation71_spill] sm:$0xff] %v3130_v34  ;;  %4656 = vst [vmem:[#allocation72_spill] sm:$0xff] %v3133_v33  ;;  %v318_v27 = vpop.permute.xlu1 %317  ;;  %v313_v26 = vpop.permute.xlu0 %312 }
  0xb2   :  { %4657 = vst [vmem:[#allocation73_spill] sm:$0xff] %v3136_v32  ;;  %4658 = vst [vmem:[#allocation74_spill] sm:$0xff] %v3139_v46  ;;  %v3148_v47 = vmul.f32 %v3061_v30, %v318_v27  ;;  %v3151_v37 = vmul.f32 %v3065_v0, %v318_v27  ;;  %v3154_v33 = vmul.f32 %v3069_v21, %v318_v27 }
  0xb3   :  { %4659 = vst [vmem:[#allocation75_spill] sm:$0xff] %v3142_v29  ;;  %4660 = vst [vmem:[#allocation76_spill] sm:$0xff] %v3145_v28  ;;  %v3157_v32 = vmul.f32 %v3073_v11, %v318_v27  ;;  %v3160_v46 = vmul.f32 %v3061_v30, %v313_v26  ;;  %v3163_v36 = vmul.f32 %v3065_v0, %v313_v26 }
  0xb4   :  { %4661 = vst [vmem:[#allocation77_spill] sm:$0xff] %v3148_v47  ;;  %4662 = vst [vmem:[#allocation78_spill] sm:$0xff] %v3151_v37  ;;  %v3166_v28 = vmul.f32 %v3069_v21, %v313_v26  ;;  %v3169_v47 = vmul.f32 %v3073_v11, %v313_v26 }
  0xb5   :  { %4663 = vst [vmem:[#allocation79_spill] sm:$0xff] %v3154_v33  ;;  %4664 = vst [vmem:[#allocation80_spill] sm:$0xff] %v3157_v32  ;;  %v328_v29 = vpop.permute.xlu1 %327  ;;  %v323_v37 = vpop.permute.xlu0 %322 }
  0xb6   :  { %4665 = vst [vmem:[#allocation81_spill] sm:$0xff] %v3160_v46  ;;  %4666 = vst [vmem:[#allocation82_spill] sm:$0xff] %v3163_v36  ;;  %v3172_v34 = vmul.f32 %v3061_v30, %v328_v29  ;;  %v3175_v27 = vmul.f32 %v3065_v0, %v328_v29  ;;  %v3178_v32 = vmul.f32 %v3069_v21, %v328_v29 }
  0xb7   :  { %4667 = vst [vmem:[#allocation83_spill] sm:$0xff] %v3166_v28  ;;  %4668 = vst [vmem:[#allocation84_spill] sm:$0xff] %v3169_v47  ;;  %v3181_v46 = vmul.f32 %v3073_v11, %v328_v29  ;;  %v3184_v36 = vmul.f32 %v3061_v30, %v323_v37  ;;  %v3187_v26 = vmul.f32 %v3065_v0, %v323_v37 }
  0xb8   :  { %4669 = vst [vmem:[#allocation85_spill] sm:$0xff] %v3172_v34  ;;  %4670 = vst [vmem:[#allocation86_spill] sm:$0xff] %v3175_v27  ;;  %v3190_v47 = vmul.f32 %v3069_v21, %v323_v37  ;;  %v3193_v34 = vmul.f32 %v3073_v11, %v323_v37 }
  0xb9   :  { %4671 = vst [vmem:[#allocation87_spill] sm:$0xff] %v3178_v32  ;;  %4672 = vst [vmem:[#allocation88_spill] sm:$0xff] %v3181_v46  ;;  %v338_v28 = vpop.permute.xlu1 %337  ;;  %v333_v27 = vpop.permute.xlu0 %332  ;;  %v3244_v32 = vld [vmem:[%s4574_s0 + $0x28] sm:$0xff] }
  0xba   :  { %4673 = vst [vmem:[#allocation89_spill] sm:$0xff] %v3184_v36  ;;  %4674 = vst [vmem:[#allocation90_spill] sm:$0xff] %v3187_v26  ;;  %v3196_v33 = vmul.f32 %v3061_v30, %v338_v28  ;;  %v3199_v29 = vmul.f32 %v3065_v0, %v338_v28  ;;  %v3202_v46 = vmul.f32 %v3069_v21, %v338_v28 }
  0xbb   :  { %4675 = vst [vmem:[#allocation91_spill] sm:$0xff] %v3190_v47  ;;  %4676 = vst [vmem:[#allocation92_spill] sm:$0xff] %v3193_v34  ;;  %v3205_v36 = vmul.f32 %v3073_v11, %v338_v28  ;;  %v3210_v47 = vld [vmem:[%s4574_s0 + $0x20] sm:$0xff]  ;;  %v3213_v37 = vmul.f32 %v3061_v30, %v333_v27  ;;  %v3216_v34 = vmul.f32 %v3065_v0, %v333_v27 }
  0xbc   :  { %4677 = vst [vmem:[#allocation93_spill] sm:$0xff] %v3196_v33  ;;  %4678 = vst [vmem:[#allocation94_spill] sm:$0xff] %v3199_v29  ;;  %v3219_v33 = vmul.f32 %v3069_v21, %v333_v27  ;;  %v3222_v29 = vmul.f32 %v3073_v11, %v333_v27  ;;  %v386_v28 = vmul.f32 %v2890_v60, %v2886_v59  ;;  %v3239_v26 = vadd.f32 1.0, %v3210_v47 }
  0xbd   :  { %4679 = vst [vmem:[#allocation95_spill] sm:$0xff] %v3202_v46  ;;  %4680 = vst [vmem:[#allocation96_spill] sm:$0xff] %v3205_v36  ;;  %v387_v36 = vmul.f32 %v2894_v61, %v2886_v59  ;;  %v388_v46 = vmul.f32 %v2898_v62, %v2886_v59  ;;  %v452_v27 = vmul.f32 %v3069_v21, %v3048_v41  ;;  %v529_v1 = vpop.permute.xlu0 %528 }
  0xbe   :  { %4681 = vst [vmem:[#allocation97_spill] sm:$0xff] %v3213_v37  ;;  %4682 = vst [vmem:[#allocation98_spill] sm:$0xff] %v3216_v34  ;;  %v389_v37 = vmul.f32 %v2902_v63, %v2886_v59  ;;  %v450_v34 = vmul.f32 %v3061_v30, %v3048_v41  ;;  %v459_v60 = vmul.f32 %v3065_v0, %v3055_v55 }
  0xbf   :  { %4683 = vst [vmem:[#allocation99_spill] sm:$0xff] %v3219_v33  ;;  %4684 = vst [vmem:[#allocation100_spill] sm:$0xff] %v3222_v29  ;;  %v451_v33 = vmul.f32 %v3065_v0, %v3048_v41  ;;  %v534_v29 = vpop.permute.xlu1 %533 }
  0xc0   :  { %v610_v35 = vadd.f32 %v534_v29, %v386_v28  ;;  %v611_v59 = vadd.f32 %v534_v29, %v387_v36  ;;  %v612_v25 = vadd.f32 %v534_v29, %v388_v46  ;;  %v613_v24 = vadd.f32 %v534_v29, %v389_v37  ;;  %4685 = vst [vmem:[#allocation101_spill] sm:$0xff] %v3335_v43 }
  0xc1   :  { %v674_v38 = vadd.f32 %v534_v29, %v450_v34  ;;  %v675_v39 = vadd.f32 %v534_v29, %v451_v33  ;;  %v676_v42 = vadd.f32 %v534_v29, %v452_v27  ;;  %v677_v28 = vadd.f32 %v534_v29, %v453_v22  ;;  %4686 = vst [vmem:[#allocation102_spill] sm:$0xff] %v3343_v44 }
  0xc2   :  { %v2034_v19 = vmul.f32 -1.442695, %v610_v35  ;;  %v2035_v18 = vmul.f32 -1.442695, %v611_v59  ;;  %v2036_v17 = vmul.f32 -1.442695, %v612_v25  ;;  %v384_v37 = vmul.f32 %v2898_v62, %v2875_v52 }
  0xc3   :  { %v2037_v36 = vmul.f32 -1.442695, %v613_v24  ;;  %v3253_v46 = vadd.f32 1.0, %v3244_v32  ;;  %v2098_v41 = vmul.f32 -1.442695, %v674_v38  ;;  %v606_v34 = vadd.f32 %v529_v1, %v382_v23  ;;  %v3285_v59 = vld [vmem:[%s4574_s0 + $0x228] sm:$0xff]  ;;  %v544_v58 = vpop.permute.xlu1 %543 }
  0xc4   :  { %2164 = vpow2.f32 %v2034_v19  ;;  %v385_v33 = vmul.f32 %v2902_v63, %v2875_v52  ;;  %v2099_v35 = vmul.f32 -1.442695, %v675_v39  ;;  %v607_v25 = vadd.f32 %v529_v1, %v383_v16  ;;  %v3266_v19 = vld [vmem:[%s4574_s0 + $0x30] sm:$0xff]  ;;  %4687 = vst [vmem:[#allocation103_spill] sm:$0xff] %v3348_v10  ;;  %4688 = vst [vmem:[#allocation104_spill] sm:$0xff] %v3353_v45 }
  0xc5   :  { %2166 = vpow2.f32 %v2035_v18  ;;  %v446_v27 = vmul.f32 %v3061_v30, %v3050_v56  ;;  %v2100_v22 = vmul.f32 -1.442695, %v676_v42  ;;  %v608_v24 = vadd.f32 %v529_v1, %v384_v37  ;;  %v3280_v42 = vld [vmem:[%s4574_s0 + $0x220] sm:$0xff]  ;;  %v3290_v37 = vld [vmem:[%s4574_s0 + $0x230] sm:$0xff] }
  0xc6   :  { %2168 = vpow2.f32 %v2036_v17  ;;  %v447_v29 = vmul.f32 %v3065_v0, %v3050_v56  ;;  %v2101_v23 = vmul.f32 -1.442695, %v677_v28  ;;  %v609_v52 = vadd.f32 %v529_v1, %v385_v33  ;;  %v3273_v17 = vld [vmem:[%s4574_s0 + $0x38] sm:$0xff] }
  0xc7   :  { %2170 = vpow2.f32 %v2037_v36  ;;  %v448_v16 = vmul.f32 %v3069_v21, %v3050_v56  ;;  %v670_v18 = vadd.f32 %v529_v1, %v446_v27  ;;  %v2030_v38 = vmul.f32 -1.442695, %v606_v34  ;;  %v3298_v33 = vld [vmem:[%s4574_s0 + $0x238] sm:$0xff] }
  0xc8   :  { %2172 = vpow2.f32 %v2098_v41  ;;  %v449_v39 = vmul.f32 %v3073_v11, %v3050_v56  ;;  %v671_v28 = vadd.f32 %v529_v1, %v447_v29  ;;  %v2031_v36 = vmul.f32 -1.442695, %v607_v25 }
  0xc9   :  { %2174 = vpow2.f32 %v2099_v35  ;;  %v3293_v56 = vadd.f32 1.0, %v3266_v19  ;;  %v672_v41 = vadd.f32 %v529_v1, %v448_v16  ;;  %v2032_v34 = vmul.f32 -1.442695, %v608_v24  ;;  %v3312_v24 = vld [vmem:[%s4574_s0] sm:$0xff] }
  0xca   :  { %2176 = vpow2.f32 %v2100_v22  ;;  %v3301_v35 = vadd.f32 1.0, %v3273_v17  ;;  %v673_v25 = vadd.f32 %v529_v1, %v449_v39  ;;  %v2033_v27 = vmul.f32 -1.442695, %v609_v52  ;;  %v3325_v52 = vld [vmem:[%s4574_s0 + $0x10] sm:$0xff]  ;;  %v3330_v39 = vld [vmem:[%s4574_s0 + $0x18] sm:$0xff] }
  0xcb   :  { %2178 = vpow2.f32 %v2101_v23  ;;  %v3304_v29 = vadd.f32 1.0, %v3280_v42  ;;  %v3307_v22 = vadd.f32 1.0, %v3285_v59  ;;  %v3317_v23 = vld [vmem:[%s4574_s0 + $0x8] sm:$0xff]  ;;  %v2094_v16 = vmul.f32 -1.442695, %v670_v18 }
  0xcc   :  { %2180 = vpow2.f32 %v2030_v38  ;;  %v3320_v1 = vadd.f32 1.0, %v3290_v37  ;;  %v2095_v18 = vmul.f32 -1.442695, %v671_v28  ;;  %v3338_v38 = vadd.f32 1.0, %v3298_v33 }
  0xcd   :  { %2182 = vpow2.f32 %v2031_v36  ;;  %v2096_v28 = vmul.f32 -1.442695, %v672_v41  ;;  %v2097_v36 = vmul.f32 -1.442695, %v673_v25  ;;  %v3356_v15 = vadd.f32 1.0, %v3312_v24 }
  0xce   :  { %2184 = vpow2.f32 %v2032_v34  ;;  %v3359_v14 = vadd.f32 1.0, %v3317_v23  ;;  %v3362_v13 = vadd.f32 1.0, %v3325_v52  ;;  %v3365_v12 = vadd.f32 1.0, %v3330_v39 }
  0xcf   :  { %2186 = vpow2.f32 %v2033_v27  ;;  %v3371_v41 = vadd.f32 1.0, %v3343_v44  ;;  %v3374_v25 = vadd.f32 1.0, %v3348_v10  ;;  %v3377_v27 = vadd.f32 1.0, %v3353_v45 }
  0xd0   :  { %2188 = vpow2.f32 %v2094_v16  ;;  %v461_v62 = vmul.f32 %v3073_v11, %v3055_v55  ;;  %v618_v3 = vadd.f32 %v544_v58, %v394_v31  ;;  %v619_v2 = vadd.f32 %v544_v58, %v395_v48 }
  0xd1   :  { %v2165_v34 = vpop.eup %2164  ;;  %2190 = vpow2.f32 %v2095_v18  ;;  %4689 = vst [vmem:[#allocation105_spill] sm:$0xff] %v3377_v27  ;;  %v621_v45 = vadd.f32 %v544_v58, %v397_v49  ;;  %v683_v27 = vadd.f32 %v544_v58, %v459_v60 }
  0xd2   :  { %v2167_v16 = vpop.eup %2166  ;;  %v1122_v40 = vadd.f32 1.0, %v2165_v34  ;;  %2192 = vpow2.f32 %v2096_v28  ;;  %v2042_v31 = vmul.f32 -1.442695, %v618_v3  ;;  %v2043_v48 = vmul.f32 -1.442695, %v619_v2 }
  0xd3   :  { %v2169_v18 = vpop.eup %2168  ;;  %v1123_v7 = vadd.f32 1.0, %v2167_v16  ;;  %2194 = vpow2.f32 %v2097_v36  ;;  %v458_v36 = vmul.f32 %v3061_v30, %v3055_v55  ;;  %v2045_v49 = vmul.f32 -1.442695, %v621_v45 }
  0xd4   :  { %v2171_v6 = vpop.eup %2170  ;;  %v1124_v34 = vadd.f32 1.0, %v2169_v18  ;;  %2196 = vrcp.f32 %v1122_v40  ;;  %v460_v40 = vmul.f32 %v3069_v21, %v3055_v55  ;;  %v3425_v55 = vmul.f32 %v3073_v11, %v3057_v54 }
  0xd5   :  { %v2173_v28 = vpop.eup %2172  ;;  %v1125_v51 = vadd.f32 1.0, %v2171_v6  ;;  %2198 = vrcp.f32 %v1123_v7  ;;  %v3413_v6 = vmul.f32 %v3061_v30, %v3057_v54  ;;  %v3417_v7 = vmul.f32 %v3065_v0, %v3057_v54 }
  0xd6   :  { %v2175_v16 = vpop.eup %2174  ;;  %v1186_v5 = vadd.f32 1.0, %v2173_v28  ;;  %2200 = vrcp.f32 %v1124_v34  ;;  %v682_v21 = vadd.f32 %v544_v58, %v458_v36  ;;  %v684_v11 = vadd.f32 %v544_v58, %v460_v40 }
  0xd7   :  { %v2177_v61 = vpop.eup %2176  ;;  %v1187_v18 = vadd.f32 1.0, %v2175_v16  ;;  %2202 = vrcp.f32 %v1125_v51  ;;  %v2107_v60 = vmul.f32 -1.442695, %v683_v27 }
  0xd8   :  { %v2179_v63 = vpop.eup %2178  ;;  %v1188_v34 = vadd.f32 1.0, %v2177_v61  ;;  %2204 = vrcp.f32 %v1186_v5  ;;  %v620_v5 = vadd.f32 %v544_v58, %v396_v53  ;;  %v2106_v36 = vmul.f32 -1.442695, %v682_v21 }
  0xd9   :  { %v2181_v28 = vpop.eup %2180  ;;  %v1189_v51 = vadd.f32 1.0, %v2179_v63  ;;  %2206 = vrcp.f32 %v1187_v18  ;;  %v685_v18 = vadd.f32 %v544_v58, %v461_v62  ;;  %v2108_v40 = vmul.f32 -1.442695, %v684_v11 }
  0xda   :  { %v2183_v16 = vpop.eup %2182  ;;  %2208 = vrcp.f32 %v1188_v34  ;;  %v1118_v30 = vadd.f32 1.0, %v2181_v28  ;;  %v2044_v53 = vmul.f32 -1.442695, %v620_v5 }
  0xdb   :  { %v2185_v0 = vpop.eup %2184  ;;  %2210 = vrcp.f32 %v1189_v51  ;;  %v1119_v61 = vadd.f32 1.0, %v2183_v16  ;;  %v539_v16 = vpop.permute.xlu0 %538  ;;  %v2109_v62 = vmul.f32 -1.442695, %v685_v18 }
  0xdc   :  { %v2187_v10 = vpop.eup %2186  ;;  %v1120_v44 = vadd.f32 1.0, %v2185_v0  ;;  %2212 = vrcp.f32 %v1118_v30  ;;  %v614_v2 = vadd.f32 %v539_v16, %v3381_v20  ;;  %v616_v5 = vadd.f32 %v539_v16, %v3389_v9 }
  0xdd   :  { %v2189_v43 = vpop.eup %2188  ;;  %v1121_v54 = vadd.f32 1.0, %v2187_v10  ;;  %2214 = vrcp.f32 %v1119_v61  ;;  %v617_v27 = vadd.f32 %v539_v16, %v3393_v8 }
  0xde   :  { %v2191_v63 = vpop.eup %2190  ;;  %v1182_v34 = vadd.f32 1.0, %v2189_v43  ;;  %2216 = vrcp.f32 %v1120_v44  ;;  %v615_v44 = vadd.f32 %v539_v16, %v3385_v50 }
  0xdf   :  { %v2193_v28 = vpop.eup %2192  ;;  %v1183_v51 = vadd.f32 1.0, %v2191_v63  ;;  %2218 = vrcp.f32 %v1121_v54 }
  0xe0   :  { %v2195_v0 = vpop.eup %2194  ;;  %v1184_v30 = vadd.f32 1.0, %v2193_v28  ;;  %2220 = vrcp.f32 %v1182_v34 }
  0xe1   :  { %v2197_v10 = vpop.eup %2196  ;;  %v1185_v61 = vadd.f32 1.0, %v2195_v0  ;;  %2222 = vrcp.f32 %v1183_v51 }
  0xe2   :  { %v2199_v43 = vpop.eup %2198  ;;  %v1634_v3 = vmul.f32 %v2197_v10, %v3239_v26  ;;  %2224 = vrcp.f32 %v1184_v30  ;;  %v678_v26 = vadd.f32 %v539_v16, %v3413_v6 }
  0xe3   :  { %v2201_v45 = vpop.eup %2200  ;;  %v1635_v58 = vmul.f32 %v2199_v43, %v3253_v46  ;;  %2226 = vrcp.f32 %v1185_v61  ;;  %v679_v46 = vadd.f32 %v539_v16, %v3417_v7  ;;  %v4690_v43 = vld [vmem:[#allocation101_spill] sm:$0xff] }
  0xe4   :  { %v2203_v21 = vpop.eup %2202  ;;  %v1636_v54 = vmul.f32 %v2201_v45, %v3293_v56  ;;  %v1762_v11 = vadd.f32 %v1634_v3, %v3210_v47  ;;  %2228 = vpow2.f32 %v2042_v31  ;;  %v680_v47 = vadd.f32 %v539_v16, %v3421_v4 }
  0xe5   :  { %v2205_v18 = vpop.eup %2204  ;;  %v1637_v20 = vmul.f32 %v2203_v21, %v3301_v35  ;;  %v1763_v50 = vadd.f32 %v1635_v58, %v3244_v32  ;;  %2230 = vpow2.f32 %v2043_v48  ;;  %v681_v32 = vadd.f32 %v539_v16, %v3425_v55  ;;  %v4692_v58 = vld [vmem:[#allocation102_spill] sm:$0xff] }
  0xe6   :  { %v2207_v63 = vpop.eup %2206  ;;  %v1698_v9 = vmul.f32 %v2205_v18, %v3304_v29  ;;  %v1764_v8 = vadd.f32 %v1636_v54, %v3266_v19  ;;  %1890 = vst [vmem:[#allocation2 + $0x20] sm:$0xff] %v1762_v11  ;;  %2232 = vpow2.f32 %v2044_v53  ;;  %v2038_v19 = vmul.f32 -1.442695, %v614_v2  ;;  %v4693_v11 = vld [vmem:[#allocation103_spill] sm:$0xff] }
  0xe7   :  { %v2209_v56 = vpop.eup %2208  ;;  %v1699_v6 = vmul.f32 %v2207_v63, %v3307_v22  ;;  %v1765_v34 = vadd.f32 %v1637_v20, %v3273_v17  ;;  %1891 = vst [vmem:[#allocation2 + $0x28] sm:$0xff] %v1763_v50  ;;  %2234 = vpow2.f32 %v2045_v49  ;;  %v2039_v17 = vmul.f32 -1.442695, %v615_v44  ;;  %v4691_v44 = vld [vmem:[#allocation105_spill] sm:$0xff]  ;;  %v3505_v18 = vld [vmem:[%s4574_s0 + $0x270] sm:$0xff]  ;;  %v3510_v20 = vld [vmem:[%s4574_s0 + $0x278] sm:$0xff] }
  0xe8   :  { %v2211_v35 = vpop.eup %2210  ;;  %v1700_v7 = vmul.f32 %v2209_v56, %v3320_v1  ;;  %v1826_v29 = vadd.f32 %v1698_v9, %v3280_v42  ;;  %1892 = vst [vmem:[#allocation2 + $0x30] sm:$0xff] %v1764_v8  ;;  %2236 = vpow2.f32 %v2106_v36  ;;  %v2040_v1 = vmul.f32 -1.442695, %v616_v5  ;;  %v4694_v9 = vld [vmem:[#allocation104_spill] sm:$0xff] }
  0xe9   :  { %v2213_v31 = vpop.eup %2212  ;;  %v1701_v4 = vmul.f32 %v2211_v35, %v3338_v38  ;;  %v1827_v48 = vadd.f32 %v1699_v6, %v3285_v59  ;;  %1893 = vst [vmem:[#allocation2 + $0x38] sm:$0xff] %v1765_v34  ;;  %2238 = vpow2.f32 %v2107_v60  ;;  %v2041_v38 = vmul.f32 -1.442695, %v617_v27  ;;  %v3467_v60 = vld [vmem:[%s4574_s0 + $0x68] sm:$0xff]  ;;  %v3522_v6 = vld [vmem:[%s4574_s0 + $0x40] sm:$0xff] }
  0xea   :  { %v2215_v22 = vpop.eup %2214  ;;  %v1828_v28 = vadd.f32 %v1700_v7, %v3290_v37  ;;  %1954 = vst [vmem:[#allocation2 + $0x220] sm:$0xff] %v1826_v29  ;;  %v1630_v55 = vmul.f32 %v2213_v31, %v3356_v15  ;;  %2240 = vpow2.f32 %v2108_v40  ;;  %v2102_v37 = vmul.f32 -1.442695, %v678_v26  ;;  %v3496_v27 = vld [vmem:[%s4574_s0 + $0x268] sm:$0xff]  ;;  %v3543_v31 = vld [vmem:[%s4574_s0 + $0x58] sm:$0xff] }
  0xeb   :  { %v2217_v42 = vpop.eup %2216  ;;  %v1829_v51 = vadd.f32 %v1701_v4, %v3298_v33  ;;  %1955 = vst [vmem:[#allocation2 + $0x228] sm:$0xff] %v1827_v48  ;;  %v1631_v53 = vmul.f32 %v2215_v22, %v3359_v14  ;;  %2242 = vpow2.f32 %v2109_v62  ;;  %v3460_v14 = vld [vmem:[%s4574_s0 + $0x60] sm:$0xff]  ;;  %v2103_v33 = vmul.f32 -1.442695, %v679_v46  ;;  %v3527_v34 = vld [vmem:[%s4574_s0 + $0x48] sm:$0xff] }
  0xec   :  { %v2219_v59 = vpop.eup %2218  ;;  %1956 = vst [vmem:[#allocation2 + $0x230] sm:$0xff] %v1828_v28  ;;  %v1632_v49 = vmul.f32 %v2217_v42, %v3362_v13  ;;  %v1758_v16 = vadd.f32 %v1630_v55, %v3312_v24  ;;  %2244 = vpow2.f32 %v2038_v19  ;;  %v3499_v21 = vadd.f32 1.0, %v3467_v60  ;;  %v3538_v19 = vld [vmem:[%s4574_s0 + $0x50] sm:$0xff]  ;;  %v3554_v28 = vld [vmem:[%s4574_s0 + $0x240] sm:$0xff]  ;;  %v3559_v55 = vld [vmem:[%s4574_s0 + $0x248] sm:$0xff] }
  0xed   :  { %v2221_v0 = vpop.eup %2220  ;;  %1957 = vst [vmem:[#allocation2 + $0x238] sm:$0xff] %v1829_v51  ;;  %v1633_v15 = vmul.f32 %v2219_v59, %v3365_v12  ;;  %v1759_v30 = vadd.f32 %v1631_v53, %v3317_v23  ;;  %2246 = vpow2.f32 %v2039_v17  ;;  %v2104_v12 = vmul.f32 -1.442695, %v680_v47  ;;  %v3564_v51 = vld [vmem:[%s4574_s0 + $0x250] sm:$0xff]  ;;  %v3569_v53 = vld [vmem:[%s4574_s0 + $0x258] sm:$0xff] }
  0xee   :  { %v2223_v36 = vpop.eup %2222  ;;  %v1694_v13 = vmul.f32 %v2221_v0, %v3368_v57  ;;  %v1760_v24 = vadd.f32 %v1632_v49, %v3325_v52  ;;  %1886 = vst [vmem:[#allocation2] sm:$0xff] %v1758_v16  ;;  %2248 = vpow2.f32 %v2040_v1  ;;  %v3474_v57 = vld [vmem:[%s4574_s0 + $0x70] sm:$0xff]  ;;  %v2105_v52 = vmul.f32 -1.442695, %v681_v32 }
  0xef   :  { %v2225_v23 = vpop.eup %2224  ;;  %v1695_v10 = vmul.f32 %v2223_v36, %v3371_v41  ;;  %v1761_v61 = vadd.f32 %v1633_v15, %v3330_v39  ;;  %1887 = vst [vmem:[#allocation2 + $0x8] sm:$0xff] %v1759_v30  ;;  %2250 = vpow2.f32 %v2041_v38  ;;  %v3481_v41 = vld [vmem:[%s4574_s0 + $0x78] sm:$0xff]  ;;  %v3484_v39 = vadd.f32 1.0, %v3460_v14  ;;  %v554_v15 = vpop.permute.xlu1 %553 }
  0xf0   :  { %v2227_v40 = vpop.eup %2226  ;;  %v1696_v62 = vmul.f32 %v2225_v23, %v3374_v25  ;;  %v1822_v3 = vadd.f32 %v1694_v13, %v4690_v43  ;;  %1888 = vst [vmem:[#allocation2 + $0x10] sm:$0xff] %v1760_v24  ;;  %2252 = vpow2.f32 %v2102_v37  ;;  %v3491_v25 = vld [vmem:[%s4574_s0 + $0x260] sm:$0xff]  ;;  %v3513_v46 = vadd.f32 1.0, %v3474_v57  ;;  %v4696_v43 = vld [vmem:[#allocation6_spill] sm:$0xff] }
  0xf1   :  { %v2229_v2 = vpop.eup %2228  ;;  %v1697_v45 = vmul.f32 %v2227_v40, %v4691_v44  ;;  %v1823_v5 = vadd.f32 %v1695_v10, %v4692_v58  ;;  %1889 = vst [vmem:[#allocation2 + $0x18] sm:$0xff] %v1761_v61  ;;  %2254 = vpow2.f32 %v2103_v33  ;;  %v3517_v56 = vadd.f32 1.0, %v3481_v41  ;;  %v4695_v40 = vld [vmem:[#allocation5_spill] sm:$0xff] }
  0xf2   :  { %v2231_v54 = vpop.eup %2230  ;;  %v1824_v26 = vadd.f32 %v1696_v62, %v4693_v11  ;;  %1950 = vst [vmem:[#allocation2 + $0x200] sm:$0xff] %v1822_v3  ;;  %v1130_v50 = vadd.f32 1.0, %v2229_v2  ;;  %2256 = vpow2.f32 %v2104_v12  ;;  %v3530_v7 = vadd.f32 1.0, %v3491_v25 }
  0xf3   :  { %v2233_v63 = vpop.eup %2232  ;;  %v1825_v8 = vadd.f32 %v1697_v45, %v4694_v9  ;;  %1951 = vst [vmem:[#allocation2 + $0x208] sm:$0xff] %v1823_v5  ;;  %v1131_v47 = vadd.f32 1.0, %v2231_v54  ;;  %2258 = vpow2.f32 %v2105_v52  ;;  %v3533_v29 = vadd.f32 1.0, %v3496_v27  ;;  %v4697_v45 = vld [vmem:[#allocation7_spill] sm:$0xff]  ;;  %v4698_v5 = vld [vmem:[#allocation8_spill] sm:$0xff]  ;;  %v4700_v9 = vld [vmem:[#allocation54_spill] sm:$0xff] }
  0xf4   :  { %v2235_v32 = vpop.eup %2234  ;;  %1952 = vst [vmem:[#allocation2 + $0x210] sm:$0xff] %v1824_v26  ;;  %v1132_v35 = vadd.f32 1.0, %v2233_v63  ;;  %2260 = vrcp.f32 %v1130_v50  ;;  %v3546_v17 = vadd.f32 1.0, %v3505_v18  ;;  %v3549_v22 = vadd.f32 1.0, %v3510_v20  ;;  %v4699_v50 = vld [vmem:[#allocation53_spill] sm:$0xff] }
  0xf5   :  { %v2237_v4 = vpop.eup %2236  ;;  %1953 = vst [vmem:[#allocation2 + $0x218] sm:$0xff] %v1825_v8  ;;  %v1133_v48 = vadd.f32 1.0, %v2235_v32  ;;  %2262 = vrcp.f32 %v1131_v47  ;;  %v3572_v38 = vadd.f32 1.0, %v3522_v6  ;;  %v3575_v59 = vadd.f32 1.0, %v3527_v34 }
  0xf6   :  { %v2239_v1 = vpop.eup %2238  ;;  %v1194_v42 = vadd.f32 1.0, %v2237_v4  ;;  %2264 = vrcp.f32 %v1132_v35  ;;  %v3578_v37 = vadd.f32 1.0, %v3538_v19  ;;  %v3581_v0 = vadd.f32 1.0, %v3543_v31  ;;  %v4701_v35 = vld [vmem:[#allocation55_spill] sm:$0xff] }
  0xf7   :  { %v2241_v49 = vpop.eup %2240  ;;  %v1195_v16 = vadd.f32 1.0, %v2239_v1  ;;  %2266 = vrcp.f32 %v1133_v48  ;;  %v3584_v36 = vadd.f32 1.0, %v3554_v28  ;;  %v3587_v13 = vadd.f32 1.0, %v3559_v55  ;;  %v4702_v48 = vld [vmem:[#allocation56_spill] sm:$0xff] }
  0xf8   :  { %v2243_v30 = vpop.eup %2242  ;;  %v1196_v33 = vadd.f32 1.0, %v2241_v49  ;;  %2268 = vrcp.f32 %v1194_v42  ;;  %v3590_v23 = vadd.f32 1.0, %v3564_v51  ;;  %v3593_v10 = vadd.f32 1.0, %v3569_v53 }
  0xf9   :  { %v2245_v24 = vpop.eup %2244  ;;  %v1197_v12 = vadd.f32 1.0, %v2243_v30  ;;  %2270 = vrcp.f32 %v1195_v16  ;;  %v626_v62 = vadd.f32 %v554_v15, %v4695_v40  ;;  %v627_v3 = vadd.f32 %v554_v15, %v4696_v43 }
  0xfa   :  { %v2247_v61 = vpop.eup %2246  ;;  %2272 = vrcp.f32 %v1196_v33  ;;  %v1126_v52 = vadd.f32 1.0, %v2245_v24  ;;  %v628_v58 = vadd.f32 %v554_v15, %v4697_v45  ;;  %v629_v54 = vadd.f32 %v554_v15, %v4698_v5 }
  0xfb   :  { %v2249_v2 = vpop.eup %2248  ;;  %2274 = vrcp.f32 %v1197_v12  ;;  %v1127_v44 = vadd.f32 1.0, %v2247_v61  ;;  %v690_v63 = vadd.f32 %v554_v15, %v4699_v50  ;;  %v691_v8 = vadd.f32 %v554_v15, %v4700_v9  ;;  %v4704_v9 = vld [vmem:[#allocation10_spill] sm:$0xff] }
  0xfc   :  { %v2251_v11 = vpop.eup %2250  ;;  %v1128_v26 = vadd.f32 1.0, %v2249_v2  ;;  %2276 = vrcp.f32 %v1126_v52  ;;  %v692_v4 = vadd.f32 %v554_v15, %v4701_v35  ;;  %v693_v1 = vadd.f32 %v554_v15, %v4702_v48  ;;  %v549_v52 = vpop.permute.xlu0 %548 }
  0xfd   :  { %v2253_v47 = vpop.eup %2252  ;;  %v1129_v32 = vadd.f32 1.0, %v2251_v11  ;;  %2278 = vrcp.f32 %v1127_v44  ;;  %v2050_v16 = vmul.f32 -1.442695, %v626_v62  ;;  %v2051_v30 = vmul.f32 -1.442695, %v627_v3  ;;  %v4703_v3 = vld [vmem:[#allocation9_spill] sm:$0xff] }
  0xfe   :  { %v2255_v42 = vpop.eup %2254  ;;  %v1190_v49 = vadd.f32 1.0, %v2253_v47  ;;  %2280 = vrcp.f32 %v1128_v26  ;;  %v2052_v12 = vmul.f32 -1.442695, %v628_v58  ;;  %v2053_v61 = vmul.f32 -1.442695, %v629_v54 }
  0xff   :  { %v2257_v33 = vpop.eup %2256  ;;  %v1191_v24 = vadd.f32 1.0, %v2255_v42  ;;  %2282 = vrcp.f32 %v1129_v32  ;;  %v2114_v2 = vmul.f32 -1.442695, %v690_v63  ;;  %v2115_v44 = vmul.f32 -1.442695, %v691_v8  ;;  %v4705_v32 = vld [vmem:[#allocation11_spill] sm:$0xff] }
 0x100   :  { %v2259_v40 = vpop.eup %2258  ;;  %v1192_v43 = vadd.f32 1.0, %v2257_v33  ;;  %2284 = vrcp.f32 %v1190_v49  ;;  %v2116_v15 = vmul.f32 -1.442695, %v692_v4  ;;  %v2117_v11 = vmul.f32 -1.442695, %v693_v1  ;;  %v4706_v8 = vld [vmem:[#allocation12_spill] sm:$0xff] }
 0x101   :  { %v2261_v45 = vpop.eup %2260  ;;  %v1193_v5 = vadd.f32 1.0, %v2259_v40  ;;  %2286 = vrcp.f32 %v1191_v24  ;;  %v622_v26 = vadd.f32 %v549_v52, %v4703_v3  ;;  %v623_v58 = vadd.f32 %v549_v52, %v4704_v9 }
 0x102   :  { %v2263_v50 = vpop.eup %2262  ;;  %v1642_v62 = vmul.f32 %v2261_v45, %v3484_v39  ;;  %2288 = vrcp.f32 %v1192_v43  ;;  %v624_v63 = vadd.f32 %v549_v52, %v4705_v32  ;;  %v625_v35 = vadd.f32 %v549_v52, %v4706_v8  ;;  %v4707_v39 = vld [vmem:[#allocation57_spill] sm:$0xff]  ;;  %v3643_v32 = vld [vmem:[%s4574_s0 + $0xa8] sm:$0xff] }
 0x103   :  { %v2265_v54 = vpop.eup %2264  ;;  %v1643_v47 = vmul.f32 %v2263_v50, %v3499_v21  ;;  %2290 = vrcp.f32 %v1193_v5  ;;  %v686_v42 = vadd.f32 %v549_v52, %v4707_v39  ;;  %v4708_v21 = vld [vmem:[#allocation58_spill] sm:$0xff] }
 0x104   :  { %v2267_v48 = vpop.eup %2266  ;;  %v1644_v4 = vmul.f32 %v2265_v54, %v3513_v46  ;;  %v1770_v1 = vadd.f32 %v1642_v62, %v3460_v14  ;;  %2292 = vpow2.f32 %v2050_v16  ;;  %v687_v40 = vadd.f32 %v549_v52, %v4708_v21  ;;  %v4709_v46 = vld [vmem:[#allocation59_spill] sm:$0xff] }
 0x105   :  { %v2269_v49 = vpop.eup %2268  ;;  %v1645_v33 = vmul.f32 %v2267_v48, %v3517_v56  ;;  %v1771_v24 = vadd.f32 %v1643_v47, %v3467_v60  ;;  %2294 = vpow2.f32 %v2051_v30  ;;  %v688_v14 = vadd.f32 %v549_v52, %v4709_v46  ;;  %v4710_v60 = vld [vmem:[#allocation60_spill] sm:$0xff]  ;;  %v3698_v46 = vld [vmem:[%s4574_s0 + $0x80] sm:$0xff] }
 0x106   :  { %v2271_v43 = vpop.eup %2270  ;;  %v1706_v45 = vmul.f32 %v2269_v49, %v3530_v7  ;;  %v1772_v5 = vadd.f32 %v1644_v4, %v3474_v57  ;;  %1898 = vst [vmem:[#allocation2 + $0x60] sm:$0xff] %v1770_v1  ;;  %2296 = vpow2.f32 %v2052_v12  ;;  %v689_v56 = vadd.f32 %v549_v52, %v4710_v60  ;;  %v3714_v60 = vld [vmem:[%s4574_s0 + $0x90] sm:$0xff] }
 0x107   :  { %v2273_v16 = vpop.eup %2272  ;;  %v1707_v50 = vmul.f32 %v2271_v43, %v3533_v29  ;;  %v1773_v62 = vadd.f32 %v1645_v33, %v3481_v41  ;;  %1899 = vst [vmem:[#allocation2 + $0x68] sm:$0xff] %v1771_v24  ;;  %2298 = vpow2.f32 %v2053_v61  ;;  %v2046_v57 = vmul.f32 -1.442695, %v622_v26  ;;  %v3686_v24 = vld [vmem:[%s4574_s0 + $0x2b8] sm:$0xff] }
 0x108   :  { %v2275_v30 = vpop.eup %2274  ;;  %v1708_v3 = vmul.f32 %v2273_v16, %v3546_v17  ;;  %v1834_v7 = vadd.f32 %v1706_v45, %v3491_v25  ;;  %1900 = vst [vmem:[#allocation2 + $0x70] sm:$0xff] %v1772_v5  ;;  %2300 = vpow2.f32 %v2114_v2  ;;  %v2047_v41 = vmul.f32 -1.442695, %v623_v58 }
 0x109   :  { %v2277_v12 = vpop.eup %2276  ;;  %v1709_v9 = vmul.f32 %v2275_v30, %v3549_v22  ;;  %v1835_v54 = vadd.f32 %v1707_v50, %v3496_v27  ;;  %1901 = vst [vmem:[#allocation2 + $0x78] sm:$0xff] %v1773_v62  ;;  %2302 = vpow2.f32 %v2115_v44  ;;  %v2048_v17 = vmul.f32 -1.442695, %v624_v63 }
 0x10a   :  { %v2279_v29 = vpop.eup %2278  ;;  %v1836_v61 = vadd.f32 %v1708_v3, %v3505_v18  ;;  %1962 = vst [vmem:[#allocation2 + $0x260] sm:$0xff] %v1834_v7  ;;  %v1638_v52 = vmul.f32 %v2277_v12, %v3572_v38  ;;  %2304 = vpow2.f32 %v2116_v15  ;;  %v2049_v22 = vmul.f32 -1.442695, %v625_v35  ;;  %v3730_v12 = vld [vmem:[%s4574_s0 + $0x280] sm:$0xff] }
 0x10b   :  { %v2281_v25 = vpop.eup %2280  ;;  %v1837_v2 = vadd.f32 %v1709_v9, %v3510_v20  ;;  %1963 = vst [vmem:[#allocation2 + $0x268] sm:$0xff] %v1835_v54  ;;  %v1639_v26 = vmul.f32 %v2279_v29, %v3575_v59  ;;  %2306 = vpow2.f32 %v2117_v11  ;;  %v2110_v18 = vmul.f32 -1.442695, %v686_v42  ;;  %v3636_v20 = vld [vmem:[%s4574_s0 + $0xa0] sm:$0xff]  ;;  %v3735_v9 = vld [vmem:[%s4574_s0 + $0x288] sm:$0xff]  ;;  %v3740_v29 = vld [vmem:[%s4574_s0 + $0x290] sm:$0xff] }
 0x10c   :  { %v2283_v27 = vpop.eup %2282  ;;  %1964 = vst [vmem:[#allocation2 + $0x270] sm:$0xff] %v1836_v61  ;;  %v1640_v44 = vmul.f32 %v2281_v25, %v3578_v37  ;;  %v1766_v58 = vadd.f32 %v1638_v52, %v3522_v6  ;;  %2308 = vpow2.f32 %v2046_v57  ;;  %v2111_v59 = vmul.f32 -1.442695, %v687_v40  ;;  %v3745_v61 = vld [vmem:[%s4574_s0 + $0x298] sm:$0xff] }
 0x10d   :  { %v2285_v47 = vpop.eup %2284  ;;  %1965 = vst [vmem:[#allocation2 + $0x278] sm:$0xff] %v1837_v2  ;;  %v1641_v38 = vmul.f32 %v2283_v27, %v3581_v0  ;;  %v1767_v15 = vadd.f32 %v1639_v26, %v3527_v34  ;;  %2310 = vpow2.f32 %v2047_v41  ;;  %v2112_v34 = vmul.f32 -1.442695, %v688_v14  ;;  %v3703_v14 = vld [vmem:[%s4574_s0 + $0x88] sm:$0xff]  ;;  %v564_v27 = vpop.permute.xlu1 %563 }
 0x10e   :  { %v2287_v11 = vpop.eup %2286  ;;  %v1702_v37 = vmul.f32 %v2285_v47, %v3584_v36  ;;  %v1768_v6 = vadd.f32 %v1640_v44, %v3538_v19  ;;  %1894 = vst [vmem:[#allocation2 + $0x40] sm:$0xff] %v1766_v58  ;;  %2312 = vpow2.f32 %v2048_v17  ;;  %v3650_v36 = vld [vmem:[%s4574_s0 + $0xb0] sm:$0xff]  ;;  %v2113_v19 = vmul.f32 -1.442695, %v689_v56  ;;  %v3719_v56 = vld [vmem:[%s4574_s0 + $0x98] sm:$0xff] }
 0x10f   :  { %v2289_v0 = vpop.eup %2288  ;;  %v1703_v63 = vmul.f32 %v2287_v11, %v3587_v13  ;;  %v1769_v8 = vadd.f32 %v1641_v38, %v3543_v31  ;;  %1895 = vst [vmem:[#allocation2 + $0x48] sm:$0xff] %v1767_v15  ;;  %2314 = vpow2.f32 %v2049_v22  ;;  %v3657_v13 = vld [vmem:[%s4574_s0 + $0xb8] sm:$0xff]  ;;  %v3660_v31 = vadd.f32 1.0, %v3636_v20 }
 0x110   :  { %v2291_v35 = vpop.eup %2290  ;;  %v1704_v48 = vmul.f32 %v2289_v0, %v3590_v23  ;;  %v1830_v4 = vadd.f32 %v1702_v37, %v3554_v28  ;;  %1896 = vst [vmem:[#allocation2 + $0x50] sm:$0xff] %v1768_v6  ;;  %2316 = vpow2.f32 %v2110_v18  ;;  %v3667_v28 = vld [vmem:[%s4574_s0 + $0x2a0] sm:$0xff]  ;;  %v3672_v23 = vld [vmem:[%s4574_s0 + $0x2a8] sm:$0xff]  ;;  %v3675_v49 = vadd.f32 1.0, %v3643_v32 }
 0x111   :  { %v2293_v1 = vpop.eup %2292  ;;  %v1705_v39 = vmul.f32 %v2291_v35, %v3593_v10  ;;  %v1831_v42 = vadd.f32 %v1703_v63, %v3559_v55  ;;  %1897 = vst [vmem:[#allocation2 + $0x58] sm:$0xff] %v1769_v8  ;;  %2318 = vpow2.f32 %v2111_v59  ;;  %v3681_v55 = vld [vmem:[%s4574_s0 + $0x2b0] sm:$0xff]  ;;  %v3689_v40 = vadd.f32 1.0, %v3650_v36  ;;  %v4712_v63 = vld [vmem:[#allocation14_spill] sm:$0xff] }
 0x112   :  { %v2295_v33 = vpop.eup %2294  ;;  %v1832_v10 = vadd.f32 %v1704_v48, %v3564_v51  ;;  %1958 = vst [vmem:[#allocation2 + $0x240] sm:$0xff] %v1830_v4  ;;  %v1138_v21 = vadd.f32 1.0, %v2293_v1  ;;  %2320 = vpow2.f32 %v2112_v34  ;;  %v3693_v5 = vadd.f32 1.0, %v3657_v13  ;;  %v4711_v34 = vld [vmem:[#allocation13_spill] sm:$0xff]  ;;  %v4713_v48 = vld [vmem:[#allocation15_spill] sm:$0xff]  ;;  %v4714_v1 = vld [vmem:[#allocation16_spill] sm:$0xff] }
 0x113   :  { %v2297_v43 = vpop.eup %2296  ;;  %v1833_v45 = vadd.f32 %v1705_v39, %v3569_v53  ;;  %1959 = vst [vmem:[#allocation2 + $0x248] sm:$0xff] %v1831_v42  ;;  %v1139_v51 = vadd.f32 1.0, %v2295_v33  ;;  %2322 = vpow2.f32 %v2113_v19  ;;  %v3706_v53 = vadd.f32 1.0, %v3667_v28 }
 0x114   :  { %v2299_v16 = vpop.eup %2298  ;;  %1960 = vst [vmem:[#allocation2 + $0x250] sm:$0xff] %v1832_v10  ;;  %v1140_v50 = vadd.f32 1.0, %v2297_v43  ;;  %2324 = vrcp.f32 %v1138_v21  ;;  %v3709_v62 = vadd.f32 1.0, %v3672_v23  ;;  %v3722_v7 = vadd.f32 1.0, %v3681_v55  ;;  %v4715_v10 = vld [vmem:[#allocation61_spill] sm:$0xff]  ;;  %v4716_v43 = vld [vmem:[#allocation62_spill] sm:$0xff] }
 0x115   :  { %v2301_v30 = vpop.eup %2300  ;;  %1961 = vst [vmem:[#allocation2 + $0x258] sm:$0xff] %v1833_v45  ;;  %v1141_v3 = vadd.f32 1.0, %v2299_v16  ;;  %2326 = vrcp.f32 %v1139_v51  ;;  %v3725_v57 = vadd.f32 1.0, %v3686_v24  ;;  %v3748_v52 = vadd.f32 1.0, %v3698_v46 }
 0x116   :  { %v2303_v54 = vpop.eup %2302  ;;  %v1202_v41 = vadd.f32 1.0, %v2301_v30  ;;  %2328 = vrcp.f32 %v1140_v50  ;;  %v3751_v17 = vadd.f32 1.0, %v3703_v14  ;;  %v3754_v26 = vadd.f32 1.0, %v3714_v60  ;;  %v4717_v50 = vld [vmem:[#allocation63_spill] sm:$0xff] }
 0x117   :  { %v2305_v25 = vpop.eup %2304  ;;  %v1203_v2 = vadd.f32 1.0, %v2303_v54  ;;  %2330 = vrcp.f32 %v1141_v3  ;;  %v3757_v22 = vadd.f32 1.0, %v3719_v56  ;;  %v3760_v18 = vadd.f32 1.0, %v3730_v12  ;;  %v4718_v3 = vld [vmem:[#allocation64_spill] sm:$0xff] }
 0x118   :  { %v2307_v44 = vpop.eup %2306  ;;  %v1204_v58 = vadd.f32 1.0, %v2305_v25  ;;  %2332 = vrcp.f32 %v1202_v41  ;;  %v3763_v47 = vadd.f32 1.0, %v3735_v9  ;;  %v3766_v59 = vadd.f32 1.0, %v3740_v29 }
 0x119   :  { %v2309_v38 = vpop.eup %2308  ;;  %v1205_v15 = vadd.f32 1.0, %v2307_v44  ;;  %2334 = vrcp.f32 %v1203_v2  ;;  %v3769_v11 = vadd.f32 1.0, %v3745_v61  ;;  %v634_v0 = vadd.f32 %v564_v27, %v4711_v34 }
 0x11a   :  { %v2311_v37 = vpop.eup %2310  ;;  %2336 = vrcp.f32 %v1204_v58  ;;  %v1134_v6 = vadd.f32 1.0, %v2309_v38  ;;  %v635_v8 = vadd.f32 %v564_v27, %v4712_v63  ;;  %v636_v4 = vadd.f32 %v564_v27, %v4713_v48 }
 0x11b   :  { %v2313_v19 = vpop.eup %2312  ;;  %2338 = vrcp.f32 %v1205_v15  ;;  %v1135_v35 = vadd.f32 1.0, %v2311_v37  ;;  %v637_v39 = vadd.f32 %v564_v27, %v4714_v1  ;;  %v698_v21 = vadd.f32 %v564_v27, %v4715_v10 }
 0x11c   :  { %v2315_v42 = vpop.eup %2314  ;;  %v1136_v33 = vadd.f32 1.0, %v2313_v19  ;;  %2340 = vrcp.f32 %v1134_v6  ;;  %v699_v45 = vadd.f32 %v564_v27, %v4716_v43  ;;  %v700_v30 = vadd.f32 %v564_v27, %v4717_v50  ;;  %v559_v6 = vpop.permute.xlu0 %558  ;;  %v4720_v43 = vld [vmem:[#allocation18_spill] sm:$0xff] }
 0x11d   :  { %v2317_v51 = vpop.eup %2316  ;;  %v1137_v16 = vadd.f32 1.0, %v2315_v42  ;;  %2342 = vrcp.f32 %v1135_v35  ;;  %v701_v54 = vadd.f32 %v564_v27, %v4718_v3  ;;  %v2058_v2 = vmul.f32 -1.442695, %v634_v0 }
 0x11e   :  { %v2319_v41 = vpop.eup %2318  ;;  %v1198_v25 = vadd.f32 1.0, %v2317_v51  ;;  %2344 = vrcp.f32 %v1136_v33  ;;  %v2059_v44 = vmul.f32 -1.442695, %v635_v8  ;;  %v2060_v15 = vmul.f32 -1.442695, %v636_v4  ;;  %v4719_v8 = vld [vmem:[#allocation17_spill] sm:$0xff] }
 0x11f   :  { %v2321_v58 = vpop.eup %2320  ;;  %v1199_v38 = vadd.f32 1.0, %v2319_v41  ;;  %2346 = vrcp.f32 %v1137_v16  ;;  %v2061_v37 = vmul.f32 -1.442695, %v637_v39  ;;  %v2122_v19 = vmul.f32 -1.442695, %v698_v21  ;;  %v4721_v16 = vld [vmem:[#allocation19_spill] sm:$0xff] }
 0x120   :  { %v2323_v34 = vpop.eup %2322  ;;  %v1200_v63 = vadd.f32 1.0, %v2321_v58  ;;  %2348 = vrcp.f32 %v1198_v25  ;;  %v2123_v35 = vmul.f32 -1.442695, %v699_v45  ;;  %v2124_v27 = vmul.f32 -1.442695, %v700_v30  ;;  %v4722_v45 = vld [vmem:[#allocation20_spill] sm:$0xff] }
 0x121   :  { %v2325_v48 = vpop.eup %2324  ;;  %v1201_v1 = vadd.f32 1.0, %v2323_v34  ;;  %2350 = vrcp.f32 %v1199_v38  ;;  %v2125_v42 = vmul.f32 -1.442695, %v701_v54  ;;  %v630_v33 = vadd.f32 %v559_v6, %v4719_v8 }
 0x122   :  { %v2327_v10 = vpop.eup %2326  ;;  %v1650_v0 = vmul.f32 %v2325_v48, %v3660_v31  ;;  %2352 = vrcp.f32 %v1200_v63  ;;  %v631_v4 = vadd.f32 %v559_v6, %v4720_v43  ;;  %v632_v21 = vadd.f32 %v559_v6, %v4721_v16  ;;  %v4723_v31 = vld [vmem:[#allocation65_spill] sm:$0xff]  ;;  %v3819_v16 = vld [vmem:[%s4574_s0 + $0xe8] sm:$0xff] }
 0x123   :  { %v2329_v39 = vpop.eup %2328  ;;  %v1651_v51 = vmul.f32 %v2327_v10, %v3675_v49  ;;  %2354 = vrcp.f32 %v1201_v1  ;;  %v633_v50 = vadd.f32 %v559_v6, %v4722_v45  ;;  %v694_v41 = vadd.f32 %v559_v6, %v4723_v31  ;;  %v4724_v49 = vld [vmem:[#allocation66_spill] sm:$0xff] }
 0x124   :  { %v2331_v3 = vpop.eup %2330  ;;  %v1652_v30 = vmul.f32 %v2329_v39, %v3689_v40  ;;  %v1778_v54 = vadd.f32 %v1650_v0, %v3636_v20  ;;  %2356 = vpow2.f32 %v2058_v2  ;;  %v695_v34 = vadd.f32 %v559_v6, %v4724_v49  ;;  %v4725_v40 = vld [vmem:[#allocation67_spill] sm:$0xff] }
 0x125   :  { %v2333_v25 = vpop.eup %2332  ;;  %v1653_v58 = vmul.f32 %v2331_v3, %v3693_v5  ;;  %v1779_v38 = vadd.f32 %v1651_v51, %v3643_v32  ;;  %2358 = vpow2.f32 %v2059_v44  ;;  %v696_v20 = vadd.f32 %v559_v6, %v4725_v40  ;;  %v4726_v32 = vld [vmem:[#allocation68_spill] sm:$0xff]  ;;  %v3874_v40 = vld [vmem:[%s4574_s0 + $0xc0] sm:$0xff] }
 0x126   :  { %v2335_v63 = vpop.eup %2334  ;;  %v1714_v48 = vmul.f32 %v2333_v25, %v3706_v53  ;;  %v1780_v1 = vadd.f32 %v1652_v30, %v3650_v36  ;;  %1906 = vst [vmem:[#allocation2 + $0xa0] sm:$0xff] %v1778_v54  ;;  %2360 = vpow2.f32 %v2060_v15  ;;  %v697_v5 = vadd.f32 %v559_v6, %v4726_v32  ;;  %v3890_v32 = vld [vmem:[%s4574_s0 + $0xd0] sm:$0xff] }
 0x127   :  { %v2337_v2 = vpop.eup %2336  ;;  %v1715_v10 = vmul.f32 %v2335_v63, %v3709_v62  ;;  %v1781_v0 = vadd.f32 %v1653_v58, %v3657_v13  ;;  %1907 = vst [vmem:[#allocation2 + $0xa8] sm:$0xff] %v1779_v38  ;;  %2362 = vpow2.f32 %v2061_v37  ;;  %v2054_v36 = vmul.f32 -1.442695, %v630_v33  ;;  %v3862_v38 = vld [vmem:[%s4574_s0 + $0x2f8] sm:$0xff] }
 0x128   :  { %v2339_v44 = vpop.eup %2338  ;;  %v1716_v8 = vmul.f32 %v2337_v2, %v3722_v7  ;;  %v1842_v53 = vadd.f32 %v1714_v48, %v3667_v28  ;;  %1908 = vst [vmem:[#allocation2 + $0xb0] sm:$0xff] %v1780_v1  ;;  %2364 = vpow2.f32 %v2122_v19  ;;  %v2055_v13 = vmul.f32 -1.442695, %v631_v4 }
 0x129   :  { %v2341_v15 = vpop.eup %2340  ;;  %v1717_v43 = vmul.f32 %v2339_v44, %v3725_v57  ;;  %v1843_v39 = vadd.f32 %v1715_v10, %v3672_v23  ;;  %1909 = vst [vmem:[#allocation2 + $0xb8] sm:$0xff] %v1781_v0  ;;  %2366 = vpow2.f32 %v2123_v35  ;;  %v2056_v7 = vmul.f32 -1.442695, %v632_v21 }
 0x12a   :  { %v2343_v62 = vpop.eup %2342  ;;  %v1844_v37 = vadd.f32 %v1716_v8, %v3681_v55  ;;  %1970 = vst [vmem:[#allocation2 + $0x2a0] sm:$0xff] %v1842_v53  ;;  %v1646_v6 = vmul.f32 %v2341_v15, %v3748_v52  ;;  %2368 = vpow2.f32 %v2124_v27  ;;  %v2057_v57 = vmul.f32 -1.442695, %v633_v50  ;;  %v3906_v15 = vld [vmem:[%s4574_s0 + $0x2c0] sm:$0xff] }
 0x12b   :  { %v2345_v28 = vpop.eup %2344  ;;  %v1845_v19 = vadd.f32 %v1717_v43, %v3686_v24  ;;  %1971 = vst [vmem:[#allocation2 + $0x2a8] sm:$0xff] %v1843_v39  ;;  %v1647_v33 = vmul.f32 %v2343_v62, %v3751_v17  ;;  %2370 = vpow2.f32 %v2125_v42  ;;  %v2118_v55 = vmul.f32 -1.442695, %v694_v41  ;;  %v3812_v24 = vld [vmem:[%s4574_s0 + $0xe0] sm:$0xff]  ;;  %v3911_v43 = vld [vmem:[%s4574_s0 + $0x2c8] sm:$0xff]  ;;  %v3916_v62 = vld [vmem:[%s4574_s0 + $0x2d0] sm:$0xff] }
 0x12c   :  { %v2347_v23 = vpop.eup %2346  ;;  %1972 = vst [vmem:[#allocation2 + $0x2b0] sm:$0xff] %v1844_v37  ;;  %v1648_v35 = vmul.f32 %v2345_v28, %v3754_v26  ;;  %v1774_v4 = vadd.f32 %v1646_v6, %v3698_v46  ;;  %2372 = vpow2.f32 %v2054_v36  ;;  %v2119_v17 = vmul.f32 -1.442695, %v695_v34  ;;  %v3921_v37 = vld [vmem:[%s4574_s0 + $0x2d8] sm:$0xff] }
 0x12d   :  { %v2349_v51 = vpop.eup %2348  ;;  %1973 = vst [vmem:[#allocation2 + $0x2b8] sm:$0xff] %v1845_v19  ;;  %v1649_v52 = vmul.f32 %v2347_v23, %v3757_v22  ;;  %v1775_v27 = vadd.f32 %v1647_v33, %v3703_v14  ;;  %2374 = vpow2.f32 %v2055_v13  ;;  %v2120_v14 = vmul.f32 -1.442695, %v696_v20  ;;  %v3879_v20 = vld [vmem:[%s4574_s0 + $0xc8] sm:$0xff]  ;;  %v574_v23 = vpop.permute.xlu1 %573 }
 0x12e   :  { %v2351_v42 = vpop.eup %2350  ;;  %v1710_v26 = vmul.f32 %v2349_v51, %v3760_v18  ;;  %v1776_v46 = vadd.f32 %v1648_v35, %v3714_v60  ;;  %1902 = vst [vmem:[#allocation2 + $0x80] sm:$0xff] %v1774_v4  ;;  %2376 = vpow2.f32 %v2056_v7  ;;  %v3826_v18 = vld [vmem:[%s4574_s0 + $0xf0] sm:$0xff]  ;;  %v2121_v60 = vmul.f32 -1.442695, %v697_v5  ;;  %v3895_v5 = vld [vmem:[%s4574_s0 + $0xd8] sm:$0xff] }
 0x12f   :  { %v2353_v22 = vpop.eup %2352  ;;  %v1711_v21 = vmul.f32 %v2351_v42, %v3763_v47  ;;  %v1777_v45 = vadd.f32 %v1649_v52, %v3719_v56  ;;  %1903 = vst [vmem:[#allocation2 + $0x88] sm:$0xff] %v1775_v27  ;;  %2378 = vpow2.f32 %v2057_v57  ;;  %v3833_v47 = vld [vmem:[%s4574_s0 + $0xf8] sm:$0xff]  ;;  %v3836_v56 = vadd.f32 1.0, %v3812_v24 }
 0x130   :  { %v2355_v50 = vpop.eup %2354  ;;  %v1712_v3 = vmul.f32 %v2353_v22, %v3766_v59  ;;  %v1838_v30 = vadd.f32 %v1710_v26, %v3730_v12  ;;  %1904 = vst [vmem:[#allocation2 + $0x90] sm:$0xff] %v1776_v46  ;;  %2380 = vpow2.f32 %v2118_v55  ;;  %v3843_v12 = vld [vmem:[%s4574_s0 + $0x2e0] sm:$0xff]  ;;  %v3848_v59 = vld [vmem:[%s4574_s0 + $0x2e8] sm:$0xff]  ;;  %v3851_v25 = vadd.f32 1.0, %v3819_v16 }
 0x131   :  { %v2357_v54 = vpop.eup %2356  ;;  %v1713_v31 = vmul.f32 %v2355_v50, %v3769_v11  ;;  %v1839_v41 = vadd.f32 %v1711_v21, %v3735_v9  ;;  %1905 = vst [vmem:[#allocation2 + $0x98] sm:$0xff] %v1777_v45  ;;  %2382 = vpow2.f32 %v2119_v17  ;;  %v3857_v9 = vld [vmem:[%s4574_s0 + $0x2f0] sm:$0xff]  ;;  %v3865_v34 = vadd.f32 1.0, %v3826_v18  ;;  %v4728_v21 = vld [vmem:[#allocation22_spill] sm:$0xff] }
 0x132   :  { %v2359_v58 = vpop.eup %2358  ;;  %v1840_v11 = vadd.f32 %v1712_v3, %v3740_v29  ;;  %1966 = vst [vmem:[#allocation2 + $0x280] sm:$0xff] %v1838_v30  ;;  %v1146_v49 = vadd.f32 1.0, %v2357_v54  ;;  %2384 = vpow2.f32 %v2120_v14  ;;  %v3869_v1 = vadd.f32 1.0, %v3833_v47  ;;  %v4727_v14 = vld [vmem:[#allocation21_spill] sm:$0xff]  ;;  %v4729_v3 = vld [vmem:[#allocation23_spill] sm:$0xff]  ;;  %v4730_v54 = vld [vmem:[#allocation24_spill] sm:$0xff] }
 0x133   :  { %v2361_v63 = vpop.eup %2360  ;;  %v1841_v48 = vadd.f32 %v1713_v31, %v3745_v61  ;;  %1967 = vst [vmem:[#allocation2 + $0x288] sm:$0xff] %v1839_v41  ;;  %v1147_v29 = vadd.f32 1.0, %v2359_v58  ;;  %2386 = vpow2.f32 %v2121_v60  ;;  %v3882_v61 = vadd.f32 1.0, %v3843_v12 }
 0x134   :  { %v2363_v2 = vpop.eup %2362  ;;  %1968 = vst [vmem:[#allocation2 + $0x290] sm:$0xff] %v1840_v11  ;;  %v1148_v10 = vadd.f32 1.0, %v2361_v63  ;;  %2388 = vrcp.f32 %v1146_v49  ;;  %v3885_v0 = vadd.f32 1.0, %v3848_v59  ;;  %v3898_v53 = vadd.f32 1.0, %v3857_v9  ;;  %v4731_v11 = vld [vmem:[#allocation69_spill] sm:$0xff]  ;;  %v4732_v63 = vld [vmem:[#allocation70_spill] sm:$0xff] }
 0x135   :  { %v2365_v44 = vpop.eup %2364  ;;  %1969 = vst [vmem:[#allocation2 + $0x298] sm:$0xff] %v1841_v48  ;;  %v1149_v8 = vadd.f32 1.0, %v2363_v2  ;;  %2390 = vrcp.f32 %v1147_v29  ;;  %v3901_v36 = vadd.f32 1.0, %v3862_v38  ;;  %v3924_v6 = vadd.f32 1.0, %v3874_v40 }
 0x136   :  { %v2367_v39 = vpop.eup %2366  ;;  %v1210_v13 = vadd.f32 1.0, %v2365_v44  ;;  %2392 = vrcp.f32 %v1148_v10  ;;  %v3927_v7 = vadd.f32 1.0, %v3879_v20  ;;  %v3930_v33 = vadd.f32 1.0, %v3890_v32  ;;  %v4733_v10 = vld [vmem:[#allocation71_spill] sm:$0xff] }
 0x137   :  { %v2369_v28 = vpop.eup %2368  ;;  %v1211_v19 = vadd.f32 1.0, %v2367_v39  ;;  %2394 = vrcp.f32 %v1149_v8  ;;  %v3933_v57 = vadd.f32 1.0, %v3895_v5  ;;  %v3936_v55 = vadd.f32 1.0, %v3906_v15  ;;  %v4734_v8 = vld [vmem:[#allocation72_spill] sm:$0xff] }
 0x138   :  { %v2371_v35 = vpop.eup %2370  ;;  %v1212_v4 = vadd.f32 1.0, %v2369_v28  ;;  %2396 = vrcp.f32 %v1210_v13  ;;  %v3939_v51 = vadd.f32 1.0, %v3911_v43  ;;  %v3942_v17 = vadd.f32 1.0, %v3916_v62 }
 0x139   :  { %v2373_v52 = vpop.eup %2372  ;;  %v1213_v27 = vadd.f32 1.0, %v2371_v35  ;;  %2398 = vrcp.f32 %v1211_v19  ;;  %v3945_v42 = vadd.f32 1.0, %v3921_v37  ;;  %v642_v22 = vadd.f32 %v574_v23, %v4727_v14 }
 0x13a   :  { %v2375_v26 = vpop.eup %2374  ;;  %2400 = vrcp.f32 %v1212_v4  ;;  %v1142_v46 = vadd.f32 1.0, %v2373_v52  ;;  %v643_v45 = vadd.f32 %v574_v23, %v4728_v21  ;;  %v644_v30 = vadd.f32 %v574_v23, %v4729_v3 }
 0x13b   :  { %v2377_v60 = vpop.eup %2376  ;;  %2402 = vrcp.f32 %v1213_v27  ;;  %v1143_v50 = vadd.f32 1.0, %v2375_v26  ;;  %v645_v31 = vadd.f32 %v574_v23, %v4730_v54  ;;  %v706_v49 = vadd.f32 %v574_v23, %v4731_v11 }
 0x13c   :  { %v2379_v41 = vpop.eup %2378  ;;  %v1144_v58 = vadd.f32 1.0, %v2377_v60  ;;  %2404 = vrcp.f32 %v1142_v46  ;;  %v707_v48 = vadd.f32 %v574_v23, %v4732_v63  ;;  %v708_v44 = vadd.f32 %v574_v23, %v4733_v10  ;;  %v569_v46 = vpop.permute.xlu0 %568  ;;  %v4736_v63 = vld [vmem:[#allocation26_spill] sm:$0xff] }
 0x13d   :  { %v2381_v29 = vpop.eup %2380  ;;  %v1145_v2 = vadd.f32 1.0, %v2379_v41  ;;  %2406 = vrcp.f32 %v1143_v50  ;;  %v709_v39 = vadd.f32 %v574_v23, %v4734_v8  ;;  %v2066_v19 = vmul.f32 -1.442695, %v642_v22 }
 0x13e   :  { %v2383_v13 = vpop.eup %2382  ;;  %v1206_v28 = vadd.f32 1.0, %v2381_v29  ;;  %2408 = vrcp.f32 %v1144_v58  ;;  %v2067_v35 = vmul.f32 -1.442695, %v643_v45  ;;  %v2068_v27 = vmul.f32 -1.442695, %v644_v30  ;;  %v4735_v45 = vld [vmem:[#allocation25_spill] sm:$0xff] }
 0x13f   :  { %v2385_v4 = vpop.eup %2384  ;;  %v1207_v52 = vadd.f32 1.0, %v2383_v13  ;;  %2410 = vrcp.f32 %v1145_v2  ;;  %v2069_v26 = vmul.f32 -1.442695, %v645_v31  ;;  %v2130_v60 = vmul.f32 -1.442695, %v706_v49  ;;  %v4737_v2 = vld [vmem:[#allocation27_spill] sm:$0xff] }
 0x140   :  { %v2387_v14 = vpop.eup %2386  ;;  %v1208_v21 = vadd.f32 1.0, %v2385_v4  ;;  %2412 = vrcp.f32 %v1206_v28  ;;  %v2131_v50 = vmul.f32 -1.442695, %v707_v48  ;;  %v2132_v23 = vmul.f32 -1.442695, %v708_v44  ;;  %v4738_v48 = vld [vmem:[#allocation28_spill] sm:$0xff] }
 0x141   :  { %v2389_v3 = vpop.eup %2388  ;;  %v1209_v54 = vadd.f32 1.0, %v2387_v14  ;;  %2414 = vrcp.f32 %v1207_v52  ;;  %v2133_v41 = vmul.f32 -1.442695, %v709_v39  ;;  %v638_v58 = vadd.f32 %v569_v46, %v4735_v45 }
 0x142   :  { %v2391_v11 = vpop.eup %2390  ;;  %v1658_v22 = vmul.f32 %v2389_v3, %v3836_v56  ;;  %2416 = vrcp.f32 %v1208_v21  ;;  %v639_v30 = vadd.f32 %v569_v46, %v4736_v63  ;;  %v640_v49 = vadd.f32 %v569_v46, %v4737_v2  ;;  %v4739_v56 = vld [vmem:[#allocation73_spill] sm:$0xff]  ;;  %v3995_v2 = vld [vmem:[%s4574_s0 + $0x128] sm:$0xff] }
 0x143   :  { %v2393_v31 = vpop.eup %2392  ;;  %v1659_v29 = vmul.f32 %v2391_v11, %v3851_v25  ;;  %2418 = vrcp.f32 %v1209_v54  ;;  %v641_v10 = vadd.f32 %v569_v46, %v4738_v48  ;;  %v702_v13 = vadd.f32 %v569_v46, %v4739_v56  ;;  %v4740_v25 = vld [vmem:[#allocation74_spill] sm:$0xff] }
 0x144   :  { %v2395_v8 = vpop.eup %2394  ;;  %v1660_v44 = vmul.f32 %v2393_v31, %v3865_v34  ;;  %v1786_v39 = vadd.f32 %v1658_v22, %v3812_v24  ;;  %2420 = vpow2.f32 %v2066_v19  ;;  %v703_v14 = vadd.f32 %v569_v46, %v4740_v25  ;;  %v4741_v34 = vld [vmem:[#allocation75_spill] sm:$0xff] }
 0x145   :  { %v2397_v28 = vpop.eup %2396  ;;  %v1661_v4 = vmul.f32 %v2395_v8, %v3869_v1  ;;  %v1787_v52 = vadd.f32 %v1659_v29, %v3819_v16  ;;  %2422 = vpow2.f32 %v2067_v35  ;;  %v704_v24 = vadd.f32 %v569_v46, %v4741_v34  ;;  %v4742_v16 = vld [vmem:[#allocation76_spill] sm:$0xff]  ;;  %v4050_v34 = vld [vmem:[%s4574_s0 + $0x100] sm:$0xff] }
 0x146   :  { %v2399_v21 = vpop.eup %2398  ;;  %v1722_v3 = vmul.f32 %v2397_v28, %v3882_v61  ;;  %v1788_v54 = vadd.f32 %v1660_v44, %v3826_v18  ;;  %1914 = vst [vmem:[#allocation2 + $0xe0] sm:$0xff] %v1786_v39  ;;  %2424 = vpow2.f32 %v2068_v27  ;;  %v705_v1 = vadd.f32 %v569_v46, %v4742_v16  ;;  %v4066_v16 = vld [vmem:[%s4574_s0 + $0x110] sm:$0xff] }
 0x147   :  { %v2401_v19 = vpop.eup %2400  ;;  %v1723_v11 = vmul.f32 %v2399_v21, %v3885_v0  ;;  %v1789_v22 = vadd.f32 %v1661_v4, %v3833_v47  ;;  %1915 = vst [vmem:[#allocation2 + $0xe8] sm:$0xff] %v1787_v52  ;;  %2426 = vpow2.f32 %v2069_v26  ;;  %v2062_v18 = vmul.f32 -1.442695, %v638_v58  ;;  %v4038_v52 = vld [vmem:[%s4574_s0 + $0x338] sm:$0xff] }
 0x148   :  { %v2403_v35 = vpop.eup %2402  ;;  %v1724_v45 = vmul.f32 %v2401_v19, %v3898_v53  ;;  %v1850_v61 = vadd.f32 %v1722_v3, %v3843_v12  ;;  %1916 = vst [vmem:[#allocation2 + $0xf0] sm:$0xff] %v1788_v54  ;;  %2428 = vpow2.f32 %v2130_v60  ;;  %v2063_v47 = vmul.f32 -1.442695, %v639_v30 }
 0x149   :  { %v2405_v27 = vpop.eup %2404  ;;  %v1725_v63 = vmul.f32 %v2403_v35, %v3901_v36  ;;  %v1851_v31 = vadd.f32 %v1723_v11, %v3848_v59  ;;  %1917 = vst [vmem:[#allocation2 + $0xf8] sm:$0xff] %v1789_v22  ;;  %2430 = vpow2.f32 %v2131_v50  ;;  %v2064_v53 = vmul.f32 -1.442695, %v640_v49 }
 0x14a   :  { %v2407_v0 = vpop.eup %2406  ;;  %v1852_v26 = vadd.f32 %v1724_v45, %v3857_v9  ;;  %1978 = vst [vmem:[#allocation2 + $0x2e0] sm:$0xff] %v1850_v61  ;;  %v1654_v46 = vmul.f32 %v2405_v27, %v3924_v6  ;;  %2432 = vpow2.f32 %v2132_v23  ;;  %v2065_v36 = vmul.f32 -1.442695, %v641_v10  ;;  %v4082_v27 = vld [vmem:[%s4574_s0 + $0x300] sm:$0xff] }
 0x14b   :  { %v2409_v12 = vpop.eup %2408  ;;  %v1853_v60 = vadd.f32 %v1725_v63, %v3862_v38  ;;  %1979 = vst [vmem:[#allocation2 + $0x2e8] sm:$0xff] %v1851_v31  ;;  %v1655_v58 = vmul.f32 %v2407_v0, %v3927_v7  ;;  %2434 = vpow2.f32 %v2133_v41  ;;  %v2126_v9 = vmul.f32 -1.442695, %v702_v13  ;;  %v3988_v38 = vld [vmem:[%s4574_s0 + $0x120] sm:$0xff]  ;;  %v4087_v63 = vld [vmem:[%s4574_s0 + $0x308] sm:$0xff]  ;;  %v4092_v0 = vld [vmem:[%s4574_s0 + $0x310] sm:$0xff] }
 0x14c   :  { %v2411_v59 = vpop.eup %2410  ;;  %1980 = vst [vmem:[#allocation2 + $0x2f0] sm:$0xff] %v1852_v26  ;;  %v1656_v50 = vmul.f32 %v2409_v12, %v3930_v33  ;;  %v1782_v30 = vadd.f32 %v1654_v46, %v3874_v40  ;;  %2436 = vpow2.f32 %v2062_v18  ;;  %v2127_v7 = vmul.f32 -1.442695, %v703_v14  ;;  %v4097_v26 = vld [vmem:[%s4574_s0 + $0x318] sm:$0xff] }
 0x14d   :  { %v2413_v29 = vpop.eup %2412  ;;  %1981 = vst [vmem:[#allocation2 + $0x2f8] sm:$0xff] %v1853_v60  ;;  %v1657_v6 = vmul.f32 %v2411_v59, %v3933_v57  ;;  %v1783_v23 = vadd.f32 %v1655_v58, %v3879_v20  ;;  %2438 = vpow2.f32 %v2063_v47  ;;  %v2128_v20 = vmul.f32 -1.442695, %v704_v24  ;;  %v4055_v24 = vld [vmem:[%s4574_s0 + $0x108] sm:$0xff]  ;;  %v584_v59 = vpop.permute.xlu1 %583 }
 0x14e   :  { %v2415_v41 = vpop.eup %2414  ;;  %v1718_v33 = vmul.f32 %v2413_v29, %v3936_v55  ;;  %v1784_v40 = vadd.f32 %v1656_v50, %v3890_v32  ;;  %1910 = vst [vmem:[#allocation2 + $0xc0] sm:$0xff] %v1782_v30  ;;  %2440 = vpow2.f32 %v2064_v53  ;;  %v4002_v55 = vld [vmem:[%s4574_s0 + $0x130] sm:$0xff]  ;;  %v2129_v32 = vmul.f32 -1.442695, %v705_v1  ;;  %v4071_v1 = vld [vmem:[%s4574_s0 + $0x118] sm:$0xff] }
 0x14f   :  { %v2417_v57 = vpop.eup %2416  ;;  %v1719_v49 = vmul.f32 %v2415_v41, %v3939_v51  ;;  %v1785_v48 = vadd.f32 %v1657_v6, %v3895_v5  ;;  %1911 = vst [vmem:[#allocation2 + $0xc8] sm:$0xff] %v1783_v23  ;;  %2442 = vpow2.f32 %v2065_v36  ;;  %v4009_v51 = vld [vmem:[%s4574_s0 + $0x138] sm:$0xff]  ;;  %v4012_v5 = vadd.f32 1.0, %v3988_v38 }
 0x150   :  { %v2419_v10 = vpop.eup %2418  ;;  %v1720_v8 = vmul.f32 %v2417_v57, %v3942_v17  ;;  %v1846_v44 = vadd.f32 %v1718_v33, %v3906_v15  ;;  %1912 = vst [vmem:[#allocation2 + $0xd0] sm:$0xff] %v1784_v40  ;;  %2444 = vpow2.f32 %v2126_v9  ;;  %v4019_v15 = vld [vmem:[%s4574_s0 + $0x320] sm:$0xff]  ;;  %v4024_v17 = vld [vmem:[%s4574_s0 + $0x328] sm:$0xff]  ;;  %v4027_v28 = vadd.f32 1.0, %v3995_v2 }
 0x151   :  { %v2421_v39 = vpop.eup %2420  ;;  %v1721_v56 = vmul.f32 %v2419_v10, %v3945_v42  ;;  %v1847_v13 = vadd.f32 %v1719_v49, %v3911_v43  ;;  %1913 = vst [vmem:[#allocation2 + $0xd8] sm:$0xff] %v1785_v48  ;;  %2446 = vpow2.f32 %v2127_v7  ;;  %v4033_v43 = vld [vmem:[%s4574_s0 + $0x330] sm:$0xff]  ;;  %v4041_v14 = vadd.f32 1.0, %v4002_v55  ;;  %v4744_v49 = vld [vmem:[#allocation30_spill] sm:$0xff] }
 0x152   :  { %v2423_v4 = vpop.eup %2422  ;;  %v1848_v42 = vadd.f32 %v1720_v8, %v3916_v62  ;;  %1974 = vst [vmem:[#allocation2 + $0x2c0] sm:$0xff] %v1846_v44  ;;  %v1154_v25 = vadd.f32 1.0, %v2421_v39  ;;  %2448 = vpow2.f32 %v2128_v20  ;;  %v4045_v54 = vadd.f32 1.0, %v4009_v51  ;;  %v4743_v20 = vld [vmem:[#allocation29_spill] sm:$0xff]  ;;  %v4745_v8 = vld [vmem:[#allocation31_spill] sm:$0xff]  ;;  %v4746_v39 = vld [vmem:[#allocation32_spill] sm:$0xff] }
 0x153   :  { %v2425_v21 = vpop.eup %2424  ;;  %v1849_v3 = vadd.f32 %v1721_v56, %v3921_v37  ;;  %1975 = vst [vmem:[#allocation2 + $0x2c8] sm:$0xff] %v1847_v13  ;;  %v1155_v62 = vadd.f32 1.0, %v2423_v4  ;;  %2450 = vpow2.f32 %v2129_v32  ;;  %v4058_v37 = vadd.f32 1.0, %v4019_v15 }
 0x154   :  { %v2427_v19 = vpop.eup %2426  ;;  %1976 = vst [vmem:[#allocation2 + $0x2d0] sm:$0xff] %v1848_v42  ;;  %v1156_v11 = vadd.f32 1.0, %v2425_v21  ;;  %2452 = vrcp.f32 %v1154_v25  ;;  %v4061_v22 = vadd.f32 1.0, %v4024_v17  ;;  %v4074_v61 = vadd.f32 1.0, %v4033_v43  ;;  %v4747_v42 = vld [vmem:[#allocation77_spill] sm:$0xff]  ;;  %v4748_v21 = vld [vmem:[#allocation78_spill] sm:$0xff] }
 0x155   :  { %v2429_v35 = vpop.eup %2428  ;;  %1977 = vst [vmem:[#allocation2 + $0x2d8] sm:$0xff] %v1849_v3  ;;  %v1157_v45 = vadd.f32 1.0, %v2427_v19  ;;  %2454 = vrcp.f32 %v1155_v62  ;;  %v4077_v18 = vadd.f32 1.0, %v4038_v52  ;;  %v4100_v46 = vadd.f32 1.0, %v4050_v34 }
 0x156   :  { %v2431_v31 = vpop.eup %2430  ;;  %v1218_v47 = vadd.f32 1.0, %v2429_v35  ;;  %2456 = vrcp.f32 %v1156_v11  ;;  %v4103_v53 = vadd.f32 1.0, %v4055_v24  ;;  %v4106_v58 = vadd.f32 1.0, %v4066_v16  ;;  %v4749_v11 = vld [vmem:[#allocation79_spill] sm:$0xff] }
 0x157   :  { %v2433_v12 = vpop.eup %2432  ;;  %v1219_v60 = vadd.f32 1.0, %v2431_v31  ;;  %2458 = vrcp.f32 %v1157_v45  ;;  %v4109_v36 = vadd.f32 1.0, %v4071_v1  ;;  %v4112_v9 = vadd.f32 1.0, %v4082_v27  ;;  %v4750_v45 = vld [vmem:[#allocation80_spill] sm:$0xff] }
 0x158   :  { %v2435_v50 = vpop.eup %2434  ;;  %v1220_v30 = vadd.f32 1.0, %v2433_v12  ;;  %2460 = vrcp.f32 %v1218_v47  ;;  %v4115_v29 = vadd.f32 1.0, %v4087_v63  ;;  %v4118_v7 = vadd.f32 1.0, %v4092_v0 }
 0x159   :  { %v2437_v6 = vpop.eup %2436  ;;  %v1221_v23 = vadd.f32 1.0, %v2435_v50  ;;  %2462 = vrcp.f32 %v1219_v60  ;;  %v4121_v41 = vadd.f32 1.0, %v4097_v26  ;;  %v650_v57 = vadd.f32 %v584_v59, %v4743_v20 }
 0x15a   :  { %v2439_v33 = vpop.eup %2438  ;;  %2464 = vrcp.f32 %v1220_v30  ;;  %v1150_v40 = vadd.f32 1.0, %v2437_v6  ;;  %v651_v48 = vadd.f32 %v584_v59, %v4744_v49  ;;  %v652_v44 = vadd.f32 %v584_v59, %v4745_v8 }
 0x15b   :  { %v2441_v32 = vpop.eup %2440  ;;  %2466 = vrcp.f32 %v1221_v23  ;;  %v1151_v10 = vadd.f32 1.0, %v2439_v33  ;;  %v653_v56 = vadd.f32 %v584_v59, %v4746_v39  ;;  %v714_v25 = vadd.f32 %v584_v59, %v4747_v42 }
 0x15c   :  { %v2443_v13 = vpop.eup %2442  ;;  %v1152_v4 = vadd.f32 1.0, %v2441_v32  ;;  %2468 = vrcp.f32 %v1150_v40  ;;  %v715_v3 = vadd.f32 %v584_v59, %v4748_v21  ;;  %v716_v35 = vadd.f32 %v584_v59, %v4749_v11  ;;  %v579_v40 = vpop.permute.xlu0 %578  ;;  %v4752_v21 = vld [vmem:[#allocation34_spill] sm:$0xff] }
 0x15d   :  { %v2445_v62 = vpop.eup %2444  ;;  %v1153_v19 = vadd.f32 1.0, %v2443_v13  ;;  %2470 = vrcp.f32 %v1151_v10  ;;  %v717_v31 = vadd.f32 %v584_v59, %v4750_v45  ;;  %v2074_v60 = vmul.f32 -1.442695, %v650_v57 }
 0x15e   :  { %v2447_v47 = vpop.eup %2446  ;;  %v1214_v12 = vadd.f32 1.0, %v2445_v62  ;;  %2472 = vrcp.f32 %v1152_v4  ;;  %v2075_v50 = vmul.f32 -1.442695, %v651_v48  ;;  %v2076_v23 = vmul.f32 -1.442695, %v652_v44  ;;  %v4751_v48 = vld [vmem:[#allocation33_spill] sm:$0xff] }
 0x15f   :  { %v2449_v30 = vpop.eup %2448  ;;  %v1215_v6 = vadd.f32 1.0, %v2447_v47  ;;  %2474 = vrcp.f32 %v1153_v19  ;;  %v2077_v33 = vmul.f32 -1.442695, %v653_v56  ;;  %v2138_v32 = vmul.f32 -1.442695, %v714_v25  ;;  %v4753_v19 = vld [vmem:[#allocation35_spill] sm:$0xff] }
 0x160   :  { %v2451_v20 = vpop.eup %2450  ;;  %v1216_v49 = vadd.f32 1.0, %v2449_v30  ;;  %2476 = vrcp.f32 %v1214_v12  ;;  %v2139_v10 = vmul.f32 -1.442695, %v715_v3  ;;  %v2140_v59 = vmul.f32 -1.442695, %v716_v35  ;;  %v4754_v3 = vld [vmem:[#allocation36_spill] sm:$0xff] }
 0x161   :  { %v2453_v8 = vpop.eup %2452  ;;  %v1217_v39 = vadd.f32 1.0, %v2451_v20  ;;  %2478 = vrcp.f32 %v1215_v6  ;;  %v2141_v13 = vmul.f32 -1.442695, %v717_v31  ;;  %v646_v4 = vadd.f32 %v579_v40, %v4751_v48 }
 0x162   :  { %v2455_v42 = vpop.eup %2454  ;;  %v1666_v57 = vmul.f32 %v2453_v8, %v4012_v5  ;;  %2480 = vrcp.f32 %v1216_v49  ;;  %v647_v44 = vadd.f32 %v579_v40, %v4752_v21  ;;  %v648_v25 = vadd.f32 %v579_v40, %v4753_v19  ;;  %v4755_v5 = vld [vmem:[#allocation81_spill] sm:$0xff]  ;;  %v4171_v19 = vld [vmem:[%s4574_s0 + $0x168] sm:$0xff] }
 0x163   :  { %v2457_v56 = vpop.eup %2456  ;;  %v1667_v62 = vmul.f32 %v2455_v42, %v4027_v28  ;;  %2482 = vrcp.f32 %v1217_v39  ;;  %v649_v11 = vadd.f32 %v579_v40, %v4754_v3  ;;  %v710_v47 = vadd.f32 %v579_v40, %v4755_v5  ;;  %v4756_v28 = vld [vmem:[#allocation82_spill] sm:$0xff] }
 0x164   :  { %v2459_v45 = vpop.eup %2458  ;;  %v1668_v35 = vmul.f32 %v2457_v56, %v4041_v14  ;;  %v1794_v31 = vadd.f32 %v1666_v57, %v3988_v38  ;;  %2484 = vpow2.f32 %v2074_v60  ;;  %v711_v20 = vadd.f32 %v579_v40, %v4756_v28  ;;  %v4757_v14 = vld [vmem:[#allocation83_spill] sm:$0xff] }
 0x165   :  { %v2461_v12 = vpop.eup %2460  ;;  %v1669_v30 = vmul.f32 %v2459_v45, %v4045_v54  ;;  %v1795_v6 = vadd.f32 %v1667_v62, %v3995_v2  ;;  %2486 = vpow2.f32 %v2075_v50  ;;  %v712_v38 = vadd.f32 %v579_v40, %v4757_v14  ;;  %v4758_v2 = vld [vmem:[#allocation84_spill] sm:$0xff]  ;;  %v4226_v14 = vld [vmem:[%s4574_s0 + $0x140] sm:$0xff] }
 0x166   :  { %v2463_v49 = vpop.eup %2462  ;;  %v1730_v8 = vmul.f32 %v2461_v12, %v4058_v37  ;;  %v1796_v39 = vadd.f32 %v1668_v35, %v4002_v55  ;;  %1922 = vst [vmem:[#allocation2 + $0x120] sm:$0xff] %v1794_v31  ;;  %2488 = vpow2.f32 %v2076_v23  ;;  %v713_v54 = vadd.f32 %v579_v40, %v4758_v2  ;;  %v4242_v2 = vld [vmem:[%s4574_s0 + $0x150] sm:$0xff] }
 0x167   :  { %v2465_v60 = vpop.eup %2464  ;;  %v1731_v42 = vmul.f32 %v2463_v49, %v4061_v22  ;;  %v1797_v57 = vadd.f32 %v1669_v30, %v4009_v51  ;;  %1923 = vst [vmem:[#allocation2 + $0x128] sm:$0xff] %v1795_v6  ;;  %2490 = vpow2.f32 %v2077_v33  ;;  %v2070_v55 = vmul.f32 -1.442695, %v646_v4  ;;  %v4214_v6 = vld [vmem:[%s4574_s0 + $0x378] sm:$0xff] }
 0x168   :  { %v2467_v50 = vpop.eup %2466  ;;  %v1732_v48 = vmul.f32 %v2465_v60, %v4074_v61  ;;  %v1858_v37 = vadd.f32 %v1730_v8, %v4019_v15  ;;  %1924 = vst [vmem:[#allocation2 + $0x130] sm:$0xff] %v1796_v39  ;;  %2492 = vpow2.f32 %v2138_v32  ;;  %v2071_v51 = vmul.f32 -1.442695, %v647_v44 }
 0x169   :  { %v2469_v23 = vpop.eup %2468  ;;  %v1733_v21 = vmul.f32 %v2467_v50, %v4077_v18  ;;  %v1859_v56 = vadd.f32 %v1731_v42, %v4024_v17  ;;  %1925 = vst [vmem:[#allocation2 + $0x138] sm:$0xff] %v1797_v57  ;;  %2494 = vpow2.f32 %v2139_v10  ;;  %v2072_v61 = vmul.f32 -1.442695, %v648_v25 }
 0x16a   :  { %v2471_v22 = vpop.eup %2470  ;;  %v1860_v33 = vadd.f32 %v1732_v48, %v4033_v43  ;;  %1986 = vst [vmem:[#allocation2 + $0x320] sm:$0xff] %v1858_v37  ;;  %v1662_v40 = vmul.f32 %v2469_v23, %v4100_v46  ;;  %2496 = vpow2.f32 %v2140_v59  ;;  %v2073_v18 = vmul.f32 -1.442695, %v649_v11  ;;  %v4258_v23 = vld [vmem:[%s4574_s0 + $0x340] sm:$0xff] }
 0x16b   :  { %v2473_v15 = vpop.eup %2472  ;;  %v1861_v32 = vadd.f32 %v1733_v21, %v4038_v52  ;;  %1987 = vst [vmem:[#allocation2 + $0x328] sm:$0xff] %v1859_v56  ;;  %v1663_v4 = vmul.f32 %v2471_v22, %v4103_v53  ;;  %2498 = vpow2.f32 %v2141_v13  ;;  %v2134_v43 = vmul.f32 -1.442695, %v710_v47  ;;  %v4164_v52 = vld [vmem:[%s4574_s0 + $0x160] sm:$0xff]  ;;  %v4263_v21 = vld [vmem:[%s4574_s0 + $0x348] sm:$0xff]  ;;  %v4268_v22 = vld [vmem:[%s4574_s0 + $0x350] sm:$0xff] }
 0x16c   :  { %v2475_v17 = vpop.eup %2474  ;;  %1988 = vst [vmem:[#allocation2 + $0x330] sm:$0xff] %v1860_v33  ;;  %v1664_v10 = vmul.f32 %v2473_v15, %v4106_v58  ;;  %v1790_v44 = vadd.f32 %v1662_v40, %v4050_v34  ;;  %2500 = vpow2.f32 %v2070_v55  ;;  %v2135_v53 = vmul.f32 -1.442695, %v711_v20  ;;  %v4273_v33 = vld [vmem:[%s4574_s0 + $0x358] sm:$0xff] }
 0x16d   :  { %v2477_v62 = vpop.eup %2476  ;;  %1989 = vst [vmem:[#allocation2 + $0x338] sm:$0xff] %v1861_v32  ;;  %v1665_v46 = vmul.f32 %v2475_v17, %v4109_v36  ;;  %v1791_v59 = vadd.f32 %v1663_v4, %v4055_v24  ;;  %2502 = vpow2.f32 %v2071_v51  ;;  %v2136_v24 = vmul.f32 -1.442695, %v712_v38  ;;  %v4231_v38 = vld [vmem:[%s4574_s0 + $0x148] sm:$0xff]  ;;  %v594_v17 = vpop.permute.xlu1 %593 }
 0x16e   :  { %v2479_v13 = vpop.eup %2478  ;;  %v1726_v58 = vmul.f32 %v2477_v62, %v4112_v9  ;;  %v1792_v34 = vadd.f32 %v1664_v10, %v4066_v16  ;;  %1918 = vst [vmem:[#allocation2 + $0x100] sm:$0xff] %v1790_v44  ;;  %2504 = vpow2.f32 %v2072_v61  ;;  %v4178_v9 = vld [vmem:[%s4574_s0 + $0x170] sm:$0xff]  ;;  %v2137_v16 = vmul.f32 -1.442695, %v713_v54  ;;  %v4247_v54 = vld [vmem:[%s4574_s0 + $0x158] sm:$0xff] }
 0x16f   :  { %v2481_v36 = vpop.eup %2480  ;;  %v1727_v25 = vmul.f32 %v2479_v13, %v4115_v29  ;;  %v1793_v3 = vadd.f32 %v1665_v46, %v4071_v1  ;;  %1919 = vst [vmem:[#allocation2 + $0x108] sm:$0xff] %v1791_v59  ;;  %2506 = vpow2.f32 %v2073_v18  ;;  %v4185_v29 = vld [vmem:[%s4574_s0 + $0x178] sm:$0xff]  ;;  %v4188_v1 = vadd.f32 1.0, %v4164_v52 }
 0x170   :  { %v2483_v11 = vpop.eup %2482  ;;  %v1728_v45 = vmul.f32 %v2481_v36, %v4118_v7  ;;  %v1854_v35 = vadd.f32 %v1726_v58, %v4082_v27  ;;  %1920 = vst [vmem:[#allocation2 + $0x110] sm:$0xff] %v1792_v34  ;;  %2508 = vpow2.f32 %v2134_v43  ;;  %v4195_v27 = vld [vmem:[%s4574_s0 + $0x360] sm:$0xff]  ;;  %v4200_v7 = vld [vmem:[%s4574_s0 + $0x368] sm:$0xff]  ;;  %v4203_v12 = vadd.f32 1.0, %v4171_v19 }
 0x171   :  { %v2485_v31 = vpop.eup %2484  ;;  %v1729_v5 = vmul.f32 %v2483_v11, %v4121_v41  ;;  %v1855_v47 = vadd.f32 %v1727_v25, %v4087_v63  ;;  %1921 = vst [vmem:[#allocation2 + $0x118] sm:$0xff] %v1793_v3  ;;  %2510 = vpow2.f32 %v2135_v53  ;;  %v4209_v63 = vld [vmem:[%s4574_s0 + $0x370] sm:$0xff]  ;;  %v4217_v20 = vadd.f32 1.0, %v4178_v9  ;;  %v4760_v25 = vld [vmem:[#allocation38_spill] sm:$0xff] }
 0x172   :  { %v2487_v30 = vpop.eup %2486  ;;  %v1856_v41 = vadd.f32 %v1728_v45, %v4092_v0  ;;  %1982 = vst [vmem:[#allocation2 + $0x300] sm:$0xff] %v1854_v35  ;;  %v1162_v28 = vadd.f32 1.0, %v2485_v31  ;;  %2512 = vpow2.f32 %v2136_v24  ;;  %v4221_v39 = vadd.f32 1.0, %v4185_v29  ;;  %v4759_v24 = vld [vmem:[#allocation37_spill] sm:$0xff]  ;;  %v4761_v45 = vld [vmem:[#allocation39_spill] sm:$0xff]  ;;  %v4762_v31 = vld [vmem:[#allocation40_spill] sm:$0xff] }
 0x173   :  { %v2489_v49 = vpop.eup %2488  ;;  %v1857_v8 = vadd.f32 %v1729_v5, %v4097_v26  ;;  %1983 = vst [vmem:[#allocation2 + $0x308] sm:$0xff] %v1855_v47  ;;  %v1163_v0 = vadd.f32 1.0, %v2487_v30  ;;  %2514 = vpow2.f32 %v2137_v16  ;;  %v4234_v26 = vadd.f32 1.0, %v4195_v27 }
 0x174   :  { %v2491_v60 = vpop.eup %2490  ;;  %1984 = vst [vmem:[#allocation2 + $0x310] sm:$0xff] %v1856_v41  ;;  %v1164_v42 = vadd.f32 1.0, %v2489_v49  ;;  %2516 = vrcp.f32 %v1162_v28  ;;  %v4237_v57 = vadd.f32 1.0, %v4200_v7  ;;  %v4250_v37 = vadd.f32 1.0, %v4209_v63  ;;  %v4763_v41 = vld [vmem:[#allocation85_spill] sm:$0xff]  ;;  %v4764_v49 = vld [vmem:[#allocation86_spill] sm:$0xff] }
 0x175   :  { %v2493_v50 = vpop.eup %2492  ;;  %1985 = vst [vmem:[#allocation2 + $0x318] sm:$0xff] %v1857_v8  ;;  %v1165_v48 = vadd.f32 1.0, %v2491_v60  ;;  %2518 = vrcp.f32 %v1163_v0  ;;  %v4253_v55 = vadd.f32 1.0, %v4214_v6  ;;  %v4276_v40 = vadd.f32 1.0, %v4226_v14 }
 0x176   :  { %v2495_v56 = vpop.eup %2494  ;;  %v1226_v51 = vadd.f32 1.0, %v2493_v50  ;;  %2520 = vrcp.f32 %v1164_v42  ;;  %v4279_v61 = vadd.f32 1.0, %v4231_v38  ;;  %v4282_v4 = vadd.f32 1.0, %v4242_v2  ;;  %v4765_v42 = vld [vmem:[#allocation87_spill] sm:$0xff] }
 0x177   :  { %v2497_v15 = vpop.eup %2496  ;;  %v1227_v32 = vadd.f32 1.0, %v2495_v56  ;;  %2522 = vrcp.f32 %v1165_v48  ;;  %v4285_v18 = vadd.f32 1.0, %v4247_v54  ;;  %v4288_v43 = vadd.f32 1.0, %v4258_v23  ;;  %v4766_v48 = vld [vmem:[#allocation88_spill] sm:$0xff] }
 0x178   :  { %v2499_v10 = vpop.eup %2498  ;;  %v1228_v44 = vadd.f32 1.0, %v2497_v15  ;;  %2524 = vrcp.f32 %v1226_v51  ;;  %v4291_v62 = vadd.f32 1.0, %v4263_v21  ;;  %v4294_v53 = vadd.f32 1.0, %v4268_v22 }
 0x179   :  { %v2501_v46 = vpop.eup %2500  ;;  %v1229_v59 = vadd.f32 1.0, %v2499_v10  ;;  %2526 = vrcp.f32 %v1227_v32  ;;  %v4297_v13 = vadd.f32 1.0, %v4273_v33  ;;  %v658_v36 = vadd.f32 %v594_v17, %v4759_v24 }
 0x17a   :  { %v2503_v58 = vpop.eup %2502  ;;  %2528 = vrcp.f32 %v1228_v44  ;;  %v1158_v34 = vadd.f32 1.0, %v2501_v46  ;;  %v659_v3 = vadd.f32 %v594_v17, %v4760_v25  ;;  %v660_v35 = vadd.f32 %v594_v17, %v4761_v45 }
 0x17b   :  { %v2505_v16 = vpop.eup %2504  ;;  %2530 = vrcp.f32 %v1229_v59  ;;  %v1159_v11 = vadd.f32 1.0, %v2503_v58  ;;  %v661_v5 = vadd.f32 %v594_v17, %v4762_v31  ;;  %v722_v28 = vadd.f32 %v594_v17, %v4763_v41 }
 0x17c   :  { %v2507_v47 = vpop.eup %2506  ;;  %v1160_v30 = vadd.f32 1.0, %v2505_v16  ;;  %2532 = vrcp.f32 %v1158_v34  ;;  %v723_v8 = vadd.f32 %v594_v17, %v4764_v49  ;;  %v724_v50 = vadd.f32 %v594_v17, %v4765_v42  ;;  %v589_v34 = vpop.permute.xlu0 %588  ;;  %v4768_v49 = vld [vmem:[#allocation42_spill] sm:$0xff] }
 0x17d   :  { %v2509_v0 = vpop.eup %2508  ;;  %v1161_v60 = vadd.f32 1.0, %v2507_v47  ;;  %2534 = vrcp.f32 %v1159_v11  ;;  %v725_v56 = vadd.f32 %v594_v17, %v4766_v48  ;;  %v2082_v32 = vmul.f32 -1.442695, %v658_v36 }
 0x17e   :  { %v2511_v51 = vpop.eup %2510  ;;  %v1222_v15 = vadd.f32 1.0, %v2509_v0  ;;  %2536 = vrcp.f32 %v1160_v30  ;;  %v2083_v10 = vmul.f32 -1.442695, %v659_v3  ;;  %v2084_v59 = vmul.f32 -1.442695, %v660_v35  ;;  %v4767_v3 = vld [vmem:[#allocation41_spill] sm:$0xff] }
 0x17f   :  { %v2513_v44 = vpop.eup %2512  ;;  %v1223_v46 = vadd.f32 1.0, %v2511_v51  ;;  %2538 = vrcp.f32 %v1161_v60  ;;  %v2085_v58 = vmul.f32 -1.442695, %v661_v5  ;;  %v2146_v16 = vmul.f32 -1.442695, %v722_v28  ;;  %v4769_v60 = vld [vmem:[#allocation43_spill] sm:$0xff] }
 0x180   :  { %v2515_v24 = vpop.eup %2514  ;;  %v1224_v25 = vadd.f32 1.0, %v2513_v44  ;;  %2540 = vrcp.f32 %v1222_v15  ;;  %v2147_v11 = vmul.f32 -1.442695, %v723_v8  ;;  %v2148_v17 = vmul.f32 -1.442695, %v724_v50  ;;  %v4770_v8 = vld [vmem:[#allocation44_spill] sm:$0xff] }
 0x181   :  { %v2517_v45 = vpop.eup %2516  ;;  %v1225_v31 = vadd.f32 1.0, %v2515_v24  ;;  %2542 = vrcp.f32 %v1223_v46  ;;  %v2149_v47 = vmul.f32 -1.442695, %v725_v56  ;;  %v654_v30 = vadd.f32 %v589_v34, %v4767_v3 }
 0x182   :  { %v2519_v41 = vpop.eup %2518  ;;  %v1674_v36 = vmul.f32 %v2517_v45, %v4188_v1  ;;  %2544 = vrcp.f32 %v1224_v25  ;;  %v655_v35 = vadd.f32 %v589_v34, %v4768_v49  ;;  %v656_v28 = vadd.f32 %v589_v34, %v4769_v60  ;;  %v4771_v1 = vld [vmem:[#allocation89_spill] sm:$0xff]  ;;  %v4347_v60 = vld [vmem:[%s4574_s0 + $0x1a8] sm:$0xff] }
 0x183   :  { %v2521_v5 = vpop.eup %2520  ;;  %v1675_v0 = vmul.f32 %v2519_v41, %v4203_v12  ;;  %2546 = vrcp.f32 %v1225_v31  ;;  %v657_v42 = vadd.f32 %v589_v34, %v4770_v8  ;;  %v718_v51 = vadd.f32 %v589_v34, %v4771_v1  ;;  %v4772_v12 = vld [vmem:[#allocation90_spill] sm:$0xff] }
 0x184   :  { %v2523_v48 = vpop.eup %2522  ;;  %v1676_v50 = vmul.f32 %v2521_v5, %v4217_v20  ;;  %v1802_v56 = vadd.f32 %v1674_v36, %v4164_v52  ;;  %2548 = vpow2.f32 %v2082_v32  ;;  %v719_v24 = vadd.f32 %v589_v34, %v4772_v12  ;;  %v4773_v20 = vld [vmem:[#allocation91_spill] sm:$0xff] }
 0x185   :  { %v2525_v15 = vpop.eup %2524  ;;  %v1677_v44 = vmul.f32 %v2523_v48, %v4221_v39  ;;  %v1803_v46 = vadd.f32 %v1675_v0, %v4171_v19  ;;  %2550 = vpow2.f32 %v2083_v10  ;;  %v720_v52 = vadd.f32 %v589_v34, %v4773_v20  ;;  %v4774_v19 = vld [vmem:[#allocation92_spill] sm:$0xff]  ;;  %v4402_v20 = vld [vmem:[%s4574_s0 + $0x180] sm:$0xff] }
 0x186   :  { %v2527_v25 = vpop.eup %2526  ;;  %v1738_v45 = vmul.f32 %v2525_v15, %v4234_v26  ;;  %v1804_v31 = vadd.f32 %v1676_v50, %v4178_v9  ;;  %1930 = vst [vmem:[#allocation2 + $0x160] sm:$0xff] %v1802_v56  ;;  %2552 = vpow2.f32 %v2084_v59  ;;  %v721_v39 = vadd.f32 %v589_v34, %v4774_v19  ;;  %v4418_v19 = vld [vmem:[%s4574_s0 + $0x190] sm:$0xff] }
 0x187   :  { %v2529_v32 = vpop.eup %2528  ;;  %v1739_v41 = vmul.f32 %v2527_v25, %v4237_v57  ;;  %v1805_v36 = vadd.f32 %v1677_v44, %v4185_v29  ;;  %1931 = vst [vmem:[#allocation2 + $0x168] sm:$0xff] %v1803_v46  ;;  %2554 = vpow2.f32 %v2085_v58  ;;  %v2078_v9 = vmul.f32 -1.442695, %v654_v30  ;;  %v4390_v46 = vld [vmem:[%s4574_s0 + $0x3b8] sm:$0xff] }
 0x188   :  { %v2531_v10 = vpop.eup %2530  ;;  %v1740_v3 = vmul.f32 %v2529_v32, %v4250_v37  ;;  %v1866_v26 = vadd.f32 %v1738_v45, %v4195_v27  ;;  %1932 = vst [vmem:[#allocation2 + $0x170] sm:$0xff] %v1804_v31  ;;  %2556 = vpow2.f32 %v2146_v16  ;;  %v2079_v29 = vmul.f32 -1.442695, %v655_v35 }
 0x189   :  { %v2533_v59 = vpop.eup %2532  ;;  %v1741_v49 = vmul.f32 %v2531_v10, %v4253_v55  ;;  %v1867_v5 = vadd.f32 %v1739_v41, %v4200_v7  ;;  %1933 = vst [vmem:[#allocation2 + $0x178] sm:$0xff] %v1805_v36  ;;  %2558 = vpow2.f32 %v2147_v11  ;;  %v2080_v37 = vmul.f32 -1.442695, %v656_v28 }
 0x18a   :  { %v2535_v57 = vpop.eup %2534  ;;  %v1868_v58 = vadd.f32 %v1740_v3, %v4209_v63  ;;  %1994 = vst [vmem:[#allocation2 + $0x360] sm:$0xff] %v1866_v26  ;;  %v1670_v34 = vmul.f32 %v2533_v59, %v4276_v40  ;;  %2560 = vpow2.f32 %v2148_v17  ;;  %v2081_v55 = vmul.f32 -1.442695, %v657_v42  ;;  %v4434_v59 = vld [vmem:[%s4574_s0 + $0x380] sm:$0xff] }
 0x18b   :  { %v2537_v27 = vpop.eup %2536  ;;  %v1869_v16 = vadd.f32 %v1741_v49, %v4214_v6  ;;  %1995 = vst [vmem:[#allocation2 + $0x368] sm:$0xff] %v1867_v5  ;;  %v1671_v30 = vmul.f32 %v2535_v57, %v4279_v61  ;;  %2562 = vpow2.f32 %v2149_v47  ;;  %v2142_v63 = vmul.f32 -1.442695, %v718_v51  ;;  %v4340_v6 = vld [vmem:[%s4574_s0 + $0x1a0] sm:$0xff]  ;;  %v4439_v49 = vld [vmem:[%s4574_s0 + $0x388] sm:$0xff]  ;;  %v4444_v57 = vld [vmem:[%s4574_s0 + $0x390] sm:$0xff] }
 0x18c   :  { %v2539_v7 = vpop.eup %2538  ;;  %1996 = vst [vmem:[#allocation2 + $0x370] sm:$0xff] %v1868_v58  ;;  %v1672_v11 = vmul.f32 %v2537_v27, %v4282_v4  ;;  %v1798_v35 = vadd.f32 %v1670_v34, %v4226_v14  ;;  %2564 = vpow2.f32 %v2078_v9  ;;  %v2143_v61 = vmul.f32 -1.442695, %v719_v24  ;;  %v4449_v58 = vld [vmem:[%s4574_s0 + $0x398] sm:$0xff] }
 0x18d   :  { %v2541_v0 = vpop.eup %2540  ;;  %1997 = vst [vmem:[#allocation2 + $0x378] sm:$0xff] %v1869_v16  ;;  %v1673_v40 = vmul.f32 %v2539_v7, %v4285_v18  ;;  %v1799_v17 = vadd.f32 %v1671_v30, %v4231_v38  ;;  %2566 = vpow2.f32 %v2079_v29  ;;  %v2144_v38 = vmul.f32 -1.442695, %v720_v52  ;;  %v4407_v52 = vld [vmem:[%s4574_s0 + $0x188] sm:$0xff]  ;;  %v604_v7 = vpop.permute.xlu1 %603 }
 0x18e   :  { %v2543_v47 = vpop.eup %2542  ;;  %v1734_v4 = vmul.f32 %v2541_v0, %v4288_v43  ;;  %v1800_v14 = vadd.f32 %v1672_v11, %v4242_v2  ;;  %1926 = vst [vmem:[#allocation2 + $0x140] sm:$0xff] %v1798_v35  ;;  %2568 = vpow2.f32 %v2080_v37  ;;  %v4354_v43 = vld [vmem:[%s4574_s0 + $0x1b0] sm:$0xff]  ;;  %v2145_v2 = vmul.f32 -1.442695, %v721_v39  ;;  %v4423_v39 = vld [vmem:[%s4574_s0 + $0x198] sm:$0xff] }
 0x18f   :  { %v2545_v18 = vpop.eup %2544  ;;  %v1735_v28 = vmul.f32 %v2543_v47, %v4291_v62  ;;  %v1801_v8 = vadd.f32 %v1673_v40, %v4247_v54  ;;  %1927 = vst [vmem:[#allocation2 + $0x148] sm:$0xff] %v1799_v17  ;;  %2570 = vpow2.f32 %v2081_v55  ;;  %v4361_v62 = vld [vmem:[%s4574_s0 + $0x1b8] sm:$0xff]  ;;  %v4364_v54 = vadd.f32 1.0, %v4340_v6 }
 0x190   :  { %v2547_v42 = vpop.eup %2546  ;;  %v1736_v48 = vmul.f32 %v2545_v18, %v4294_v53  ;;  %v1862_v50 = vadd.f32 %v1734_v4, %v4258_v23  ;;  %1928 = vst [vmem:[#allocation2 + $0x150] sm:$0xff] %v1800_v14  ;;  %2572 = vpow2.f32 %v2142_v63  ;;  %v4371_v23 = vld [vmem:[%s4574_s0 + $0x3a0] sm:$0xff]  ;;  %v4376_v53 = vld [vmem:[%s4574_s0 + $0x3a8] sm:$0xff]  ;;  %v4379_v15 = vadd.f32 1.0, %v4347_v60 }
 0x191   :  { %v2549_v56 = vpop.eup %2548  ;;  %v1737_v1 = vmul.f32 %v2547_v42, %v4297_v13  ;;  %v1863_v51 = vadd.f32 %v1735_v28, %v4263_v21  ;;  %1929 = vst [vmem:[#allocation2 + $0x158] sm:$0xff] %v1801_v8  ;;  %2574 = vpow2.f32 %v2143_v61  ;;  %v4385_v21 = vld [vmem:[%s4574_s0 + $0x3b0] sm:$0xff]  ;;  %v4393_v24 = vadd.f32 1.0, %v4354_v43  ;;  %v4776_v28 = vld [vmem:[#allocation46_spill] sm:$0xff] }
 0x192   :  { %v2551_v44 = vpop.eup %2550  ;;  %v1864_v13 = vadd.f32 %v1736_v48, %v4268_v22  ;;  %1990 = vst [vmem:[#allocation2 + $0x340] sm:$0xff] %v1862_v50  ;;  %v1170_v12 = vadd.f32 1.0, %v2549_v56  ;;  %2576 = vpow2.f32 %v2144_v38  ;;  %v4397_v31 = vadd.f32 1.0, %v4361_v62  ;;  %v4775_v38 = vld [vmem:[#allocation45_spill] sm:$0xff]  ;;  %v4777_v48 = vld [vmem:[#allocation47_spill] sm:$0xff]  ;;  %v4778_v56 = vld [vmem:[#allocation48_spill] sm:$0xff] }
 0x193   :  { %v2553_v25 = vpop.eup %2552  ;;  %v1865_v45 = vadd.f32 %v1737_v1, %v4273_v33  ;;  %1991 = vst [vmem:[#allocation2 + $0x348] sm:$0xff] %v1863_v51  ;;  %v1171_v22 = vadd.f32 1.0, %v2551_v44  ;;  %2578 = vpow2.f32 %v2145_v2  ;;  %v4410_v33 = vadd.f32 1.0, %v4371_v23 }
 0x194   :  { %v2555_v32 = vpop.eup %2554  ;;  %1992 = vst [vmem:[#allocation2 + $0x350] sm:$0xff] %v1864_v13  ;;  %v1172_v41 = vadd.f32 1.0, %v2553_v25  ;;  %2580 = vrcp.f32 %v1170_v12  ;;  %v4413_v36 = vadd.f32 1.0, %v4376_v53  ;;  %v4426_v26 = vadd.f32 1.0, %v4385_v21  ;;  %v4779_v13 = vld [vmem:[#allocation93_spill] sm:$0xff]  ;;  %v4780_v25 = vld [vmem:[#allocation94_spill] sm:$0xff] }
 0x195   :  { %v2557_v10 = vpop.eup %2556  ;;  %1993 = vst [vmem:[#allocation2 + $0x358] sm:$0xff] %v1865_v45  ;;  %v1173_v3 = vadd.f32 1.0, %v2555_v32  ;;  %2582 = vrcp.f32 %v1171_v22  ;;  %v4429_v9 = vadd.f32 1.0, %v4390_v46  ;;  %v4452_v34 = vadd.f32 1.0, %v4402_v20 }
 0x196   :  { %v2559_v5 = vpop.eup %2558  ;;  %v1234_v29 = vadd.f32 1.0, %v2557_v10  ;;  %2584 = vrcp.f32 %v1172_v41  ;;  %v4455_v37 = vadd.f32 1.0, %v4407_v52  ;;  %v4458_v30 = vadd.f32 1.0, %v4418_v19  ;;  %v4781_v41 = vld [vmem:[#allocation95_spill] sm:$0xff] }
 0x197   :  { %v2561_v27 = vpop.eup %2560  ;;  %v1235_v16 = vadd.f32 1.0, %v2559_v5  ;;  %2586 = vrcp.f32 %v1173_v3  ;;  %v4461_v55 = vadd.f32 1.0, %v4423_v39  ;;  %v4464_v63 = vadd.f32 1.0, %v4434_v59  ;;  %v4782_v3 = vld [vmem:[#allocation96_spill] sm:$0xff] }
 0x198   :  { %v2563_v11 = vpop.eup %2562  ;;  %v1236_v35 = vadd.f32 1.0, %v2561_v27  ;;  %2588 = vrcp.f32 %v1234_v29  ;;  %v4467_v0 = vadd.f32 1.0, %v4439_v49  ;;  %v4470_v61 = vadd.f32 1.0, %v4444_v57 }
 0x199   :  { %v2565_v40 = vpop.eup %2564  ;;  %v1237_v17 = vadd.f32 1.0, %v2563_v11  ;;  %2590 = vrcp.f32 %v1235_v16  ;;  %v4473_v47 = vadd.f32 1.0, %v4449_v58  ;;  %v666_v18 = vadd.f32 %v604_v7, %v4775_v38 }
 0x19a   :  { %v2567_v4 = vpop.eup %2566  ;;  %2592 = vrcp.f32 %v1236_v35  ;;  %v1166_v14 = vadd.f32 1.0, %v2565_v40  ;;  %v667_v8 = vadd.f32 %v604_v7, %v4776_v28  ;;  %v668_v50 = vadd.f32 %v604_v7, %v4777_v48 }
 0x19b   :  { %v2569_v2 = vpop.eup %2568  ;;  %2594 = vrcp.f32 %v1237_v17  ;;  %v1167_v42 = vadd.f32 1.0, %v2567_v4  ;;  %v669_v1 = vadd.f32 %v604_v7, %v4778_v56  ;;  %v730_v12 = vadd.f32 %v604_v7, %v4779_v13 }
 0x19c   :  { %v2571_v51 = vpop.eup %2570  ;;  %v1168_v44 = vadd.f32 1.0, %v2569_v2  ;;  %2596 = vrcp.f32 %v1166_v14  ;;  %v731_v45 = vadd.f32 %v604_v7, %v4780_v25  ;;  %v732_v10 = vadd.f32 %v604_v7, %v4781_v41  ;;  %v599_v14 = vpop.permute.xlu0 %598  ;;  %v4784_v25 = vld [vmem:[#allocation50_spill] sm:$0xff] }
 0x19d   :  { %v2573_v22 = vpop.eup %2572  ;;  %v1169_v32 = vadd.f32 1.0, %v2571_v51  ;;  %2598 = vrcp.f32 %v1167_v42  ;;  %v733_v5 = vadd.f32 %v604_v7, %v4782_v3  ;;  %v2090_v16 = vmul.f32 -1.442695, %v666_v18 }
 0x19e   :  { %v2575_v29 = vpop.eup %2574  ;;  %v1230_v27 = vadd.f32 1.0, %v2573_v22  ;;  %2600 = vrcp.f32 %v1168_v44  ;;  %v2091_v11 = vmul.f32 -1.442695, %v667_v8  ;;  %v2092_v17 = vmul.f32 -1.442695, %v668_v50  ;;  %v4783_v8 = vld [vmem:[#allocation49_spill] sm:$0xff] }
 0x19f   :  { %v2577_v35 = vpop.eup %2576  ;;  %v1231_v40 = vadd.f32 1.0, %v2575_v29  ;;  %2602 = vrcp.f32 %v1169_v32  ;;  %v2093_v4 = vmul.f32 -1.442695, %v669_v1  ;;  %v2154_v2 = vmul.f32 -1.442695, %v730_v12  ;;  %v4785_v32 = vld [vmem:[#allocation51_spill] sm:$0xff] }
 0x1a0   :  { %v2579_v38 = vpop.eup %2578  ;;  %v1232_v28 = vadd.f32 1.0, %v2577_v35  ;;  %2604 = vrcp.f32 %v1230_v27  ;;  %v2155_v42 = vmul.f32 -1.442695, %v731_v45  ;;  %v2156_v7 = vmul.f32 -1.442695, %v732_v10  ;;  %v4786_v45 = vld [vmem:[#allocation52_spill] sm:$0xff] }
 0x1a1   :  { %v2581_v48 = vpop.eup %2580  ;;  %v1233_v56 = vadd.f32 1.0, %v2579_v38  ;;  %2606 = vrcp.f32 %v1231_v40  ;;  %v2157_v51 = vmul.f32 -1.442695, %v733_v5  ;;  %v662_v44 = vadd.f32 %v599_v14, %v4783_v8 }
 0x1a2   :  { %v2583_v13 = vpop.eup %2582  ;;  %v1682_v18 = vmul.f32 %v2581_v48, %v4364_v54  ;;  %2608 = vrcp.f32 %v1232_v28  ;;  %v663_v50 = vadd.f32 %v599_v14, %v4784_v25  ;;  %v664_v12 = vadd.f32 %v599_v14, %v4785_v32  ;;  %v4787_v54 = vld [vmem:[#allocation97_spill] sm:$0xff] }
 0x1a3   :  { %v2585_v1 = vpop.eup %2584  ;;  %v1683_v22 = vmul.f32 %v2583_v13, %v4379_v15  ;;  %2610 = vrcp.f32 %v1233_v56  ;;  %v665_v41 = vadd.f32 %v599_v14, %v4786_v45  ;;  %v726_v29 = vadd.f32 %v599_v14, %v4787_v54  ;;  %v4788_v15 = vld [vmem:[#allocation98_spill] sm:$0xff] }
 0x1a4   :  { %v2587_v3 = vpop.eup %2586  ;;  %v1684_v10 = vmul.f32 %v2585_v1, %v4393_v24  ;;  %v1810_v5 = vadd.f32 %v1682_v18, %v4340_v6  ;;  %2612 = vpow2.f32 %v2090_v16  ;;  %v727_v38 = vadd.f32 %v599_v14, %v4788_v15  ;;  %v4789_v24 = vld [vmem:[#allocation99_spill] sm:$0xff] }
 0x1a5   :  { %v2589_v27 = vpop.eup %2588  ;;  %v1685_v35 = vmul.f32 %v2587_v3, %v4397_v31  ;;  %v1811_v40 = vadd.f32 %v1683_v22, %v4347_v60  ;;  %2614 = vpow2.f32 %v2091_v11  ;;  %v728_v6 = vadd.f32 %v599_v14, %v4789_v24  ;;  %v4790_v60 = vld [vmem:[#allocation100_spill] sm:$0xff] }
 0x1a6   :  { %v2591_v28 = vpop.eup %2590  ;;  %v1746_v48 = vmul.f32 %v2589_v27, %v4410_v33  ;;  %v1812_v56 = vadd.f32 %v1684_v10, %v4354_v43  ;;  %1938 = vst [vmem:[#allocation2 + $0x1a0] sm:$0xff] %v1810_v5  ;;  %2616 = vpow2.f32 %v2092_v17  ;;  %v729_v31 = vadd.f32 %v599_v14, %v4790_v60  ;;  %v79_v60 = vld [vmem:[%s4574_s0 + $0x1e8] sm:$0xff] }
 0x1a7   :  { %v2593_v16 = vpop.eup %2592  ;;  %v1747_v13 = vmul.f32 %v2591_v28, %v4413_v36  ;;  %v1813_v18 = vadd.f32 %v1685_v35, %v4361_v62  ;;  %1939 = vst [vmem:[#allocation2 + $0x1a8] sm:$0xff] %v1811_v40  ;;  %2618 = vpow2.f32 %v2093_v4  ;;  %v2086_v43 = vmul.f32 -1.442695, %v662_v44 }
 0x1a8   :  { %v2595_v11 = vpop.eup %2594  ;;  %v1748_v8 = vmul.f32 %v2593_v16, %v4426_v26  ;;  %v1874_v33 = vadd.f32 %v1746_v48, %v4371_v23  ;;  %1940 = vst [vmem:[#allocation2 + $0x1b0] sm:$0xff] %v1812_v56  ;;  %2620 = vpow2.f32 %v2154_v2  ;;  %v2087_v62 = vmul.f32 -1.442695, %v663_v50  ;;  %v78_v16 = vld [vmem:[%s4574_s0 + $0x1e0] sm:$0xff] }
 0x1a9   :  { %v2597_v17 = vpop.eup %2596  ;;  %v1749_v25 = vmul.f32 %v2595_v11, %v4429_v9  ;;  %v1875_v1 = vadd.f32 %v1747_v13, %v4376_v53  ;;  %1941 = vst [vmem:[#allocation2 + $0x1b8] sm:$0xff] %v1813_v18  ;;  %2622 = vpow2.f32 %v2155_v42  ;;  %v2088_v26 = vmul.f32 -1.442695, %v664_v12 }
 0x1aa   :  { %v2599_v36 = vpop.eup %2598  ;;  %v1876_v4 = vadd.f32 %v1748_v8, %v4385_v21  ;;  %2002 = vst [vmem:[#allocation2 + $0x3a0] sm:$0xff] %v1874_v33  ;;  %v1678_v14 = vmul.f32 %v2597_v17, %v4452_v34  ;;  %2624 = vpow2.f32 %v2156_v7  ;;  %v2089_v9 = vmul.f32 -1.442695, %v665_v41  ;;  %v80_v8 = vld [vmem:[%s4574_s0 + $0x1f0] sm:$0xff]  ;;  %v81_v17 = vld [vmem:[%s4574_s0 + $0x1f8] sm:$0xff] }
 0x1ab   :  { %v2601_v23 = vpop.eup %2600  ;;  %v1877_v2 = vadd.f32 %v1749_v25, %v4390_v46  ;;  %2003 = vst [vmem:[#allocation2 + $0x3a8] sm:$0xff] %v1875_v1  ;;  %v1679_v44 = vmul.f32 %v2599_v36, %v4455_v37  ;;  %2626 = vpow2.f32 %v2157_v51  ;;  %v2150_v21 = vmul.f32 -1.442695, %v726_v29  ;;  %v142_v36 = vld [vmem:[%s4574_s0 + $0x3e0] sm:$0xff] }
 0x1ac   :  { %v2603_v53 = vpop.eup %2602  ;;  %2004 = vst [vmem:[#allocation2 + $0x3b0] sm:$0xff] %v1876_v4  ;;  %v1680_v42 = vmul.f32 %v2601_v23, %v4458_v30  ;;  %v1806_v50 = vadd.f32 %v1678_v14, %v4402_v20  ;;  %2628 = vpow2.f32 %v2086_v43  ;;  %v2151_v46 = vmul.f32 -1.442695, %v727_v38  ;;  %v143_v23 = vld [vmem:[%s4574_s0 + $0x3e8] sm:$0xff] }
 0x1ad   :  { %v2605_v22 = vpop.eup %2604  ;;  %2005 = vst [vmem:[#allocation2 + $0x3b8] sm:$0xff] %v1877_v2  ;;  %v1681_v34 = vmul.f32 %v2603_v53, %v4461_v55  ;;  %v1807_v7 = vadd.f32 %v1679_v44, %v4407_v52  ;;  %2630 = vpow2.f32 %v2087_v62  ;;  %v2152_v30 = vmul.f32 -1.442695, %v728_v6  ;;  %v144_v53 = vld [vmem:[%s4574_s0 + $0x3f0] sm:$0xff] }
 0x1ae   :  { %v2607_v32 = vpop.eup %2606  ;;  %v1742_v37 = vmul.f32 %v2605_v22, %v4464_v63  ;;  %v1808_v51 = vadd.f32 %v1680_v42, %v4418_v19  ;;  %1934 = vst [vmem:[#allocation2 + $0x180] sm:$0xff] %v1806_v50  ;;  %2632 = vpow2.f32 %v2088_v26  ;;  %v2153_v55 = vmul.f32 -1.442695, %v729_v31  ;;  %v145_v22 = vld [vmem:[%s4574_s0 + $0x3f8] sm:$0xff] }
 0x1af   :  { %v2609_v12 = vpop.eup %2608  ;;  %v1743_v20 = vmul.f32 %v2607_v32, %v4467_v0  ;;  %v1809_v45 = vadd.f32 %v1681_v34, %v4423_v39  ;;  %1935 = vst [vmem:[#allocation2 + $0x188] sm:$0xff] %v1807_v7  ;;  %2634 = vpow2.f32 %v2089_v9  ;;  %v1562_v25 = vadd.f32 1.0, %v78_v16 }
 0x1b0   :  { %v2611_v41 = vpop.eup %2610  ;;  %v1744_v52 = vmul.f32 %v2609_v12, %v4470_v61  ;;  %v1870_v3 = vadd.f32 %v1742_v37, %v4434_v59  ;;  %1936 = vst [vmem:[#allocation2 + $0x190] sm:$0xff] %v1808_v51  ;;  %2636 = vpow2.f32 %v2150_v21  ;;  %v1563_v4 = vadd.f32 1.0, %v79_v60  ;;  %v74_v51 = vld [vmem:[%s4574_s0 + $0x1c0] sm:$0xff] }
 0x1b1   :  { %v2613_v63 = vpop.eup %2612  ;;  %v1745_v19 = vmul.f32 %v2611_v41, %v4473_v47  ;;  %v1871_v10 = vadd.f32 %v1743_v20, %v4439_v49  ;;  %1937 = vst [vmem:[#allocation2 + $0x198] sm:$0xff] %v1809_v45  ;;  %2638 = vpow2.f32 %v2151_v46  ;;  %v1564_v2 = vadd.f32 1.0, %v80_v8 }
 0x1b2   :  { %v2615_v0 = vpop.eup %2614  ;;  %v1872_v39 = vadd.f32 %v1744_v52, %v4444_v57  ;;  %1998 = vst [vmem:[#allocation2 + $0x380] sm:$0xff] %v1870_v3  ;;  %v1178_v5 = vadd.f32 1.0, %v2613_v63  ;;  %2640 = vpow2.f32 %v2152_v30  ;;  %v1565_v42 = vadd.f32 1.0, %v81_v17 }
 0x1b3   :  { %v2617_v54 = vpop.eup %2616  ;;  %v1873_v61 = vadd.f32 %v1745_v19, %v4449_v58  ;;  %1999 = vst [vmem:[#allocation2 + $0x388] sm:$0xff] %v1871_v10  ;;  %v1179_v59 = vadd.f32 1.0, %v2615_v0  ;;  %2642 = vpow2.f32 %v2153_v55  ;;  %v1626_v34 = vadd.f32 1.0, %v142_v36  ;;  %v75_v55 = vld [vmem:[%s4574_s0 + $0x1c8] sm:$0xff]  ;;  %v76_v19 = vld [vmem:[%s4574_s0 + $0x1d0] sm:$0xff] }
 0x1b4   :  { %v2619_v29 = vpop.eup %2618  ;;  %2000 = vst [vmem:[#allocation2 + $0x390] sm:$0xff] %v1872_v39  ;;  %v1180_v27 = vadd.f32 1.0, %v2617_v54  ;;  %2644 = vrcp.f32 %v1178_v5  ;;  %v1627_v32 = vadd.f32 1.0, %v143_v23  ;;  %v1628_v12 = vadd.f32 1.0, %v144_v53  ;;  %v77_v5 = vld [vmem:[%s4574_s0 + $0x1d8] sm:$0xff] }
 0x1b5   :  { %v2621_v47 = vpop.eup %2620  ;;  %2001 = vst [vmem:[#allocation2 + $0x398] sm:$0xff] %v1873_v61  ;;  %v1181_v49 = vadd.f32 1.0, %v2619_v29  ;;  %2646 = vrcp.f32 %v1179_v59  ;;  %v1629_v52 = vadd.f32 1.0, %v145_v22  ;;  %v1558_v54 = vadd.f32 1.0, %v74_v51 }
 0x1b6   :  { %v2623_v35 = vpop.eup %2622  ;;  %v1242_v40 = vadd.f32 1.0, %v2621_v47  ;;  %2648 = vrcp.f32 %v1180_v27  ;;  %v138_v27 = vld [vmem:[%s4574_s0 + $0x3c0] sm:$0xff]  ;;  %v1559_v47 = vadd.f32 1.0, %v75_v55 }
 0x1b7   :  { %v2625_v57 = vpop.eup %2624  ;;  %v1243_v15 = vadd.f32 1.0, %v2623_v35  ;;  %2650 = vrcp.f32 %v1181_v49 }
 0x1b8   :  { %v2627_v38 = vpop.eup %2626  ;;  %v1244_v28 = vadd.f32 1.0, %v2625_v57  ;;  %2652 = vrcp.f32 %v1242_v40  ;;  %v139_v57 = vld [vmem:[%s4574_s0 + $0x3c8] sm:$0xff] }
 0x1b9   :  { %v2629_v58 = vpop.eup %2628  ;;  %v1245_v48 = vadd.f32 1.0, %v2627_v38  ;;  %2654 = vrcp.f32 %v1243_v15  ;;  %v1560_v15 = vadd.f32 1.0, %v76_v19 }
 0x1ba   :  { %v2631_v56 = vpop.eup %2630  ;;  %2656 = vrcp.f32 %v1244_v28  ;;  %v1174_v24 = vadd.f32 1.0, %v2629_v58 }
 0x1bb   :  { %v2633_v6 = vpop.eup %2632  ;;  %2658 = vrcp.f32 %v1245_v48  ;;  %v1175_v13 = vadd.f32 1.0, %v2631_v56  ;;  %v140_v48 = vld [vmem:[%s4574_s0 + $0x3d0] sm:$0xff]  ;;  %v1561_v56 = vadd.f32 1.0, %v77_v5 }
 0x1bc   :  { %v2635_v18 = vpop.eup %2634  ;;  %v1176_v31 = vadd.f32 1.0, %v2633_v6  ;;  %2660 = vrcp.f32 %v1174_v24 }
 0x1bd   :  { %v2637_v11 = vpop.eup %2636  ;;  %v1177_v33 = vadd.f32 1.0, %v2635_v18  ;;  %2662 = vrcp.f32 %v1175_v13  ;;  %v1622_v13 = vadd.f32 1.0, %v138_v27 }
 0x1be   :  { %v2639_v43 = vpop.eup %2638  ;;  %v1238_v1 = vadd.f32 1.0, %v2637_v11  ;;  %2664 = vrcp.f32 %v1176_v31  ;;  %v1623_v11 = vadd.f32 1.0, %v139_v57 }
 0x1bf   :  { %v2641_v62 = vpop.eup %2640  ;;  %v1239_v14 = vadd.f32 1.0, %v2639_v43  ;;  %2666 = vrcp.f32 %v1177_v33  ;;  %v1624_v43 = vadd.f32 1.0, %v140_v48 }
 0x1c0   :  { %v2643_v26 = vpop.eup %2642  ;;  %v1240_v44 = vadd.f32 1.0, %v2641_v62  ;;  %2668 = vrcp.f32 %v1238_v1 }
 0x1c1   :  { %v2645_v9 = vpop.eup %2644  ;;  %v1241_v50 = vadd.f32 1.0, %v2643_v26  ;;  %2670 = vrcp.f32 %v1239_v14 }
 0x1c2   :  { %v2647_v21 = vpop.eup %2646  ;;  %v1690_v7 = vmul.f32 %v2645_v9, %v1562_v25  ;;  %2672 = vrcp.f32 %v1240_v44 }
 0x1c3   :  { %v2649_v46 = vpop.eup %2648  ;;  %v1691_v37 = vmul.f32 %v2647_v21, %v1563_v4  ;;  %2674 = vrcp.f32 %v1241_v50 }
 0x1c4   :  { %v2651_v30 = vpop.eup %2650  ;;  %v1692_v20 = vmul.f32 %v2649_v46, %v1564_v2  ;;  %v1818_v45 = vadd.f32 %v1690_v7, %v78_v16  ;;  %v141_v16 = vld [vmem:[%s4574_s0 + $0x3d8] sm:$0xff]  ;;  %s2699_s0 = smov [#allocation2]  }
 0x1c5   :  { %v2653_v41 = vpop.eup %2652  ;;  %v1693_v3 = vmul.f32 %v2651_v30, %v1565_v42  ;;  %v1819_v63 = vadd.f32 %v1691_v37, %v79_v60  ;;  %v1625_v62 = vadd.f32 1.0, %v141_v16  ;;  %s2019_s5 = sshll.u32 %s2699_s0, 4  ;;  %s2020_s5 = int_to_ptr.vmem [resolvable:$true] %s2019_s5 }
 0x1c6   :  { %v2655_v10 = vpop.eup %2654  ;;  %v1754_v0 = vmul.f32 %v2653_v41, %v1626_v34  ;;  %v1820_v39 = vadd.f32 %v1692_v20, %v80_v8  ;;  %1946 = vst [vmem:[#allocation2 + $0x1e0] sm:$0xff] %v1818_v45  ;;  %s2676_s6 = scalar_lea.vmem %s2020_s5, 16384  ;;  %p2681_p1 = scmp.lt.s32.totalorder %s2020_s5, %s2020_s5 }
 0x1c7   :  { %v2657_v61 = vpop.eup %2656  ;;  %v1755_v59 = vmul.f32 %v2655_v10, %v1627_v32  ;;  %v1821_v29 = vadd.f32 %v1693_v3, %v81_v17  ;;  %1947 = vst [vmem:[#allocation2 + $0x1e8] sm:$0xff] %v1819_v63  ;;  %p2677_p0 = scmp.ne.s32.totalorder %s2020_s5, %s2676_s6  ;;  %p2682_p2 = scmp.lt.s32.totalorder %s2676_s6, %s2676_s6 }
 0x1c8   :  { %v2659_v49 = vpop.eup %2658  ;;  %v1756_v35 = vmul.f32 %v2657_v61, %v1628_v12  ;;  %v1882_v40 = vadd.f32 %v1754_v0, %v142_v36  ;;  %1948 = vst [vmem:[#allocation2 + $0x1f0] sm:$0xff] %v1820_v39 }
 0x1c9   :  { %v2661_v38 = vpop.eup %2660  ;;  %v1757_v28 = vmul.f32 %v2659_v49, %v1629_v52  ;;  %v1883_v58 = vadd.f32 %v1755_v59, %v143_v23  ;;  %1949 = vst [vmem:[#allocation2 + $0x1f8] sm:$0xff] %v1821_v29  ;;  %p2683_p3 = por %p2682_p2, %p2681_p1 }
 0x1ca   :  { %v2663_v24 = vpop.eup %2662  ;;  %v1884_v6 = vadd.f32 %v1756_v35, %v144_v53  ;;  %2010 = vst [vmem:[#allocation2 + $0x3e0] sm:$0xff] %v1882_v40  ;;  %v1686_v18 = vmul.f32 %v2661_v38, %v1558_v54 }
 0x1cb   :  { %v2665_v60 = vpop.eup %2664  ;;  %v1885_v31 = vadd.f32 %v1757_v28, %v145_v22  ;;  %2011 = vst [vmem:[#allocation2 + $0x3e8] sm:$0xff] %v1883_v58  ;;  %v1687_v8 = vmul.f32 %v2663_v24, %v1559_v47  ;;  %p2684_p4 = pnand %p2683_p3, %p2677_p0 }
 0x1cc   :  { %v2667_v33 = vpop.eup %2666  ;;  %2012 = vst [vmem:[#allocation2 + $0x3f0] sm:$0xff] %v1884_v6  ;;  %v1688_v17 = vmul.f32 %v2665_v60, %v1560_v15  ;;  %v1814_v25 = vadd.f32 %v1686_v18, %v74_v51 }
 0x1cd   :  { %v2669_v1 = vpop.eup %2668  ;;  %2013 = vst [vmem:[#allocation2 + $0x3f8] sm:$0xff] %v1885_v31  ;;  %v1689_v36 = vmul.f32 %v2667_v33, %v1561_v56  ;;  %v1815_v4 = vadd.f32 %v1687_v8, %v75_v55 }
 0x1ce   :  { %v2671_v14 = vpop.eup %2670  ;;  %v1750_v26 = vmul.f32 %v2669_v1, %v1622_v13  ;;  %v1816_v23 = vadd.f32 %v1688_v17, %v76_v19  ;;  %1942 = vst [vmem:[#allocation2 + $0x1c0] sm:$0xff] %v1814_v25 }
 0x1cf   :  { %v2673_v2 = vpop.eup %2672  ;;  %v1751_v44 = vmul.f32 %v2671_v14, %v1623_v11  ;;  %v1817_v9 = vadd.f32 %v1689_v36, %v77_v5  ;;  %1943 = vst [vmem:[#allocation2 + $0x1c8] sm:$0xff] %v1815_v4 }
 0x1d0   :  { %v2675_v53 = vpop.eup %2674  ;;  %v1752_v42 = vmul.f32 %v2673_v2, %v1624_v43  ;;  %v1878_v50 = vadd.f32 %v1750_v26, %v138_v27  ;;  %1944 = vst [vmem:[#allocation2 + $0x1d0] sm:$0xff] %v1816_v23 }
 0x1d1   :  { %v1753_v21 = vmul.f32 %v2675_v53, %v1625_v62  ;;  %v1879_v22 = vadd.f32 %v1751_v44, %v139_v57  ;;  %1945 = vst [vmem:[#allocation2 + $0x1d8] sm:$0xff] %v1817_v9 }
 0x1d2   :  { %v1880_v34 = vadd.f32 %v1752_v42, %v140_v48  ;;  %2006 = vst [vmem:[#allocation2 + $0x3c0] sm:$0xff] %v1878_v50 }
 0x1d3   :  { %v1881_v7 = vadd.f32 %v1753_v21, %v141_v16  ;;  %2007 = vst [vmem:[#allocation2 + $0x3c8] sm:$0xff] %v1879_v22 }
 0x1d4   :  { %2008 = vst [vmem:[#allocation2 + $0x3d0] sm:$0xff] %v1880_v34 }
 0x1d5   :  { %2009 = vst [vmem:[#allocation2 + $0x3d8] sm:$0xff] %v1881_v7 }
 0x1d6   :  { %2687 = shalt.err (!%p2684_p4)
}
 0x1d7   :  { %s2700_s7 = smov 512   ;;  %s2701_s3 = smov 32  }
 0x1d8   :  { %2025 = dma.vmem_to_hbm [thread:$0]  %s2020_s5, 16384, %s4578_s4, [#allocation3], %s2700_s7, %s2700_s7, %s2701_s3  }
 0x1d9   :  { %2696 = dma.done.wait [#allocation3], 16384  }
 0x1da   :  { %2697 = vsyncadd [#allocation3], 4294950912 }
 0x1db   :  { %2029 = vsyncpa [#allocation3], 1 }

</bundles_post_ra>
